<compile_context>
chip_gen: v7x
topology: tpu7x:2x2x1
jax: 0.10.0
libtpu: 0.0.40
codegen_flags: <defaults>
</compile_context>

<pallas_src>
import functools

import jax
import jax.numpy as jnp
from jax import lax
from jax.experimental import pallas as pl
from jax.experimental.pallas import tpu as pltpu


_LANE = 128
_VMEM_LIMIT = 32 * 1024 * 1024     # safe on v5e/v6e (128 MiB) and v7x (64 MiB)

SRC_CH = (8, 16, 32)               # real channel widths of the frozen stages
_CP = _LANE                        # stored (lane-padded) width of activations


def _round_up(x, m):
    return (x + m - 1) // m * m


# ----------------------------- Pallas kernels ------------------------------ #

def _conv3x3_kernel(ph_ref, w_ref, b_ref, o_ref, *, taps, Ho, Wo, relu):
    """Fused 3x3 conv: 9-tap shift-and-matmul, f32 accumulate, bias + ReLU.

    ph_ref : (1, P, Hph, Wph, Cin) bf16 -- spatially padded (and, for stride 2,
             even/odd phase-split) input.  Each tap (di, dj) is a contiguous
             (Wo, Cin) window of one phase, so there is no im2col and no
             strided read.
    w_ref  : (9, Cin, Coutp) bf16, tap-major (t = di*3 + dj).
    b_ref  : (1, Coutp) f32.
    o_ref  : (1, Ho, Wo, Coutp) bf16; Coutp = 128 so stores are lane-dense.
    """
    coutp = o_ref.shape[-1]
    bias = b_ref[...]                                       # (1, Coutp) f32

    def row_body(ho, carry):
        acc = jnp.zeros((Wo, coutp), jnp.float32)
        for t, (p, r0, c0) in enumerate(taps):
            win = ph_ref[0, p, r0 + ho, pl.ds(c0, Wo), :]   # (Wo, Cin) bf16
            acc = acc + jnp.dot(win, w_ref[t],
                                preferred_element_type=jnp.float32)
        r = acc + bias
        if relu:
            r = jnp.maximum(r, 0.0)
        o_ref[0, ho] = r.astype(o_ref.dtype)
        return carry

    lax.fori_loop(0, Ho, row_body, 0)


def _delta_head_kernel(f1_ref, f2_ref, f3_ref,
                       aw1_ref, ab1_ref, aw2_ref, ab2_ref, aw3_ref, ab3_ref,
                       w1_ref, b1_ref, w2_ref, b2_ref, o_ref, *, Kp):
    """Fused SNOW delta path for one sample (single launch):

    For each frozen feature map: 1x1 delta adapter + bias + ReLU + global
    average pool (ReLU before pooling, as in the reference), then
    fc1 + ReLU + fc2.  The z = concat(pooled) @ fc1 product is computed as a
    sum over the three Kp-wide row blocks of fc1_w, so pooled features stay
    Kp-padded end to end and no lane concat is needed.  Head math stays f32.
    """
    h = b1_ref[...]                                         # (1, Mp) f32
    for i, (f_ref, aw_ref, ab_ref) in enumerate((
            (f1_ref, aw1_ref, ab1_ref),
            (f2_ref, aw2_ref, ab2_ref),
            (f3_ref, aw3_ref, ab3_ref))):
        f = f_ref[0]                                        # (HW, Cp) bf16
        y = jnp.dot(f, aw_ref[...], preferred_element_type=jnp.float32)
        y = jnp.maximum(y + ab_ref[...], 0.0)               # (HW, Kp) f32
        pooled = jnp.sum(y, axis=0, keepdims=True) * (1.0 / f.shape[0])
        h = h + jnp.dot(pooled, w1_ref[pl.ds(i * Kp, Kp), :],
                        preferred_element_type=jnp.float32)
    h = jnp.maximum(h, 0.0)                                 # (1, Mp) f32
    o = jnp.dot(h, w2_ref[...], preferred_element_type=jnp.float32)
    o_ref[0] = o + b2_ref[...]                              # (1, OutP) f32


# ------------------------------ conv wrapper -------------------------------- #

def conv2d_3x3(x, w9, b, stride, relu=True):
    """NHWC 3x3 conv (padding=1, stride 1 or 2) as a single Pallas call.

    The only XLA-side prep is the spatial zero-pad and, for stride 2, a 4-way
    even/odd phase split of the padded input (1x traffic) so that every tap is
    a contiguous window inside the kernel.
    """
    N, H, W, C = x.shape
    assert H % 2 == 0 and W % 2 == 0
    assert w9.shape[1] == C, (w9.shape, C)
    Coutp = w9.shape[-1]

    xp = jnp.pad(x, ((0, 0), (1, 1), (1, 1), (0, 0)))
    if stride == 1:
        ph = xp[:, None]                                       # (N,1,H+2,W+2,C)
        Ho, Wo = H, W
        taps = tuple((0, di, dj) for di in range(3) for dj in range(3))
    else:
        ph = jnp.stack([xp[:, 0::2, 0::2], xp[:, 0::2, 1::2],
                        xp[:, 1::2, 0::2], xp[:, 1::2, 1::2]], axis=1)
        Ho, Wo = H // 2, W // 2
        taps = tuple(((di % 2) * 2 + (dj % 2), di // 2, dj // 2)
                     for di in range(3) for dj in range(3))
    P, Hph, Wph = ph.shape[1], ph.shape[2], ph.shape[3]

    kernel = functools.partial(_conv3x3_kernel, taps=taps, Ho=Ho, Wo=Wo,
                               relu=relu)
    return pl.pallas_call(
        kernel,
        out_shape=jax.ShapeDtypeStruct((N, Ho, Wo, Coutp), jnp.bfloat16),
        grid_spec=pltpu.PrefetchScalarGridSpec(
            num_scalar_prefetch=0,
            grid=(N,),
            in_specs=[
                pl.BlockSpec((1, P, Hph, Wph, C), lambda n: (n, 0, 0, 0, 0)),
                pl.BlockSpec((9, C, Coutp), lambda n: (0, 0, 0)),
                pl.BlockSpec((1, Coutp), lambda n: (0, 0)),
            ],
            out_specs=pl.BlockSpec((1, Ho, Wo, Coutp), lambda n: (n, 0, 0, 0)),
        ),
        compiler_params=pltpu.CompilerParams(
            dimension_semantics=("parallel",),
            vmem_limit_bytes=_VMEM_LIMIT,
        ),
    )(ph, w9, b)


# --------------------------- fused delta + head ----------------------------- #

def delta_head_forward(feats, params, out_size):
    """One fused pallas_call: three delta adapters + GAP + 2-layer head."""
    Nb = feats[0].shape[0]
    flats = [f.reshape(f.shape[0], f.shape[1] * f.shape[2], f.shape[3])
             for f in feats]                                  # free reshapes
    Kp = params["delta_layer1_w"].shape[1]
    Mp = params["fc1_w"].shape[1]
    OutP = params["fc2_w"].shape[1]
    Cp = flats[0].shape[2]
    hw1, hw2, hw3 = (f.shape[1] for f in flats)

    kernel = functools.partial(_delta_head_kernel, Kp=Kp)
    out = pl.pallas_call(
        kernel,
        out_shape=jax.ShapeDtypeStruct((Nb, 1, OutP), jnp.float32),
        grid_spec=pltpu.PrefetchScalarGridSpec(
            num_scalar_prefetch=0,
            grid=(Nb,),
            in_specs=[
                pl.BlockSpec((1, hw1, Cp), lambda n: (n, 0, 0)),
                pl.BlockSpec((1, hw2, Cp), lambda n: (n, 0, 0)),
                pl.BlockSpec((1, hw3, Cp), lambda n: (n, 0, 0)),
                pl.BlockSpec((Cp, Kp), lambda n: (0, 0)),
                pl.BlockSpec((1, Kp), lambda n: (0, 0)),
                pl.BlockSpec((Cp, Kp), lambda n: (0, 0)),
                pl.BlockSpec((1, Kp), lambda n: (0, 0)),
                pl.BlockSpec((Cp, Kp), lambda n: (0, 0)),
                pl.BlockSpec((1, Kp), lambda n: (0, 0)),
                pl.BlockSpec((3 * Kp, Mp), lambda n: (0, 0)),
                pl.BlockSpec((1, Mp), lambda n: (0, 0)),
                pl.BlockSpec((Mp, OutP), lambda n: (0, 0)),
                pl.BlockSpec((1, OutP), lambda n: (0, 0)),
            ],
            out_specs=pl.BlockSpec((1, 1, OutP), lambda n: (n, 0, 0)),
        ),
        compiler_params=pltpu.CompilerParams(
            dimension_semantics=("parallel",),
            vmem_limit_bytes=_VMEM_LIMIT,
        ),
    )(flats[0], flats[1], flats[2],
      params["delta_layer1_w"], params["delta_layer1_b"],
      params["delta_layer2_w"], params["delta_layer2_b"],
      params["delta_layer3_w"], params["delta_layer3_b"],
      params["fc1_w"], params["fc1_b"], params["fc2_w"], params["fc2_b"])
    return out.reshape(Nb, OutP)[:, :out_size]


# ------------------------------ model pieces -------------------------------- #

def init_params(key, c_in, K, M, out_size, variance):
    """All weights are reshaped / zero-padded to 128-lane widths and cast once
    here, so the forward pass performs no per-call weight padding or casting."""
    ks = jax.random.split(key, 10)
    std_src = 0.1
    std_delta = float(variance) ** 0.5
    Kp = _round_up(K, _LANE)
    Mp = _round_up(M, _LANE)
    OutP = _round_up(out_size, _LANE)
    p = {}

    # Frozen source model (stand-in for resnet50): tap-major (9, Cin, 128) bf16.
    chans = (c_in,) + SRC_CH
    for i in range(3):
        cin, cout = chans[i], chans[i + 1]
        cin_store = cin if i == 0 else _CP     # later layers see 128-ch inputs
        w = std_src * jax.random.normal(ks[i], (3, 3, cin, cout), jnp.float32)
        w9 = jnp.zeros((9, cin_store, _CP), jnp.float32)
        w9 = w9.at[:, :cin, :cout].set(w.reshape(9, cin, cout))
        p[f"src_conv{i+1}_w"] = w9.astype(jnp.bfloat16)
        p[f"src_conv{i+1}_b"] = jnp.zeros((1, _CP), jnp.float32)

    # Delta adapters (stand-in for resnet50_delta), init std = sqrt(variance);
    # zero rows beyond the real channel count, zero cols beyond K.
    for idx, (name, ch) in enumerate(zip(("layer1", "layer2", "layer3"),
                                         SRC_CH)):
        w = std_delta * jax.random.normal(ks[3 + idx], (ch, K), jnp.float32)
        wp = jnp.zeros((_CP, Kp), jnp.float32).at[:ch, :K].set(w)
        p[f"delta_{name}_w"] = wp.astype(jnp.bfloat16)
        p[f"delta_{name}_b"] = jnp.zeros((1, Kp), jnp.float32)

    # Classifier head of the delta model, kept f32; fc1 rows are placed at the
    # Kp-aligned offsets matching the Kp-padded pooled features.
    w1 = std_delta * jax.random.normal(ks[8], (3 * K, M), jnp.float32)
    w1p = jnp.zeros((3 * Kp, Mp), jnp.float32)
    for i in range(3):
        w1p = w1p.at[i * Kp:i * Kp + K, :M].set(w1[i * K:(i + 1) * K])
    p["fc1_w"] = w1p
    p["fc1_b"] = jnp.zeros((1, Mp), jnp.float32)
    w2 = std_delta * jax.random.normal(ks[9], (M, out_size), jnp.float32)
    p["fc2_w"] = jnp.zeros((Mp, OutP), jnp.float32).at[:M, :out_size].set(w2)
    p["fc2_b"] = jnp.zeros((1, OutP), jnp.float32)
    return p


def source_forward(params, x_nhwc):
    """Frozen source model; returns the hook-style feature_map dict."""
    acts = {}
    h = conv2d_3x3(x_nhwc, params["src_conv1_w"], params["src_conv1_b"],
                   stride=1)
    acts["layer1"] = h
    h = conv2d_3x3(h, params["src_conv2_w"], params["src_conv2_b"], stride=2)
    acts["layer2"] = h
    h = conv2d_3x3(h, params["src_conv3_w"], params["src_conv3_b"], stride=2)
    acts["layer3"] = h
    return acts


def snow_forward(params, x_nchw, K, out_size):
    # NCHW (PyTorch) -> NHWC (kernel layout), bf16 operands / f32 accumulate.
    del K  # K is baked into the Kp-padded parameter layout at init time.
    x_nhwc = jnp.transpose(x_nchw, (0, 2, 3, 1)).astype(jnp.bfloat16)
    # frozen source + detach() of the hooked activations -> stop_gradient
    feature_map = jax.tree_util.tree_map(lax.stop_gradient,
                                         source_forward(params, x_nhwc))
    feats = [feature_map[k] for k in ("layer1", "layer2", "layer3")]
    return delta_head_forward(feats, params, out_size)


# ---------------------------------- main ------------------------------------ #

if __name__ == "__main__":
    K, M, OUT_SIZE, VARIANCE = 8, 32, 10, 0.01
    N, C_IN, H, W = 2, 4, 16, 16

    key = jax.random.PRNGKey(0)
    x_key, p_key = jax.random.split(key)
    x = jax.random.normal(x_key, (N, C_IN, H, W), jnp.float32)   # NCHW input
    params = init_params(p_key, C_IN, K, M, OUT_SIZE, VARIANCE)

    fwd = jax.jit(functools.partial(snow_forward, K=K, out_size=OUT_SIZE))
    out = jax.block_until_ready(fwd(params, x))
    assert out.shape == (N, OUT_SIZE), out.shape
    assert bool(jnp.all(jnp.isfinite(out)))
    print("KERNEL_OK")
</pallas_src>

<mosaic_0001>
module attributes {stable_mosaic.version = 11 : i64} {
  func.func @_conv3x3_kernel(%arg0: i32, %arg1: memref<1x1x18x18x4xbf16, #tpu.memory_space<vmem>>, %arg2: memref<9x4x128xbf16, #tpu.memory_space<vmem>>, %arg3: memref<1x128xf32, #tpu.memory_space<vmem>>, %arg4: memref<1x16x16x128xbf16, #tpu.memory_space<vmem>>) attributes {dimension_semantics = [#tpu.dimension_semantics<parallel>], iteration_bounds = array<i64: 2>, scalar_prefetch = 0 : i64, scratch_operands = 0 : i64, tpu.core_type = #tpu.core_type<tc>, window_params = [{transform_indices = @transform_0, window_bounds = array<i64: 1, 1, 18, 18, 4>}, {pipeline_mode = #tpu.pipeline_mode<synchronous>, transform_indices = @transform_1, window_bounds = array<i64: 9, 4, 128>}, {pipeline_mode = #tpu.pipeline_mode<synchronous>, transform_indices = @transform_2, window_bounds = array<i64: 1, 128>}, {transform_indices = @transform_3, window_bounds = array<i64: 1, 16, 16, 128>}]} {
    %c0 = arith.constant 0 : index
    %c0_0 = arith.constant 0 : index
    %0 = vector.load %arg3[%c0, %c0_0] : memref<1x128xf32, #tpu.memory_space<vmem>>, vector<1x128xf32>
    %c0_i32 = arith.constant 0 : i32
    %c16_i32 = arith.constant 16 : i32
    %1 = arith.addi %c0_i32, %c16_i32 : i32
    %c1_i32 = arith.constant 1 : i32
    scf.for %arg5 = %c0_i32 to %1 step %c1_i32  : i32 {
      %cst = arith.constant 0.000000e+00 : f32
      %2 = vector.broadcast %cst : f32 to vector<16x128xf32>
      %c0_i32_2 = arith.constant 0 : i32
      %3 = arith.addi %c0_i32_2, %arg5 : i32
      %c0_3 = arith.constant 0 : index
      %c0_4 = arith.constant 0 : index
      %4 = arith.index_cast %3 : i32 to index
      %c0_5 = arith.constant 0 : index
      %c0_6 = arith.constant 0 : index
      %5 = vector.load %arg1[%c0_3, %c0_4, %4, %c0_5, %c0_6] : memref<1x1x18x18x4xbf16, #tpu.memory_space<vmem>>, vector<1x1x1x16x4xbf16>
      %6 = vector.shape_cast %5 : vector<1x1x1x16x4xbf16> to vector<16x4xbf16>
      %c0_7 = arith.constant 0 : index
      %c0_8 = arith.constant 0 : index
      %c0_9 = arith.constant 0 : index
      %7 = vector.load %arg2[%c0_7, %c0_8, %c0_9] : memref<9x4x128xbf16, #tpu.memory_space<vmem>>, vector<1x4x128xbf16>
      %8 = vector.shape_cast %7 : vector<1x4x128xbf16> to vector<4x128xbf16>
      %cst_10 = arith.constant dense<0.000000e+00> : vector<16x128xf32>
      %9 = tpu.matmul %6, %8, %cst_10 {dimension_numbers = #tpu.dot_dimension_numbers<[1], [0], [0], [1], [0, 0, 1, 1], [], []>} : vector<16x4xbf16>, vector<4x128xbf16>, vector<16x128xf32> -> vector<16x128xf32>
      %10 = arith.addf %2, %9 : vector<16x128xf32>
      %c0_i32_11 = arith.constant 0 : i32
      %11 = arith.addi %c0_i32_11, %arg5 : i32
      %c0_12 = arith.constant 0 : index
      %c0_13 = arith.constant 0 : index
      %12 = arith.index_cast %11 : i32 to index
      %c1 = arith.constant 1 : index
      %c0_14 = arith.constant 0 : index
      %13 = vector.load %arg1[%c0_12, %c0_13, %12, %c1, %c0_14] : memref<1x1x18x18x4xbf16, #tpu.memory_space<vmem>>, vector<1x1x1x16x4xbf16>
      %14 = vector.shape_cast %13 : vector<1x1x1x16x4xbf16> to vector<16x4xbf16>
      %c1_15 = arith.constant 1 : index
      %c0_16 = arith.constant 0 : index
      %c0_17 = arith.constant 0 : index
      %15 = vector.load %arg2[%c1_15, %c0_16, %c0_17] : memref<9x4x128xbf16, #tpu.memory_space<vmem>>, vector<1x4x128xbf16>
      %16 = vector.shape_cast %15 : vector<1x4x128xbf16> to vector<4x128xbf16>
      %cst_18 = arith.constant dense<0.000000e+00> : vector<16x128xf32>
      %17 = tpu.matmul %14, %16, %cst_18 {dimension_numbers = #tpu.dot_dimension_numbers<[1], [0], [0], [1], [0, 0, 1, 1], [], []>} : vector<16x4xbf16>, vector<4x128xbf16>, vector<16x128xf32> -> vector<16x128xf32>
      %18 = arith.addf %10, %17 : vector<16x128xf32>
      %c0_i32_19 = arith.constant 0 : i32
      %19 = arith.addi %c0_i32_19, %arg5 : i32
      %c0_20 = arith.constant 0 : index
      %c0_21 = arith.constant 0 : index
      %20 = arith.index_cast %19 : i32 to index
      %c2 = arith.constant 2 : index
      %c0_22 = arith.constant 0 : index
      %21 = vector.load %arg1[%c0_20, %c0_21, %20, %c2, %c0_22] : memref<1x1x18x18x4xbf16, #tpu.memory_space<vmem>>, vector<1x1x1x16x4xbf16>
      %22 = vector.shape_cast %21 : vector<1x1x1x16x4xbf16> to vector<16x4xbf16>
      %c2_23 = arith.constant 2 : index
      %c0_24 = arith.constant 0 : index
      %c0_25 = arith.constant 0 : index
      %23 = vector.load %arg2[%c2_23, %c0_24, %c0_25] : memref<9x4x128xbf16, #tpu.memory_space<vmem>>, vector<1x4x128xbf16>
      %24 = vector.shape_cast %23 : vector<1x4x128xbf16> to vector<4x128xbf16>
      %cst_26 = arith.constant dense<0.000000e+00> : vector<16x128xf32>
      %25 = tpu.matmul %22, %24, %cst_26 {dimension_numbers = #tpu.dot_dimension_numbers<[1], [0], [0], [1], [0, 0, 1, 1], [], []>} : vector<16x4xbf16>, vector<4x128xbf16>, vector<16x128xf32> -> vector<16x128xf32>
      %26 = arith.addf %18, %25 : vector<16x128xf32>
      %c1_i32_27 = arith.constant 1 : i32
      %27 = arith.addi %c1_i32_27, %arg5 : i32
      %c0_28 = arith.constant 0 : index
      %c0_29 = arith.constant 0 : index
      %28 = arith.index_cast %27 : i32 to index
      %c0_30 = arith.constant 0 : index
      %c0_31 = arith.constant 0 : index
      %29 = vector.load %arg1[%c0_28, %c0_29, %28, %c0_30, %c0_31] : memref<1x1x18x18x4xbf16, #tpu.memory_space<vmem>>, vector<1x1x1x16x4xbf16>
      %30 = vector.shape_cast %29 : vector<1x1x1x16x4xbf16> to vector<16x4xbf16>
      %c3 = arith.constant 3 : index
      %c0_32 = arith.constant 0 : index
      %c0_33 = arith.constant 0 : index
      %31 = vector.load %arg2[%c3, %c0_32, %c0_33] : memref<9x4x128xbf16, #tpu.memory_space<vmem>>, vector<1x4x128xbf16>
      %32 = vector.shape_cast %31 : vector<1x4x128xbf16> to vector<4x128xbf16>
      %cst_34 = arith.constant dense<0.000000e+00> : vector<16x128xf32>
      %33 = tpu.matmul %30, %32, %cst_34 {dimension_numbers = #tpu.dot_dimension_numbers<[1], [0], [0], [1], [0, 0, 1, 1], [], []>} : vector<16x4xbf16>, vector<4x128xbf16>, vector<16x128xf32> -> vector<16x128xf32>
      %34 = arith.addf %26, %33 : vector<16x128xf32>
      %c1_i32_35 = arith.constant 1 : i32
      %35 = arith.addi %c1_i32_35, %arg5 : i32
      %c0_36 = arith.constant 0 : index
      %c0_37 = arith.constant 0 : index
      %36 = arith.index_cast %35 : i32 to index
      %c1_38 = arith.constant 1 : index
      %c0_39 = arith.constant 0 : index
      %37 = vector.load %arg1[%c0_36, %c0_37, %36, %c1_38, %c0_39] : memref<1x1x18x18x4xbf16, #tpu.memory_space<vmem>>, vector<1x1x1x16x4xbf16>
      %38 = vector.shape_cast %37 : vector<1x1x1x16x4xbf16> to vector<16x4xbf16>
      %c4 = arith.constant 4 : index
      %c0_40 = arith.constant 0 : index
      %c0_41 = arith.constant 0 : index
      %39 = vector.load %arg2[%c4, %c0_40, %c0_41] : memref<9x4x128xbf16, #tpu.memory_space<vmem>>, vector<1x4x128xbf16>
      %40 = vector.shape_cast %39 : vector<1x4x128xbf16> to vector<4x128xbf16>
      %cst_42 = arith.constant dense<0.000000e+00> : vector<16x128xf32>
      %41 = tpu.matmul %38, %40, %cst_42 {dimension_numbers = #tpu.dot_dimension_numbers<[1], [0], [0], [1], [0, 0, 1, 1], [], []>} : vector<16x4xbf16>, vector<4x128xbf16>, vector<16x128xf32> -> vector<16x128xf32>
      %42 = arith.addf %34, %41 : vector<16x128xf32>
      %c1_i32_43 = arith.constant 1 : i32
      %43 = arith.addi %c1_i32_43, %arg5 : i32
      %c0_44 = arith.constant 0 : index
      %c0_45 = arith.constant 0 : index
      %44 = arith.index_cast %43 : i32 to index
      %c2_46 = arith.constant 2 : index
      %c0_47 = arith.constant 0 : index
      %45 = vector.load %arg1[%c0_44, %c0_45, %44, %c2_46, %c0_47] : memref<1x1x18x18x4xbf16, #tpu.memory_space<vmem>>, vector<1x1x1x16x4xbf16>
      %46 = vector.shape_cast %45 : vector<1x1x1x16x4xbf16> to vector<16x4xbf16>
      %c5 = arith.constant 5 : index
      %c0_48 = arith.constant 0 : index
      %c0_49 = arith.constant 0 : index
      %47 = vector.load %arg2[%c5, %c0_48, %c0_49] : memref<9x4x128xbf16, #tpu.memory_space<vmem>>, vector<1x4x128xbf16>
      %48 = vector.shape_cast %47 : vector<1x4x128xbf16> to vector<4x128xbf16>
      %cst_50 = arith.constant dense<0.000000e+00> : vector<16x128xf32>
      %49 = tpu.matmul %46, %48, %cst_50 {dimension_numbers = #tpu.dot_dimension_numbers<[1], [0], [0], [1], [0, 0, 1, 1], [], []>} : vector<16x4xbf16>, vector<4x128xbf16>, vector<16x128xf32> -> vector<16x128xf32>
      %50 = arith.addf %42, %49 : vector<16x128xf32>
      %c2_i32 = arith.constant 2 : i32
      %51 = arith.addi %c2_i32, %arg5 : i32
      %c0_51 = arith.constant 0 : index
      %c0_52 = arith.constant 0 : index
      %52 = arith.index_cast %51 : i32 to index
      %c0_53 = arith.constant 0 : index
      %c0_54 = arith.constant 0 : index
      %53 = vector.load %arg1[%c0_51, %c0_52, %52, %c0_53, %c0_54] : memref<1x1x18x18x4xbf16, #tpu.memory_space<vmem>>, vector<1x1x1x16x4xbf16>
      %54 = vector.shape_cast %53 : vector<1x1x1x16x4xbf16> to vector<16x4xbf16>
      %c6 = arith.constant 6 : index
      %c0_55 = arith.constant 0 : index
      %c0_56 = arith.constant 0 : index
      %55 = vector.load %arg2[%c6, %c0_55, %c0_56] : memref<9x4x128xbf16, #tpu.memory_space<vmem>>, vector<1x4x128xbf16>
      %56 = vector.shape_cast %55 : vector<1x4x128xbf16> to vector<4x128xbf16>
      %cst_57 = arith.constant dense<0.000000e+00> : vector<16x128xf32>
      %57 = tpu.matmul %54, %56, %cst_57 {dimension_numbers = #tpu.dot_dimension_numbers<[1], [0], [0], [1], [0, 0, 1, 1], [], []>} : vector<16x4xbf16>, vector<4x128xbf16>, vector<16x128xf32> -> vector<16x128xf32>
      %58 = arith.addf %50, %57 : vector<16x128xf32>
      %c2_i32_58 = arith.constant 2 : i32
      %59 = arith.addi %c2_i32_58, %arg5 : i32
      %c0_59 = arith.constant 0 : index
      %c0_60 = arith.constant 0 : index
      %60 = arith.index_cast %59 : i32 to index
      %c1_61 = arith.constant 1 : index
      %c0_62 = arith.constant 0 : index
      %61 = vector.load %arg1[%c0_59, %c0_60, %60, %c1_61, %c0_62] : memref<1x1x18x18x4xbf16, #tpu.memory_space<vmem>>, vector<1x1x1x16x4xbf16>
      %62 = vector.shape_cast %61 : vector<1x1x1x16x4xbf16> to vector<16x4xbf16>
      %c7 = arith.constant 7 : index
      %c0_63 = arith.constant 0 : index
      %c0_64 = arith.constant 0 : index
      %63 = vector.load %arg2[%c7, %c0_63, %c0_64] : memref<9x4x128xbf16, #tpu.memory_space<vmem>>, vector<1x4x128xbf16>
      %64 = vector.shape_cast %63 : vector<1x4x128xbf16> to vector<4x128xbf16>
      %cst_65 = arith.constant dense<0.000000e+00> : vector<16x128xf32>
      %65 = tpu.matmul %62, %64, %cst_65 {dimension_numbers = #tpu.dot_dimension_numbers<[1], [0], [0], [1], [0, 0, 1, 1], [], []>} : vector<16x4xbf16>, vector<4x128xbf16>, vector<16x128xf32> -> vector<16x128xf32>
      %66 = arith.addf %58, %65 : vector<16x128xf32>
      %c2_i32_66 = arith.constant 2 : i32
      %67 = arith.addi %c2_i32_66, %arg5 : i32
      %c0_67 = arith.constant 0 : index
      %c0_68 = arith.constant 0 : index
      %68 = arith.index_cast %67 : i32 to index
      %c2_69 = arith.constant 2 : index
      %c0_70 = arith.constant 0 : index
      %69 = vector.load %arg1[%c0_67, %c0_68, %68, %c2_69, %c0_70] : memref<1x1x18x18x4xbf16, #tpu.memory_space<vmem>>, vector<1x1x1x16x4xbf16>
      %70 = vector.shape_cast %69 : vector<1x1x1x16x4xbf16> to vector<16x4xbf16>
      %c8 = arith.constant 8 : index
      %c0_71 = arith.constant 0 : index
      %c0_72 = arith.constant 0 : index
      %71 = vector.load %arg2[%c8, %c0_71, %c0_72] : memref<9x4x128xbf16, #tpu.memory_space<vmem>>, vector<1x4x128xbf16>
      %72 = vector.shape_cast %71 : vector<1x4x128xbf16> to vector<4x128xbf16>
      %cst_73 = arith.constant dense<0.000000e+00> : vector<16x128xf32>
      %73 = tpu.matmul %70, %72, %cst_73 {dimension_numbers = #tpu.dot_dimension_numbers<[1], [0], [0], [1], [0, 0, 1, 1], [], []>} : vector<16x4xbf16>, vector<4x128xbf16>, vector<16x128xf32> -> vector<16x128xf32>
      %74 = arith.addf %66, %73 : vector<16x128xf32>
      %75 = vector.broadcast %0 : vector<1x128xf32> to vector<16x128xf32>
      %76 = arith.addf %74, %75 : vector<16x128xf32>
      %cst_74 = arith.constant 0.000000e+00 : f32
      %77 = vector.broadcast %cst_74 : f32 to vector<16x128xf32>
      %78 = arith.maximumf %76, %77 : vector<16x128xf32>
      %79 = arith.truncf %78 : vector<16x128xf32> to vector<16x128xbf16>
      %c0_75 = arith.constant 0 : index
      %80 = arith.index_cast %arg5 : i32 to index
      %c0_76 = arith.constant 0 : index
      %c0_77 = arith.constant 0 : index
      %81 = vector.load %arg4[%c0_75, %80, %c0_76, %c0_77] : memref<1x16x16x128xbf16, #tpu.memory_space<vmem>>, vector<1x1x16x128xbf16>
      %82 = vector.shape_cast %81 : vector<1x1x16x128xbf16> to vector<16x128xbf16>
      %83 = vector.shape_cast %79 : vector<16x128xbf16> to vector<1x1x16x128xbf16>
      tpu.vector_store %arg4[%c0_75, %80, %c0_76, %c0_77], %83 {strides = array<i32>} : memref<1x16x16x128xbf16, #tpu.memory_space<vmem>>, vector<1x1x16x128xbf16>,
    }
    %c16_i32_1 = arith.constant 16 : i32
    return
  }
  func.func @transform_0(%arg0: i32) -> (i32, i32, i32, i32, i32) {
    %c0_i32 = arith.constant 0 : i32
    %c0_i32_0 = arith.constant 0 : i32
    %c0_i32_1 = arith.constant 0 : i32
    %c0_i32_2 = arith.constant 0 : i32
    %c0_i32_3 = arith.constant 0 : i32
    return %arg0, %c0_i32, %c0_i32_0, %c0_i32_1, %c0_i32_2 : i32, i32, i32, i32, i32
  }
  func.func @transform_1(%arg0: i32) -> (i32, i32, i32) {
    %c0_i32 = arith.constant 0 : i32
    %c0_i32_0 = arith.constant 0 : i32
    %c0_i32_1 = arith.constant 0 : i32
    %c0_i32_2 = arith.constant 0 : i32
    return %c0_i32, %c0_i32_0, %c0_i32_1 : i32, i32, i32
  }
  func.func @transform_2(%arg0: i32) -> (i32, i32) {
    %c0_i32 = arith.constant 0 : i32
    %c0_i32_0 = arith.constant 0 : i32
    %c0_i32_1 = arith.constant 0 : i32
    return %c0_i32, %c0_i32_0 : i32, i32
  }
  func.func @transform_3(%arg0: i32) -> (i32, i32, i32, i32) {
    %c0_i32 = arith.constant 0 : i32
    %c0_i32_0 = arith.constant 0 : i32
    %c0_i32_1 = arith.constant 0 : i32
    %c0_i32_2 = arith.constant 0 : i32
    return %arg0, %c0_i32, %c0_i32_0, %c0_i32_1 : i32, i32, i32, i32
  }
}

module attributes {stable_mosaic.version = 11 : i64} {
  func.func @_conv3x3_kernel(%arg0: i32, %arg1: memref<1x4x9x9x128xbf16, #tpu.memory_space<vmem>>, %arg2: memref<9x128x128xbf16, #tpu.memory_space<vmem>>, %arg3: memref<1x128xf32, #tpu.memory_space<vmem>>, %arg4: memref<1x8x8x128xbf16, #tpu.memory_space<vmem>>) attributes {dimension_semantics = [#tpu.dimension_semantics<parallel>], iteration_bounds = array<i64: 2>, scalar_prefetch = 0 : i64, scratch_operands = 0 : i64, tpu.core_type = #tpu.core_type<tc>, window_params = [{transform_indices = @transform_0, window_bounds = array<i64: 1, 4, 9, 9, 128>}, {pipeline_mode = #tpu.pipeline_mode<synchronous>, transform_indices = @transform_1, window_bounds = array<i64: 9, 128, 128>}, {pipeline_mode = #tpu.pipeline_mode<synchronous>, transform_indices = @transform_2, window_bounds = array<i64: 1, 128>}, {transform_indices = @transform_3, window_bounds = array<i64: 1, 8, 8, 128>}]} {
    %c0 = arith.constant 0 : index
    %c0_0 = arith.constant 0 : index
    %0 = vector.load %arg3[%c0, %c0_0] : memref<1x128xf32, #tpu.memory_space<vmem>>, vector<1x128xf32>
    %c0_i32 = arith.constant 0 : i32
    %c8_i32 = arith.constant 8 : i32
    %1 = arith.addi %c0_i32, %c8_i32 : i32
    %c1_i32 = arith.constant 1 : i32
    scf.for %arg5 = %c0_i32 to %1 step %c1_i32  : i32 {
      %cst = arith.constant 0.000000e+00 : f32
      %2 = vector.broadcast %cst : f32 to vector<8x128xf32>
      %c0_i32_2 = arith.constant 0 : i32
      %3 = arith.addi %c0_i32_2, %arg5 : i32
      %c0_3 = arith.constant 0 : index
      %c0_4 = arith.constant 0 : index
      %4 = arith.index_cast %3 : i32 to index
      %c0_5 = arith.constant 0 : index
      %c0_6 = arith.constant 0 : index
      %5 = vector.load %arg1[%c0_3, %c0_4, %4, %c0_5, %c0_6] : memref<1x4x9x9x128xbf16, #tpu.memory_space<vmem>>, vector<1x1x1x8x128xbf16>
      %6 = vector.shape_cast %5 : vector<1x1x1x8x128xbf16> to vector<8x128xbf16>
      %c0_7 = arith.constant 0 : index
      %c0_8 = arith.constant 0 : index
      %c0_9 = arith.constant 0 : index
      %7 = vector.load %arg2[%c0_7, %c0_8, %c0_9] : memref<9x128x128xbf16, #tpu.memory_space<vmem>>, vector<1x128x128xbf16>
      %8 = vector.shape_cast %7 : vector<1x128x128xbf16> to vector<128x128xbf16>
      %cst_10 = arith.constant dense<0.000000e+00> : vector<8x128xf32>
      %9 = tpu.matmul %6, %8, %cst_10 {dimension_numbers = #tpu.dot_dimension_numbers<[1], [0], [0], [1], [0, 0, 1, 1], [], []>} : vector<8x128xbf16>, vector<128x128xbf16>, vector<8x128xf32> -> vector<8x128xf32>
      %10 = arith.addf %2, %9 : vector<8x128xf32>
      %c0_i32_11 = arith.constant 0 : i32
      %11 = arith.addi %c0_i32_11, %arg5 : i32
      %c0_12 = arith.constant 0 : index
      %c1 = arith.constant 1 : index
      %12 = arith.index_cast %11 : i32 to index
      %c0_13 = arith.constant 0 : index
      %c0_14 = arith.constant 0 : index
      %13 = vector.load %arg1[%c0_12, %c1, %12, %c0_13, %c0_14] : memref<1x4x9x9x128xbf16, #tpu.memory_space<vmem>>, vector<1x1x1x8x128xbf16>
      %14 = vector.shape_cast %13 : vector<1x1x1x8x128xbf16> to vector<8x128xbf16>
      %c1_15 = arith.constant 1 : index
      %c0_16 = arith.constant 0 : index
      %c0_17 = arith.constant 0 : index
      %15 = vector.load %arg2[%c1_15, %c0_16, %c0_17] : memref<9x128x128xbf16, #tpu.memory_space<vmem>>, vector<1x128x128xbf16>
      %16 = vector.shape_cast %15 : vector<1x128x128xbf16> to vector<128x128xbf16>
      %cst_18 = arith.constant dense<0.000000e+00> : vector<8x128xf32>
      %17 = tpu.matmul %14, %16, %cst_18 {dimension_numbers = #tpu.dot_dimension_numbers<[1], [0], [0], [1], [0, 0, 1, 1], [], []>} : vector<8x128xbf16>, vector<128x128xbf16>, vector<8x128xf32> -> vector<8x128xf32>
      %18 = arith.addf %10, %17 : vector<8x128xf32>
      %c0_i32_19 = arith.constant 0 : i32
      %19 = arith.addi %c0_i32_19, %arg5 : i32
      %c0_20 = arith.constant 0 : index
      %c0_21 = arith.constant 0 : index
      %20 = arith.index_cast %19 : i32 to index
      %c1_22 = arith.constant 1 : index
      %c0_23 = arith.constant 0 : index
      %21 = vector.load %arg1[%c0_20, %c0_21, %20, %c1_22, %c0_23] : memref<1x4x9x9x128xbf16, #tpu.memory_space<vmem>>, vector<1x1x1x8x128xbf16>
      %22 = vector.shape_cast %21 : vector<1x1x1x8x128xbf16> to vector<8x128xbf16>
      %c2 = arith.constant 2 : index
      %c0_24 = arith.constant 0 : index
      %c0_25 = arith.constant 0 : index
      %23 = vector.load %arg2[%c2, %c0_24, %c0_25] : memref<9x128x128xbf16, #tpu.memory_space<vmem>>, vector<1x128x128xbf16>
      %24 = vector.shape_cast %23 : vector<1x128x128xbf16> to vector<128x128xbf16>
      %cst_26 = arith.constant dense<0.000000e+00> : vector<8x128xf32>
      %25 = tpu.matmul %22, %24, %cst_26 {dimension_numbers = #tpu.dot_dimension_numbers<[1], [0], [0], [1], [0, 0, 1, 1], [], []>} : vector<8x128xbf16>, vector<128x128xbf16>, vector<8x128xf32> -> vector<8x128xf32>
      %26 = arith.addf %18, %25 : vector<8x128xf32>
      %c0_i32_27 = arith.constant 0 : i32
      %27 = arith.addi %c0_i32_27, %arg5 : i32
      %c0_28 = arith.constant 0 : index
      %c2_29 = arith.constant 2 : index
      %28 = arith.index_cast %27 : i32 to index
      %c0_30 = arith.constant 0 : index
      %c0_31 = arith.constant 0 : index
      %29 = vector.load %arg1[%c0_28, %c2_29, %28, %c0_30, %c0_31] : memref<1x4x9x9x128xbf16, #tpu.memory_space<vmem>>, vector<1x1x1x8x128xbf16>
      %30 = vector.shape_cast %29 : vector<1x1x1x8x128xbf16> to vector<8x128xbf16>
      %c3 = arith.constant 3 : index
      %c0_32 = arith.constant 0 : index
      %c0_33 = arith.constant 0 : index
      %31 = vector.load %arg2[%c3, %c0_32, %c0_33] : memref<9x128x128xbf16, #tpu.memory_space<vmem>>, vector<1x128x128xbf16>
      %32 = vector.shape_cast %31 : vector<1x128x128xbf16> to vector<128x128xbf16>
      %cst_34 = arith.constant dense<0.000000e+00> : vector<8x128xf32>
      %33 = tpu.matmul %30, %32, %cst_34 {dimension_numbers = #tpu.dot_dimension_numbers<[1], [0], [0], [1], [0, 0, 1, 1], [], []>} : vector<8x128xbf16>, vector<128x128xbf16>, vector<8x128xf32> -> vector<8x128xf32>
      %34 = arith.addf %26, %33 : vector<8x128xf32>
      %c0_i32_35 = arith.constant 0 : i32
      %35 = arith.addi %c0_i32_35, %arg5 : i32
      %c0_36 = arith.constant 0 : index
      %c3_37 = arith.constant 3 : index
      %36 = arith.index_cast %35 : i32 to index
      %c0_38 = arith.constant 0 : index
      %c0_39 = arith.constant 0 : index
      %37 = vector.load %arg1[%c0_36, %c3_37, %36, %c0_38, %c0_39] : memref<1x4x9x9x128xbf16, #tpu.memory_space<vmem>>, vector<1x1x1x8x128xbf16>
      %38 = vector.shape_cast %37 : vector<1x1x1x8x128xbf16> to vector<8x128xbf16>
      %c4 = arith.constant 4 : index
      %c0_40 = arith.constant 0 : index
      %c0_41 = arith.constant 0 : index
      %39 = vector.load %arg2[%c4, %c0_40, %c0_41] : memref<9x128x128xbf16, #tpu.memory_space<vmem>>, vector<1x128x128xbf16>
      %40 = vector.shape_cast %39 : vector<1x128x128xbf16> to vector<128x128xbf16>
      %cst_42 = arith.constant dense<0.000000e+00> : vector<8x128xf32>
      %41 = tpu.matmul %38, %40, %cst_42 {dimension_numbers = #tpu.dot_dimension_numbers<[1], [0], [0], [1], [0, 0, 1, 1], [], []>} : vector<8x128xbf16>, vector<128x128xbf16>, vector<8x128xf32> -> vector<8x128xf32>
      %42 = arith.addf %34, %41 : vector<8x128xf32>
      %c0_i32_43 = arith.constant 0 : i32
      %43 = arith.addi %c0_i32_43, %arg5 : i32
      %c0_44 = arith.constant 0 : index
      %c2_45 = arith.constant 2 : index
      %44 = arith.index_cast %43 : i32 to index
      %c1_46 = arith.constant 1 : index
      %c0_47 = arith.constant 0 : index
      %45 = vector.load %arg1[%c0_44, %c2_45, %44, %c1_46, %c0_47] : memref<1x4x9x9x128xbf16, #tpu.memory_space<vmem>>, vector<1x1x1x8x128xbf16>
      %46 = vector.shape_cast %45 : vector<1x1x1x8x128xbf16> to vector<8x128xbf16>
      %c5 = arith.constant 5 : index
      %c0_48 = arith.constant 0 : index
      %c0_49 = arith.constant 0 : index
      %47 = vector.load %arg2[%c5, %c0_48, %c0_49] : memref<9x128x128xbf16, #tpu.memory_space<vmem>>, vector<1x128x128xbf16>
      %48 = vector.shape_cast %47 : vector<1x128x128xbf16> to vector<128x128xbf16>
      %cst_50 = arith.constant dense<0.000000e+00> : vector<8x128xf32>
      %49 = tpu.matmul %46, %48, %cst_50 {dimension_numbers = #tpu.dot_dimension_numbers<[1], [0], [0], [1], [0, 0, 1, 1], [], []>} : vector<8x128xbf16>, vector<128x128xbf16>, vector<8x128xf32> -> vector<8x128xf32>
      %50 = arith.addf %42, %49 : vector<8x128xf32>
      %c1_i32_51 = arith.constant 1 : i32
      %51 = arith.addi %c1_i32_51, %arg5 : i32
      %c0_52 = arith.constant 0 : index
      %c0_53 = arith.constant 0 : index
      %52 = arith.index_cast %51 : i32 to index
      %c0_54 = arith.constant 0 : index
      %c0_55 = arith.constant 0 : index
      %53 = vector.load %arg1[%c0_52, %c0_53, %52, %c0_54, %c0_55] : memref<1x4x9x9x128xbf16, #tpu.memory_space<vmem>>, vector<1x1x1x8x128xbf16>
      %54 = vector.shape_cast %53 : vector<1x1x1x8x128xbf16> to vector<8x128xbf16>
      %c6 = arith.constant 6 : index
      %c0_56 = arith.constant 0 : index
      %c0_57 = arith.constant 0 : index
      %55 = vector.load %arg2[%c6, %c0_56, %c0_57] : memref<9x128x128xbf16, #tpu.memory_space<vmem>>, vector<1x128x128xbf16>
      %56 = vector.shape_cast %55 : vector<1x128x128xbf16> to vector<128x128xbf16>
      %cst_58 = arith.constant dense<0.000000e+00> : vector<8x128xf32>
      %57 = tpu.matmul %54, %56, %cst_58 {dimension_numbers = #tpu.dot_dimension_numbers<[1], [0], [0], [1], [0, 0, 1, 1], [], []>} : vector<8x128xbf16>, vector<128x128xbf16>, vector<8x128xf32> -> vector<8x128xf32>
      %58 = arith.addf %50, %57 : vector<8x128xf32>
      %c1_i32_59 = arith.constant 1 : i32
      %59 = arith.addi %c1_i32_59, %arg5 : i32
      %c0_60 = arith.constant 0 : index
      %c1_61 = arith.constant 1 : index
      %60 = arith.index_cast %59 : i32 to index
      %c0_62 = arith.constant 0 : index
      %c0_63 = arith.constant 0 : index
      %61 = vector.load %arg1[%c0_60, %c1_61, %60, %c0_62, %c0_63] : memref<1x4x9x9x128xbf16, #tpu.memory_space<vmem>>, vector<1x1x1x8x128xbf16>
      %62 = vector.shape_cast %61 : vector<1x1x1x8x128xbf16> to vector<8x128xbf16>
      %c7 = arith.constant 7 : index
      %c0_64 = arith.constant 0 : index
      %c0_65 = arith.constant 0 : index
      %63 = vector.load %arg2[%c7, %c0_64, %c0_65] : memref<9x128x128xbf16, #tpu.memory_space<vmem>>, vector<1x128x128xbf16>
      %64 = vector.shape_cast %63 : vector<1x128x128xbf16> to vector<128x128xbf16>
      %cst_66 = arith.constant dense<0.000000e+00> : vector<8x128xf32>
      %65 = tpu.matmul %62, %64, %cst_66 {dimension_numbers = #tpu.dot_dimension_numbers<[1], [0], [0], [1], [0, 0, 1, 1], [], []>} : vector<8x128xbf16>, vector<128x128xbf16>, vector<8x128xf32> -> vector<8x128xf32>
      %66 = arith.addf %58, %65 : vector<8x128xf32>
      %c1_i32_67 = arith.constant 1 : i32
      %67 = arith.addi %c1_i32_67, %arg5 : i32
      %c0_68 = arith.constant 0 : index
      %c0_69 = arith.constant 0 : index
      %68 = arith.index_cast %67 : i32 to index
      %c1_70 = arith.constant 1 : index
      %c0_71 = arith.constant 0 : index
      %69 = vector.load %arg1[%c0_68, %c0_69, %68, %c1_70, %c0_71] : memref<1x4x9x9x128xbf16, #tpu.memory_space<vmem>>, vector<1x1x1x8x128xbf16>
      %70 = vector.shape_cast %69 : vector<1x1x1x8x128xbf16> to vector<8x128xbf16>
      %c8 = arith.constant 8 : index
      %c0_72 = arith.constant 0 : index
      %c0_73 = arith.constant 0 : index
      %71 = vector.load %arg2[%c8, %c0_72, %c0_73] : memref<9x128x128xbf16, #tpu.memory_space<vmem>>, vector<1x128x128xbf16>
      %72 = vector.shape_cast %71 : vector<1x128x128xbf16> to vector<128x128xbf16>
      %cst_74 = arith.constant dense<0.000000e+00> : vector<8x128xf32>
      %73 = tpu.matmul %70, %72, %cst_74 {dimension_numbers = #tpu.dot_dimension_numbers<[1], [0], [0], [1], [0, 0, 1, 1], [], []>} : vector<8x128xbf16>, vector<128x128xbf16>, vector<8x128xf32> -> vector<8x128xf32>
      %74 = arith.addf %66, %73 : vector<8x128xf32>
      %75 = vector.broadcast %0 : vector<1x128xf32> to vector<8x128xf32>
      %76 = arith.addf %74, %75 : vector<8x128xf32>
      %cst_75 = arith.constant 0.000000e+00 : f32
      %77 = vector.broadcast %cst_75 : f32 to vector<8x128xf32>
      %78 = arith.maximumf %76, %77 : vector<8x128xf32>
      %79 = arith.truncf %78 : vector<8x128xf32> to vector<8x128xbf16>
      %c0_76 = arith.constant 0 : index
      %80 = arith.index_cast %arg5 : i32 to index
      %c0_77 = arith.constant 0 : index
      %c0_78 = arith.constant 0 : index
      %81 = vector.load %arg4[%c0_76, %80, %c0_77, %c0_78] : memref<1x8x8x128xbf16, #tpu.memory_space<vmem>>, vector<1x1x8x128xbf16>
      %82 = vector.shape_cast %81 : vector<1x1x8x128xbf16> to vector<8x128xbf16>
      %83 = vector.shape_cast %79 : vector<8x128xbf16> to vector<1x1x8x128xbf16>
      tpu.vector_store %arg4[%c0_76, %80, %c0_77, %c0_78], %83 {strides = array<i32>} : memref<1x8x8x128xbf16, #tpu.memory_space<vmem>>, vector<1x1x8x128xbf16>,
    }
    %c8_i32_1 = arith.constant 8 : i32
    return
  }
  func.func @transform_0(%arg0: i32) -> (i32, i32, i32, i32, i32) {
    %c0_i32 = arith.constant 0 : i32
    %c0_i32_0 = arith.constant 0 : i32
    %c0_i32_1 = arith.constant 0 : i32
    %c0_i32_2 = arith.constant 0 : i32
    %c0_i32_3 = arith.constant 0 : i32
    return %arg0, %c0_i32, %c0_i32_0, %c0_i32_1, %c0_i32_2 : i32, i32, i32, i32, i32
  }
  func.func @transform_1(%arg0: i32) -> (i32, i32, i32) {
    %c0_i32 = arith.constant 0 : i32
    %c0_i32_0 = arith.constant 0 : i32
    %c0_i32_1 = arith.constant 0 : i32
    %c0_i32_2 = arith.constant 0 : i32
    return %c0_i32, %c0_i32_0, %c0_i32_1 : i32, i32, i32
  }
  func.func @transform_2(%arg0: i32) -> (i32, i32) {
    %c0_i32 = arith.constant 0 : i32
    %c0_i32_0 = arith.constant 0 : i32
    %c0_i32_1 = arith.constant 0 : i32
    return %c0_i32, %c0_i32_0 : i32, i32
  }
  func.func @transform_3(%arg0: i32) -> (i32, i32, i32, i32) {
    %c0_i32 = arith.constant 0 : i32
    %c0_i32_0 = arith.constant 0 : i32
    %c0_i32_1 = arith.constant 0 : i32
    %c0_i32_2 = arith.constant 0 : i32
    return %arg0, %c0_i32, %c0_i32_0, %c0_i32_1 : i32, i32, i32, i32
  }
}

module attributes {stable_mosaic.version = 11 : i64} {
  func.func @_conv3x3_kernel(%arg0: i32, %arg1: memref<1x4x5x5x128xbf16, #tpu.memory_space<vmem>>, %arg2: memref<9x128x128xbf16, #tpu.memory_space<vmem>>, %arg3: memref<1x128xf32, #tpu.memory_space<vmem>>, %arg4: memref<1x4x4x128xbf16, #tpu.memory_space<vmem>>) attributes {dimension_semantics = [#tpu.dimension_semantics<parallel>], iteration_bounds = array<i64: 2>, scalar_prefetch = 0 : i64, scratch_operands = 0 : i64, tpu.core_type = #tpu.core_type<tc>, window_params = [{transform_indices = @transform_0, window_bounds = array<i64: 1, 4, 5, 5, 128>}, {pipeline_mode = #tpu.pipeline_mode<synchronous>, transform_indices = @transform_1, window_bounds = array<i64: 9, 128, 128>}, {pipeline_mode = #tpu.pipeline_mode<synchronous>, transform_indices = @transform_2, window_bounds = array<i64: 1, 128>}, {transform_indices = @transform_3, window_bounds = array<i64: 1, 4, 4, 128>}]} {
    %c0 = arith.constant 0 : index
    %c0_0 = arith.constant 0 : index
    %0 = vector.load %arg3[%c0, %c0_0] : memref<1x128xf32, #tpu.memory_space<vmem>>, vector<1x128xf32>
    %c0_i32 = arith.constant 0 : i32
    %c4_i32 = arith.constant 4 : i32
    %1 = arith.addi %c0_i32, %c4_i32 : i32
    %c1_i32 = arith.constant 1 : i32
    scf.for %arg5 = %c0_i32 to %1 step %c1_i32  : i32 {
      %cst = arith.constant 0.000000e+00 : f32
      %2 = vector.broadcast %cst : f32 to vector<4x128xf32>
      %c0_i32_2 = arith.constant 0 : i32
      %3 = arith.addi %c0_i32_2, %arg5 : i32
      %c0_3 = arith.constant 0 : index
      %c0_4 = arith.constant 0 : index
      %4 = arith.index_cast %3 : i32 to index
      %c0_5 = arith.constant 0 : index
      %c0_6 = arith.constant 0 : index
      %5 = vector.load %arg1[%c0_3, %c0_4, %4, %c0_5, %c0_6] : memref<1x4x5x5x128xbf16, #tpu.memory_space<vmem>>, vector<1x1x1x4x128xbf16>
      %6 = vector.shape_cast %5 : vector<1x1x1x4x128xbf16> to vector<4x128xbf16>
      %c0_7 = arith.constant 0 : index
      %c0_8 = arith.constant 0 : index
      %c0_9 = arith.constant 0 : index
      %7 = vector.load %arg2[%c0_7, %c0_8, %c0_9] : memref<9x128x128xbf16, #tpu.memory_space<vmem>>, vector<1x128x128xbf16>
      %8 = vector.shape_cast %7 : vector<1x128x128xbf16> to vector<128x128xbf16>
      %cst_10 = arith.constant dense<0.000000e+00> : vector<4x128xf32>
      %9 = tpu.matmul %6, %8, %cst_10 {dimension_numbers = #tpu.dot_dimension_numbers<[1], [0], [0], [1], [0, 0, 1, 1], [], []>} : vector<4x128xbf16>, vector<128x128xbf16>, vector<4x128xf32> -> vector<4x128xf32>
      %10 = arith.addf %2, %9 : vector<4x128xf32>
      %c0_i32_11 = arith.constant 0 : i32
      %11 = arith.addi %c0_i32_11, %arg5 : i32
      %c0_12 = arith.constant 0 : index
      %c1 = arith.constant 1 : index
      %12 = arith.index_cast %11 : i32 to index
      %c0_13 = arith.constant 0 : index
      %c0_14 = arith.constant 0 : index
      %13 = vector.load %arg1[%c0_12, %c1, %12, %c0_13, %c0_14] : memref<1x4x5x5x128xbf16, #tpu.memory_space<vmem>>, vector<1x1x1x4x128xbf16>
      %14 = vector.shape_cast %13 : vector<1x1x1x4x128xbf16> to vector<4x128xbf16>
      %c1_15 = arith.constant 1 : index
      %c0_16 = arith.constant 0 : index
      %c0_17 = arith.constant 0 : index
      %15 = vector.load %arg2[%c1_15, %c0_16, %c0_17] : memref<9x128x128xbf16, #tpu.memory_space<vmem>>, vector<1x128x128xbf16>
      %16 = vector.shape_cast %15 : vector<1x128x128xbf16> to vector<128x128xbf16>
      %cst_18 = arith.constant dense<0.000000e+00> : vector<4x128xf32>
      %17 = tpu.matmul %14, %16, %cst_18 {dimension_numbers = #tpu.dot_dimension_numbers<[1], [0], [0], [1], [0, 0, 1, 1], [], []>} : vector<4x128xbf16>, vector<128x128xbf16>, vector<4x128xf32> -> vector<4x128xf32>
      %18 = arith.addf %10, %17 : vector<4x128xf32>
      %c0_i32_19 = arith.constant 0 : i32
      %19 = arith.addi %c0_i32_19, %arg5 : i32
      %c0_20 = arith.constant 0 : index
      %c0_21 = arith.constant 0 : index
      %20 = arith.index_cast %19 : i32 to index
      %c1_22 = arith.constant 1 : index
      %c0_23 = arith.constant 0 : index
      %21 = vector.load %arg1[%c0_20, %c0_21, %20, %c1_22, %c0_23] : memref<1x4x5x5x128xbf16, #tpu.memory_space<vmem>>, vector<1x1x1x4x128xbf16>
      %22 = vector.shape_cast %21 : vector<1x1x1x4x128xbf16> to vector<4x128xbf16>
      %c2 = arith.constant 2 : index
      %c0_24 = arith.constant 0 : index
      %c0_25 = arith.constant 0 : index
      %23 = vector.load %arg2[%c2, %c0_24, %c0_25] : memref<9x128x128xbf16, #tpu.memory_space<vmem>>, vector<1x128x128xbf16>
      %24 = vector.shape_cast %23 : vector<1x128x128xbf16> to vector<128x128xbf16>
      %cst_26 = arith.constant dense<0.000000e+00> : vector<4x128xf32>
      %25 = tpu.matmul %22, %24, %cst_26 {dimension_numbers = #tpu.dot_dimension_numbers<[1], [0], [0], [1], [0, 0, 1, 1], [], []>} : vector<4x128xbf16>, vector<128x128xbf16>, vector<4x128xf32> -> vector<4x128xf32>
      %26 = arith.addf %18, %25 : vector<4x128xf32>
      %c0_i32_27 = arith.constant 0 : i32
      %27 = arith.addi %c0_i32_27, %arg5 : i32
      %c0_28 = arith.constant 0 : index
      %c2_29 = arith.constant 2 : index
      %28 = arith.index_cast %27 : i32 to index
      %c0_30 = arith.constant 0 : index
      %c0_31 = arith.constant 0 : index
      %29 = vector.load %arg1[%c0_28, %c2_29, %28, %c0_30, %c0_31] : memref<1x4x5x5x128xbf16, #tpu.memory_space<vmem>>, vector<1x1x1x4x128xbf16>
      %30 = vector.shape_cast %29 : vector<1x1x1x4x128xbf16> to vector<4x128xbf16>
      %c3 = arith.constant 3 : index
      %c0_32 = arith.constant 0 : index
      %c0_33 = arith.constant 0 : index
      %31 = vector.load %arg2[%c3, %c0_32, %c0_33] : memref<9x128x128xbf16, #tpu.memory_space<vmem>>, vector<1x128x128xbf16>
      %32 = vector.shape_cast %31 : vector<1x128x128xbf16> to vector<128x128xbf16>
      %cst_34 = arith.constant dense<0.000000e+00> : vector<4x128xf32>
      %33 = tpu.matmul %30, %32, %cst_34 {dimension_numbers = #tpu.dot_dimension_numbers<[1], [0], [0], [1], [0, 0, 1, 1], [], []>} : vector<4x128xbf16>, vector<128x128xbf16>, vector<4x128xf32> -> vector<4x128xf32>
      %34 = arith.addf %26, %33 : vector<4x128xf32>
      %c0_i32_35 = arith.constant 0 : i32
      %35 = arith.addi %c0_i32_35, %arg5 : i32
      %c0_36 = arith.constant 0 : index
      %c3_37 = arith.constant 3 : index
      %36 = arith.index_cast %35 : i32 to index
      %c0_38 = arith.constant 0 : index
      %c0_39 = arith.constant 0 : index
      %37 = vector.load %arg1[%c0_36, %c3_37, %36, %c0_38, %c0_39] : memref<1x4x5x5x128xbf16, #tpu.memory_space<vmem>>, vector<1x1x1x4x128xbf16>
      %38 = vector.shape_cast %37 : vector<1x1x1x4x128xbf16> to vector<4x128xbf16>
      %c4 = arith.constant 4 : index
      %c0_40 = arith.constant 0 : index
      %c0_41 = arith.constant 0 : index
      %39 = vector.load %arg2[%c4, %c0_40, %c0_41] : memref<9x128x128xbf16, #tpu.memory_space<vmem>>, vector<1x128x128xbf16>
      %40 = vector.shape_cast %39 : vector<1x128x128xbf16> to vector<128x128xbf16>
      %cst_42 = arith.constant dense<0.000000e+00> : vector<4x128xf32>
      %41 = tpu.matmul %38, %40, %cst_42 {dimension_numbers = #tpu.dot_dimension_numbers<[1], [0], [0], [1], [0, 0, 1, 1], [], []>} : vector<4x128xbf16>, vector<128x128xbf16>, vector<4x128xf32> -> vector<4x128xf32>
      %42 = arith.addf %34, %41 : vector<4x128xf32>
      %c0_i32_43 = arith.constant 0 : i32
      %43 = arith.addi %c0_i32_43, %arg5 : i32
      %c0_44 = arith.constant 0 : index
      %c2_45 = arith.constant 2 : index
      %44 = arith.index_cast %43 : i32 to index
      %c1_46 = arith.constant 1 : index
      %c0_47 = arith.constant 0 : index
      %45 = vector.load %arg1[%c0_44, %c2_45, %44, %c1_46, %c0_47] : memref<1x4x5x5x128xbf16, #tpu.memory_space<vmem>>, vector<1x1x1x4x128xbf16>
      %46 = vector.shape_cast %45 : vector<1x1x1x4x128xbf16> to vector<4x128xbf16>
      %c5 = arith.constant 5 : index
      %c0_48 = arith.constant 0 : index
      %c0_49 = arith.constant 0 : index
      %47 = vector.load %arg2[%c5, %c0_48, %c0_49] : memref<9x128x128xbf16, #tpu.memory_space<vmem>>, vector<1x128x128xbf16>
      %48 = vector.shape_cast %47 : vector<1x128x128xbf16> to vector<128x128xbf16>
      %cst_50 = arith.constant dense<0.000000e+00> : vector<4x128xf32>
      %49 = tpu.matmul %46, %48, %cst_50 {dimension_numbers = #tpu.dot_dimension_numbers<[1], [0], [0], [1], [0, 0, 1, 1], [], []>} : vector<4x128xbf16>, vector<128x128xbf16>, vector<4x128xf32> -> vector<4x128xf32>
      %50 = arith.addf %42, %49 : vector<4x128xf32>
      %c1_i32_51 = arith.constant 1 : i32
      %51 = arith.addi %c1_i32_51, %arg5 : i32
      %c0_52 = arith.constant 0 : index
      %c0_53 = arith.constant 0 : index
      %52 = arith.index_cast %51 : i32 to index
      %c0_54 = arith.constant 0 : index
      %c0_55 = arith.constant 0 : index
      %53 = vector.load %arg1[%c0_52, %c0_53, %52, %c0_54, %c0_55] : memref<1x4x5x5x128xbf16, #tpu.memory_space<vmem>>, vector<1x1x1x4x128xbf16>
      %54 = vector.shape_cast %53 : vector<1x1x1x4x128xbf16> to vector<4x128xbf16>
      %c6 = arith.constant 6 : index
      %c0_56 = arith.constant 0 : index
      %c0_57 = arith.constant 0 : index
      %55 = vector.load %arg2[%c6, %c0_56, %c0_57] : memref<9x128x128xbf16, #tpu.memory_space<vmem>>, vector<1x128x128xbf16>
      %56 = vector.shape_cast %55 : vector<1x128x128xbf16> to vector<128x128xbf16>
      %cst_58 = arith.constant dense<0.000000e+00> : vector<4x128xf32>
      %57 = tpu.matmul %54, %56, %cst_58 {dimension_numbers = #tpu.dot_dimension_numbers<[1], [0], [0], [1], [0, 0, 1, 1], [], []>} : vector<4x128xbf16>, vector<128x128xbf16>, vector<4x128xf32> -> vector<4x128xf32>
      %58 = arith.addf %50, %57 : vector<4x128xf32>
      %c1_i32_59 = arith.constant 1 : i32
      %59 = arith.addi %c1_i32_59, %arg5 : i32
      %c0_60 = arith.constant 0 : index
      %c1_61 = arith.constant 1 : index
      %60 = arith.index_cast %59 : i32 to index
      %c0_62 = arith.constant 0 : index
      %c0_63 = arith.constant 0 : index
      %61 = vector.load %arg1[%c0_60, %c1_61, %60, %c0_62, %c0_63] : memref<1x4x5x5x128xbf16, #tpu.memory_space<vmem>>, vector<1x1x1x4x128xbf16>
      %62 = vector.shape_cast %61 : vector<1x1x1x4x128xbf16> to vector<4x128xbf16>
      %c7 = arith.constant 7 : index
      %c0_64 = arith.constant 0 : index
      %c0_65 = arith.constant 0 : index
      %63 = vector.load %arg2[%c7, %c0_64, %c0_65] : memref<9x128x128xbf16, #tpu.memory_space<vmem>>, vector<1x128x128xbf16>
      %64 = vector.shape_cast %63 : vector<1x128x128xbf16> to vector<128x128xbf16>
      %cst_66 = arith.constant dense<0.000000e+00> : vector<4x128xf32>
      %65 = tpu.matmul %62, %64, %cst_66 {dimension_numbers = #tpu.dot_dimension_numbers<[1], [0], [0], [1], [0, 0, 1, 1], [], []>} : vector<4x128xbf16>, vector<128x128xbf16>, vector<4x128xf32> -> vector<4x128xf32>
      %66 = arith.addf %58, %65 : vector<4x128xf32>
      %c1_i32_67 = arith.constant 1 : i32
      %67 = arith.addi %c1_i32_67, %arg5 : i32
      %c0_68 = arith.constant 0 : index
      %c0_69 = arith.constant 0 : index
      %68 = arith.index_cast %67 : i32 to index
      %c1_70 = arith.constant 1 : index
      %c0_71 = arith.constant 0 : index
      %69 = vector.load %arg1[%c0_68, %c0_69, %68, %c1_70, %c0_71] : memref<1x4x5x5x128xbf16, #tpu.memory_space<vmem>>, vector<1x1x1x4x128xbf16>
      %70 = vector.shape_cast %69 : vector<1x1x1x4x128xbf16> to vector<4x128xbf16>
      %c8 = arith.constant 8 : index
      %c0_72 = arith.constant 0 : index
      %c0_73 = arith.constant 0 : index
      %71 = vector.load %arg2[%c8, %c0_72, %c0_73] : memref<9x128x128xbf16, #tpu.memory_space<vmem>>, vector<1x128x128xbf16>
      %72 = vector.shape_cast %71 : vector<1x128x128xbf16> to vector<128x128xbf16>
      %cst_74 = arith.constant dense<0.000000e+00> : vector<4x128xf32>
      %73 = tpu.matmul %70, %72, %cst_74 {dimension_numbers = #tpu.dot_dimension_numbers<[1], [0], [0], [1], [0, 0, 1, 1], [], []>} : vector<4x128xbf16>, vector<128x128xbf16>, vector<4x128xf32> -> vector<4x128xf32>
      %74 = arith.addf %66, %73 : vector<4x128xf32>
      %75 = vector.broadcast %0 : vector<1x128xf32> to vector<4x128xf32>
      %76 = arith.addf %74, %75 : vector<4x128xf32>
      %cst_75 = arith.constant 0.000000e+00 : f32
      %77 = vector.broadcast %cst_75 : f32 to vector<4x128xf32>
      %78 = arith.maximumf %76, %77 : vector<4x128xf32>
      %79 = arith.truncf %78 : vector<4x128xf32> to vector<4x128xbf16>
      %c0_76 = arith.constant 0 : index
      %80 = arith.index_cast %arg5 : i32 to index
      %c0_77 = arith.constant 0 : index
      %c0_78 = arith.constant 0 : index
      %81 = vector.load %arg4[%c0_76, %80, %c0_77, %c0_78] : memref<1x4x4x128xbf16, #tpu.memory_space<vmem>>, vector<1x1x4x128xbf16>
      %82 = vector.shape_cast %81 : vector<1x1x4x128xbf16> to vector<4x128xbf16>
      %83 = vector.shape_cast %79 : vector<4x128xbf16> to vector<1x1x4x128xbf16>
      tpu.vector_store %arg4[%c0_76, %80, %c0_77, %c0_78], %83 {strides = array<i32>} : memref<1x4x4x128xbf16, #tpu.memory_space<vmem>>, vector<1x1x4x128xbf16>,
    }
    %c4_i32_1 = arith.constant 4 : i32
    return
  }
  func.func @transform_0(%arg0: i32) -> (i32, i32, i32, i32, i32) {
    %c0_i32 = arith.constant 0 : i32
    %c0_i32_0 = arith.constant 0 : i32
    %c0_i32_1 = arith.constant 0 : i32
    %c0_i32_2 = arith.constant 0 : i32
    %c0_i32_3 = arith.constant 0 : i32
    return %arg0, %c0_i32, %c0_i32_0, %c0_i32_1, %c0_i32_2 : i32, i32, i32, i32, i32
  }
  func.func @transform_1(%arg0: i32) -> (i32, i32, i32) {
    %c0_i32 = arith.constant 0 : i32
    %c0_i32_0 = arith.constant 0 : i32
    %c0_i32_1 = arith.constant 0 : i32
    %c0_i32_2 = arith.constant 0 : i32
    return %c0_i32, %c0_i32_0, %c0_i32_1 : i32, i32, i32
  }
  func.func @transform_2(%arg0: i32) -> (i32, i32) {
    %c0_i32 = arith.constant 0 : i32
    %c0_i32_0 = arith.constant 0 : i32
    %c0_i32_1 = arith.constant 0 : i32
    return %c0_i32, %c0_i32_0 : i32, i32
  }
  func.func @transform_3(%arg0: i32) -> (i32, i32, i32, i32) {
    %c0_i32 = arith.constant 0 : i32
    %c0_i32_0 = arith.constant 0 : i32
    %c0_i32_1 = arith.constant 0 : i32
    %c0_i32_2 = arith.constant 0 : i32
    return %arg0, %c0_i32, %c0_i32_0, %c0_i32_1 : i32, i32, i32, i32
  }
}

module attributes {stable_mosaic.version = 11 : i64} {
  func.func @_delta_head_kernel(%arg0: i32, %arg1: memref<1x256x128xbf16, #tpu.memory_space<vmem>>, %arg2: memref<1x64x128xbf16, #tpu.memory_space<vmem>>, %arg3: memref<1x16x128xbf16, #tpu.memory_space<vmem>>, %arg4: memref<128x128xbf16, #tpu.memory_space<vmem>>, %arg5: memref<1x128xf32, #tpu.memory_space<vmem>>, %arg6: memref<128x128xbf16, #tpu.memory_space<vmem>>, %arg7: memref<1x128xf32, #tpu.memory_space<vmem>>, %arg8: memref<128x128xbf16, #tpu.memory_space<vmem>>, %arg9: memref<1x128xf32, #tpu.memory_space<vmem>>, %arg10: memref<384x128xf32, #tpu.memory_space<vmem>>, %arg11: memref<1x128xf32, #tpu.memory_space<vmem>>, %arg12: memref<128x128xf32, #tpu.memory_space<vmem>>, %arg13: memref<1x128xf32, #tpu.memory_space<vmem>>, %arg14: memref<1x1x128xf32, #tpu.memory_space<vmem>>) attributes {dimension_semantics = [#tpu.dimension_semantics<parallel>], iteration_bounds = array<i64: 2>, scalar_prefetch = 0 : i64, scratch_operands = 0 : i64, tpu.core_type = #tpu.core_type<tc>, window_params = [{transform_indices = @transform_0, window_bounds = array<i64: 1, 256, 128>}, {transform_indices = @transform_1, window_bounds = array<i64: 1, 64, 128>}, {transform_indices = @transform_2, window_bounds = array<i64: 1, 16, 128>}, {pipeline_mode = #tpu.pipeline_mode<synchronous>, transform_indices = @transform_3, window_bounds = array<i64: 128, 128>}, {pipeline_mode = #tpu.pipeline_mode<synchronous>, transform_indices = @transform_4, window_bounds = array<i64: 1, 128>}, {pipeline_mode = #tpu.pipeline_mode<synchronous>, transform_indices = @transform_5, window_bounds = array<i64: 128, 128>}, {pipeline_mode = #tpu.pipeline_mode<synchronous>, transform_indices = @transform_6, window_bounds = array<i64: 1, 128>}, {pipeline_mode = #tpu.pipeline_mode<synchronous>, transform_indices = @transform_7, window_bounds = array<i64: 128, 128>}, {pipeline_mode = #tpu.pipeline_mode<synchronous>, transform_indices = @transform_8, window_bounds = array<i64: 1, 128>}, {pipeline_mode = #tpu.pipeline_mode<synchronous>, transform_indices = @transform_9, window_bounds = array<i64: 384, 128>}, {pipeline_mode = #tpu.pipeline_mode<synchronous>, transform_indices = @transform_10, window_bounds = array<i64: 1, 128>}, {pipeline_mode = #tpu.pipeline_mode<synchronous>, transform_indices = @transform_11, window_bounds = array<i64: 128, 128>}, {pipeline_mode = #tpu.pipeline_mode<synchronous>, transform_indices = @transform_12, window_bounds = array<i64: 1, 128>}, {transform_indices = @transform_13, window_bounds = array<i64: 1, 1, 128>}]} {
    %c0 = arith.constant 0 : index
    %c0_0 = arith.constant 0 : index
    %0 = vector.load %arg11[%c0, %c0_0] : memref<1x128xf32, #tpu.memory_space<vmem>>, vector<1x128xf32>
    %c0_1 = arith.constant 0 : index
    %c0_2 = arith.constant 0 : index
    %c0_3 = arith.constant 0 : index
    %1 = vector.load %arg1[%c0_1, %c0_2, %c0_3] : memref<1x256x128xbf16, #tpu.memory_space<vmem>>, vector<1x256x128xbf16>
    %2 = vector.shape_cast %1 : vector<1x256x128xbf16> to vector<256x128xbf16>
    %c0_4 = arith.constant 0 : index
    %c0_5 = arith.constant 0 : index
    %3 = vector.load %arg4[%c0_4, %c0_5] : memref<128x128xbf16, #tpu.memory_space<vmem>>, vector<128x128xbf16>
    %cst = arith.constant dense<0.000000e+00> : vector<256x128xf32>
    %4 = tpu.matmul %2, %3, %cst {dimension_numbers = #tpu.dot_dimension_numbers<[1], [0], [0], [1], [0, 0, 1, 1], [], []>} : vector<256x128xbf16>, vector<128x128xbf16>, vector<256x128xf32> -> vector<256x128xf32>
    %c0_6 = arith.constant 0 : index
    %c0_7 = arith.constant 0 : index
    %5 = vector.load %arg5[%c0_6, %c0_7] : memref<1x128xf32, #tpu.memory_space<vmem>>, vector<1x128xf32>
    %6 = vector.broadcast %5 : vector<1x128xf32> to vector<256x128xf32>
    %7 = arith.addf %4, %6 : vector<256x128xf32>
    %cst_8 = arith.constant 0.000000e+00 : f32
    %8 = vector.broadcast %cst_8 : f32 to vector<256x128xf32>
    %9 = arith.maximumf %7, %8 : vector<256x128xf32>
    %cst_9 = arith.constant dense<0.000000e+00> : vector<128xf32>
    %10 = vector.multi_reduction <add>, %9, %cst_9 [0] : vector<256x128xf32> to vector<128xf32>
    %11 = vector.shape_cast %10 : vector<128xf32> to vector<1x128xf32>
    %cst_10 = arith.constant 3.906250e-03 : f32
    %12 = vector.broadcast %cst_10 : f32 to vector<1x128xf32>
    %13 = arith.mulf %11, %12 : vector<1x128xf32>
    %c0_11 = arith.constant 0 : index
    %c0_12 = arith.constant 0 : index
    %14 = vector.load %arg10[%c0_11, %c0_12] : memref<384x128xf32, #tpu.memory_space<vmem>>, vector<128x128xf32>
    %cst_13 = arith.constant dense<0.000000e+00> : vector<1x128xf32>
    %15 = tpu.matmul %13, %14, %cst_13 {dimension_numbers = #tpu.dot_dimension_numbers<[1], [0], [0], [1], [0, 0, 1, 1], [], []>} : vector<1x128xf32>, vector<128x128xf32>, vector<1x128xf32> -> vector<1x128xf32>
    %16 = arith.addf %0, %15 : vector<1x128xf32>
    %c0_14 = arith.constant 0 : index
    %c0_15 = arith.constant 0 : index
    %c0_16 = arith.constant 0 : index
    %17 = vector.load %arg2[%c0_14, %c0_15, %c0_16] : memref<1x64x128xbf16, #tpu.memory_space<vmem>>, vector<1x64x128xbf16>
    %18 = vector.shape_cast %17 : vector<1x64x128xbf16> to vector<64x128xbf16>
    %c0_17 = arith.constant 0 : index
    %c0_18 = arith.constant 0 : index
    %19 = vector.load %arg6[%c0_17, %c0_18] : memref<128x128xbf16, #tpu.memory_space<vmem>>, vector<128x128xbf16>
    %cst_19 = arith.constant dense<0.000000e+00> : vector<64x128xf32>
    %20 = tpu.matmul %18, %19, %cst_19 {dimension_numbers = #tpu.dot_dimension_numbers<[1], [0], [0], [1], [0, 0, 1, 1], [], []>} : vector<64x128xbf16>, vector<128x128xbf16>, vector<64x128xf32> -> vector<64x128xf32>
    %c0_20 = arith.constant 0 : index
    %c0_21 = arith.constant 0 : index
    %21 = vector.load %arg7[%c0_20, %c0_21] : memref<1x128xf32, #tpu.memory_space<vmem>>, vector<1x128xf32>
    %22 = vector.broadcast %21 : vector<1x128xf32> to vector<64x128xf32>
    %23 = arith.addf %20, %22 : vector<64x128xf32>
    %cst_22 = arith.constant 0.000000e+00 : f32
    %24 = vector.broadcast %cst_22 : f32 to vector<64x128xf32>
    %25 = arith.maximumf %23, %24 : vector<64x128xf32>
    %cst_23 = arith.constant dense<0.000000e+00> : vector<128xf32>
    %26 = vector.multi_reduction <add>, %25, %cst_23 [0] : vector<64x128xf32> to vector<128xf32>
    %27 = vector.shape_cast %26 : vector<128xf32> to vector<1x128xf32>
    %cst_24 = arith.constant 1.562500e-02 : f32
    %28 = vector.broadcast %cst_24 : f32 to vector<1x128xf32>
    %29 = arith.mulf %27, %28 : vector<1x128xf32>
    %c128 = arith.constant 128 : index
    %c0_25 = arith.constant 0 : index
    %30 = vector.load %arg10[%c128, %c0_25] : memref<384x128xf32, #tpu.memory_space<vmem>>, vector<128x128xf32>
    %cst_26 = arith.constant dense<0.000000e+00> : vector<1x128xf32>
    %31 = tpu.matmul %29, %30, %cst_26 {dimension_numbers = #tpu.dot_dimension_numbers<[1], [0], [0], [1], [0, 0, 1, 1], [], []>} : vector<1x128xf32>, vector<128x128xf32>, vector<1x128xf32> -> vector<1x128xf32>
    %32 = arith.addf %16, %31 : vector<1x128xf32>
    %c0_27 = arith.constant 0 : index
    %c0_28 = arith.constant 0 : index
    %c0_29 = arith.constant 0 : index
    %33 = vector.load %arg3[%c0_27, %c0_28, %c0_29] : memref<1x16x128xbf16, #tpu.memory_space<vmem>>, vector<1x16x128xbf16>
    %34 = vector.shape_cast %33 : vector<1x16x128xbf16> to vector<16x128xbf16>
    %c0_30 = arith.constant 0 : index
    %c0_31 = arith.constant 0 : index
    %35 = vector.load %arg8[%c0_30, %c0_31] : memref<128x128xbf16, #tpu.memory_space<vmem>>, vector<128x128xbf16>
    %cst_32 = arith.constant dense<0.000000e+00> : vector<16x128xf32>
    %36 = tpu.matmul %34, %35, %cst_32 {dimension_numbers = #tpu.dot_dimension_numbers<[1], [0], [0], [1], [0, 0, 1, 1], [], []>} : vector<16x128xbf16>, vector<128x128xbf16>, vector<16x128xf32> -> vector<16x128xf32>
    %c0_33 = arith.constant 0 : index
    %c0_34 = arith.constant 0 : index
    %37 = vector.load %arg9[%c0_33, %c0_34] : memref<1x128xf32, #tpu.memory_space<vmem>>, vector<1x128xf32>
    %38 = vector.broadcast %37 : vector<1x128xf32> to vector<16x128xf32>
    %39 = arith.addf %36, %38 : vector<16x128xf32>
    %cst_35 = arith.constant 0.000000e+00 : f32
    %40 = vector.broadcast %cst_35 : f32 to vector<16x128xf32>
    %41 = arith.maximumf %39, %40 : vector<16x128xf32>
    %cst_36 = arith.constant dense<0.000000e+00> : vector<128xf32>
    %42 = vector.multi_reduction <add>, %41, %cst_36 [0] : vector<16x128xf32> to vector<128xf32>
    %43 = vector.shape_cast %42 : vector<128xf32> to vector<1x128xf32>
    %cst_37 = arith.constant 6.250000e-02 : f32
    %44 = vector.broadcast %cst_37 : f32 to vector<1x128xf32>
    %45 = arith.mulf %43, %44 : vector<1x128xf32>
    %c256 = arith.constant 256 : index
    %c0_38 = arith.constant 0 : index
    %46 = vector.load %arg10[%c256, %c0_38] : memref<384x128xf32, #tpu.memory_space<vmem>>, vector<128x128xf32>
    %cst_39 = arith.constant dense<0.000000e+00> : vector<1x128xf32>
    %47 = tpu.matmul %45, %46, %cst_39 {dimension_numbers = #tpu.dot_dimension_numbers<[1], [0], [0], [1], [0, 0, 1, 1], [], []>} : vector<1x128xf32>, vector<128x128xf32>, vector<1x128xf32> -> vector<1x128xf32>
    %48 = arith.addf %32, %47 : vector<1x128xf32>
    %cst_40 = arith.constant 0.000000e+00 : f32
    %49 = vector.broadcast %cst_40 : f32 to vector<1x128xf32>
    %50 = arith.maximumf %48, %49 : vector<1x128xf32>
    %c0_41 = arith.constant 0 : index
    %c0_42 = arith.constant 0 : index
    %51 = vector.load %arg12[%c0_41, %c0_42] : memref<128x128xf32, #tpu.memory_space<vmem>>, vector<128x128xf32>
    %cst_43 = arith.constant dense<0.000000e+00> : vector<1x128xf32>
    %52 = tpu.matmul %50, %51, %cst_43 {dimension_numbers = #tpu.dot_dimension_numbers<[1], [0], [0], [1], [0, 0, 1, 1], [], []>} : vector<1x128xf32>, vector<128x128xf32>, vector<1x128xf32> -> vector<1x128xf32>
    %c0_44 = arith.constant 0 : index
    %c0_45 = arith.constant 0 : index
    %53 = vector.load %arg13[%c0_44, %c0_45] : memref<1x128xf32, #tpu.memory_space<vmem>>, vector<1x128xf32>
    %54 = arith.addf %52, %53 : vector<1x128xf32>
    %c0_46 = arith.constant 0 : index
    %c0_47 = arith.constant 0 : index
    %c0_48 = arith.constant 0 : index
    %55 = vector.load %arg14[%c0_46, %c0_47, %c0_48] : memref<1x1x128xf32, #tpu.memory_space<vmem>>, vector<1x1x128xf32>
    %56 = vector.shape_cast %55 : vector<1x1x128xf32> to vector<1x128xf32>
    %57 = vector.shape_cast %54 : vector<1x128xf32> to vector<1x1x128xf32>
    tpu.vector_store %arg14[%c0_46, %c0_47, %c0_48], %57 {strides = array<i32>} : memref<1x1x128xf32, #tpu.memory_space<vmem>>, vector<1x1x128xf32>,
    return
  }
  func.func @transform_0(%arg0: i32) -> (i32, i32, i32) {
    %c0_i32 = arith.constant 0 : i32
    %c0_i32_0 = arith.constant 0 : i32
    %c0_i32_1 = arith.constant 0 : i32
    return %arg0, %c0_i32, %c0_i32_0 : i32, i32, i32
  }
  func.func @transform_1(%arg0: i32) -> (i32, i32, i32) {
    %c0_i32 = arith.constant 0 : i32
    %c0_i32_0 = arith.constant 0 : i32
    %c0_i32_1 = arith.constant 0 : i32
    return %arg0, %c0_i32, %c0_i32_0 : i32, i32, i32
  }
  func.func @transform_2(%arg0: i32) -> (i32, i32, i32) {
    %c0_i32 = arith.constant 0 : i32
    %c0_i32_0 = arith.constant 0 : i32
    %c0_i32_1 = arith.constant 0 : i32
    return %arg0, %c0_i32, %c0_i32_0 : i32, i32, i32
  }
  func.func @transform_3(%arg0: i32) -> (i32, i32) {
    %c0_i32 = arith.constant 0 : i32
    %c0_i32_0 = arith.constant 0 : i32
    %c0_i32_1 = arith.constant 0 : i32
    return %c0_i32, %c0_i32_0 : i32, i32
  }
  func.func @transform_4(%arg0: i32) -> (i32, i32) {
    %c0_i32 = arith.constant 0 : i32
    %c0_i32_0 = arith.constant 0 : i32
    %c0_i32_1 = arith.constant 0 : i32
    return %c0_i32, %c0_i32_0 : i32, i32
  }
  func.func @transform_5(%arg0: i32) -> (i32, i32) {
    %c0_i32 = arith.constant 0 : i32
    %c0_i32_0 = arith.constant 0 : i32
    %c0_i32_1 = arith.constant 0 : i32
    return %c0_i32, %c0_i32_0 : i32, i32
  }
  func.func @transform_6(%arg0: i32) -> (i32, i32) {
    %c0_i32 = arith.constant 0 : i32
    %c0_i32_0 = arith.constant 0 : i32
    %c0_i32_1 = arith.constant 0 : i32
    return %c0_i32, %c0_i32_0 : i32, i32
  }
  func.func @transform_7(%arg0: i32) -> (i32, i32) {
    %c0_i32 = arith.constant 0 : i32
    %c0_i32_0 = arith.constant 0 : i32
    %c0_i32_1 = arith.constant 0 : i32
    return %c0_i32, %c0_i32_0 : i32, i32
  }
  func.func @transform_8(%arg0: i32) -> (i32, i32) {
    %c0_i32 = arith.constant 0 : i32
    %c0_i32_0 = arith.constant 0 : i32
    %c0_i32_1 = arith.constant 0 : i32
    return %c0_i32, %c0_i32_0 : i32, i32
  }
  func.func @transform_9(%arg0: i32) -> (i32, i32) {
    %c0_i32 = arith.constant 0 : i32
    %c0_i32_0 = arith.constant 0 : i32
    %c0_i32_1 = arith.constant 0 : i32
    return %c0_i32, %c0_i32_0 : i32, i32
  }
  func.func @transform_10(%arg0: i32) -> (i32, i32) {
    %c0_i32 = arith.constant 0 : i32
    %c0_i32_0 = arith.constant 0 : i32
    %c0_i32_1 = arith.constant 0 : i32
    return %c0_i32, %c0_i32_0 : i32, i32
  }
  func.func @transform_11(%arg0: i32) -> (i32, i32) {
    %c0_i32 = arith.constant 0 : i32
    %c0_i32_0 = arith.constant 0 : i32
    %c0_i32_1 = arith.constant 0 : i32
    return %c0_i32, %c0_i32_0 : i32, i32
  }
  func.func @transform_12(%arg0: i32) -> (i32, i32) {
    %c0_i32 = arith.constant 0 : i32
    %c0_i32_0 = arith.constant 0 : i32
    %c0_i32_1 = arith.constant 0 : i32
    return %c0_i32, %c0_i32_0 : i32, i32
  }
  func.func @transform_13(%arg0: i32) -> (i32, i32, i32) {
    %c0_i32 = arith.constant 0 : i32
    %c0_i32_0 = arith.constant 0 : i32
    %c0_i32_1 = arith.constant 0 : i32
    return %arg0, %c0_i32, %c0_i32_0 : i32, i32, i32
  }
}

</mosaic_0001>

<bundles_post_ra>
// kernel: snow_forward.4
= control target key start
LH: loop header
LB: loop body
LE: loop exit
PB: predicated region body
PF: predicated region fallthrough
CT: control target
= control target key end

     0   :  { %s1050_s12 = smov 0   ;;  %s1184_s0 = inlined_call_operand.vmem [shape: bf16[2,1,18,18,4], index: 0, kind: input, shape index: {}]   ;;  %s1185_s1 = inlined_call_operand.vmem [shape: bf16[9,4,128], index: 1, kind: input, shape index: {}]   ;;  %s1186_s2 = inlined_call_operand.vmem [shape: f32[1,128], index: 2, kind: input, shape index: {}]   ;;  %s1187_s3 = inlined_call_operand.vmem [shape: bf16[2,16,16,128], index: 3, kind: output, shape index: {}]  }
   0x1 LB: > { %s844_s13 = sadd.s32 4294967295, %s1022_s12   ;;  %p848_p0 = scmp.ge.s32.totalorder %s1022_s12, 1  ;;  %s1022_s12 = sphi %s1050_s12, %s13_s12  }
   0x2   : > { %p137_p1 = scmp.lt.s32.totalorder %s1022_s12, 3 }
   0x4   : > { %p138_p2 = pnand %p848_p0, %p137_p1 }
   0x5   : > { %p161_p3 = scmp.lt.s32.totalorder (!%p138_p2), %s844_s13, 1  ;;  %v1061_v0 = vld [vmem:[%s1186_s2] ss:$0 sm:$0xff] (!%p138_p2)  ;;  %s1073_s24 = smov (!%p138_p2), 0  }
   0x6   : > { %141 = sbr.rel (%p138_p2) target bundleno = 286 (0x11e), region = 32 }
   0xd   : > { %s1189_s13 = smov (!%p161_p3, %s844_s13), 1 }
   0xe   : > { %s982_s16 = smul.u32 216, %s1189_s13  ;;  %s900_s17 = sshll.u32 %s1189_s13, 7 }
   0xf   : > { %s1066_s20 = scalar_lea.vmem %s1187_s3, %s900_s17 }
  0x10   : > { %s1071_s23 = scalar_lea.vmem %s1184_s0, %s982_s16 }
  0x11 LB: >> { %v853_v1 = vld [vmem:[%s1185_s1 + $0x2] sm:$0x3]  ;;  %vm213_vm0 = vcmask 1041408   ;;  %v184_v2 = vld [vmem:[%s1185_s1] sm:$0x3]  ;;  %v1028_v3 = vmov 0.0   ;;  %s1026_s24 = sphi %s1073_s24, %s178_s24  }
  0x12   : >> { %928 = vmatprep.subr.bf16.mxu0 %v1028_v3  ;;  %v215_v4 = vsel %vm213_vm0, %v853_v1, 0  ;;  %934 = vmatprep.subr.bf16.mxu1 %v1028_v3  ;;  %v261_v5 = vsel %vm213_vm0, %v184_v2, 0  ;;  %s901_s29 = smul.u32 12, %s1026_s24  ;;  %vm1029_vm1 = vmmov 0   ;;  %v863_v6 = vld [vmem:[%s1185_s1 + $0x6] sm:$0x3] }
  0x13   : >> { %929 = vmatpush3.bf16.msra.mxu0 %v215_v4  ;;  %935 = vmatpush3.bf16.msra.mxu1 %v261_v5  ;;  %vm209_vm2 = vcmask 31744   ;;  %v380_v11 = vsel %vm213_vm0, %v863_v6, 0  ;;  %v858_v20 = vld [vmem:[%s1185_s1 + $0x4] sm:$0x3]  ;;  %vm196_vm3 = vsmask.f32 7424 }
  0x14   : >> { %930 = vmatprep.mubr.msk.bf16.mxu0 %vm1029_vm1, %v1028_v3  ;;  %936 = vmatprep.mubr.msk.bf16.mxu1 %vm1029_vm1, %v1028_v3  ;;  %s1098_s5 = scalar_lea.vmem %s1071_s23, %s901_s29  ;;  %v874_v24 = vld [vmem:[%s1185_s1 + $0xa] sm:$0x3]  ;;  %v318_v26 = vsel %vm213_vm0, %v858_v20, 0  ;;  %vm310_vm4 = vcmask 1046528   ;;  %v869_v38 = vld [vmem:[%s1185_s1 + $0x8] sm:$0x3] }
  0x15   : >> { %940 = vmatprep.subr.bf16.mxu0 %v1028_v3  ;;  %946 = vmatprep.subr.bf16.mxu1 %v1028_v3  ;;  %v182_v7 = vld [vmem:[%s1098_s5] sm:$0xf]  ;;  %v183_v8 = vld [vmem:[%s1098_s5 + $0x4] sm:$0xf]  ;;  %v866_v16 = vld [vmem:[%s1098_s5 + $0xc] sm:$0xf] }
  0x16   : >> { %v854_v9 = vcombine.low %v182_v7, %v183_v8  ;;  %v1002_v10 = vld [vmem:[%s1098_s5 + $0x8] ss:$0 sps:$4 sm:$0x11]   ;;  %v304_v15 = vld [vmem:[%s1098_s5] sm:$0xe]  ;;  %v1004_v27 = vld [vmem:[%s1098_s5 + $0xc] sm:$0xff]  }
  0x17   : >> { %v205_v14 = vshll.u32 %v1002_v10, 16  ;;  %v867_v17 = vld [vmem:[%s1098_s5 + $0x10] sm:$0xf]  ;;  %v873_v21 = vld [vmem:[%s1098_s5 + $0xc] sm:$0xe]  ;;  %v859_v23 = vcombine.low %v304_v15, %v183_v8  ;;  %v512_v32 = vsel %vm213_vm0, %v874_v24, 0 }
  0x18   : >> { %v198_v12 = vshrl.u32 %v854_v9, 16  ;;  %v200_v13 = vshll.u32 %v854_v9, 16  ;;  %937 = vmatmul.mubr.msk.bf16.vlgmr.msra.gmra.mrb[0].mxu1 %vm209_vm2, %v854_v9  ;;  %v870_v25 = vcombine.low %v866_v16, %v867_v17  ;;  %v882_v28 = vld [vmem:[%s1098_s5 + $0x18] sm:$0xf]  ;;  %v875_v30 = vcombine.low %v873_v21, %v867_v17  ;;  %v883_v31 = vld [vmem:[%s1098_s5 + $0x1c] sm:$0xf] }
  0x19   : >> { %947 = vmatpush3.bf16.msra.mxu1 %v380_v11  ;;  %948 = vmatprep.mubr.msk.bf16.mxu1 %vm1029_vm1, %v1028_v3  ;;  %v207_v19 = vrot.slane %v205_v14, 1  ;;  %v886_v33 = vcombine.low %v882_v28, %v883_v31  ;;  %v311_v34 = vrot.slane %v859_v23, 1  ;;  %v312_v35 = vrot.slane %v1002_v10, 1  ;;  %v1006_v36 = vld [vmem:[%s1098_s5 + $0x14] ss:$0 sps:$4 sm:$0x11]  }
  0x1a   : >> { %v202_v18 = vrot.slane %v200_v13, 1  ;;  %958 = vmatprep.subr.bf16.mxu1 %v1028_v3  ;;  %v441_v37 = vshll.u32 %v870_v25, 16  ;;  %v505_v39 = vrot.slane %v875_v30, 1  ;;  %v506_v40 = vrot.slane %v1006_v36, 1  ;;  %v885_v47 = vld [vmem:[%s1185_s1 + $0xe] sm:$0x3] }
  0x1b   : >> { %v1010_v41 = vld [vmem:[%s1098_s5 + $0x20] ss:$0 sps:$4 sm:$0x11]   ;;  %v635_v42 = vshll.u32 %v886_v33, 16  ;;  %v313_v43 = vsel %vm310_vm4, %v311_v34, %v312_v35  ;;  %v439_v44 = vshrl.u32 %v870_v25, 16  ;;  %v446_v46 = vshll.u32 %v1006_v36, 16 }
  0x1c   : >> { %v203_v22 = vor.u32 %v202_v18, %v198_v12  ;;  %v443_v45 = vrot.slane %v441_v37, 1  ;;  %v454_v48 = vsel %vm213_vm0, %v869_v38, 0  ;;  %v507_v49 = vsel %vm310_vm4, %v505_v39, %v506_v40  ;;  %v879_v56 = vld [vmem:[%s1185_s1 + $0xc] sm:$0x3]  ;;  %v889_v62 = vld [vmem:[%s1098_s5 + $0x18] sm:$0xe] }
  0x1d   : >> { %v633_v50 = vshrl.u32 %v886_v33, 16  ;;  %v637_v51 = vrot.slane %v635_v42, 1  ;;  %v640_v52 = vshll.u32 %v1010_v41, 16  ;;  %v648_v53 = vsel %vm213_vm0, %v885_v47, 0  ;;  %v890_v63 = vld [vmem:[%s1185_s1 + $0x10] sm:$0x3] }
  0x1e   : >> { %v208_v29 = vsel %vm196_vm3, %v203_v22, %v207_v19  ;;  %v444_v54 = vor.u32 %v443_v45, %v439_v44  ;;  %v448_v55 = vrot.slane %v446_v46, 1  ;;  %v574_v60 = vsel %vm213_vm0, %v879_v56, 0  ;;  %v1008_v1 = vld [vmem:[%s1098_s5 + $0x18] sm:$0xff]   ;;  %s904_s19 = sshll.u32 %s1026_s24, 3  ;;  %s178_s24 = sadd.s32 1, %s1026_s24  }
  0x1f   : >> { %931 = vmatmul.mubr.msk.bf16.vlgmr.msra.gmra.mrb[0].mxu0 %vm209_vm2, %v208_v29  ;;  %v638_v57 = vor.u32 %v637_v51, %v633_v50  ;;  %v642_v58 = vrot.slane %v640_v52, 1  ;;  %v891_v2 = vcombine.low %v889_v62, %v883_v31  ;;  %v706_v4 = vsel %vm213_vm0, %v890_v63, 0  ;;  %s771_s21 = scalar_lea.vmem %s1066_s20, %s904_s19  ;;  %p175_p4 = scmp.ge.s32.totalorder %s178_s24, 16  }
  0x20   : >> { %941 = vmatpush3.bf16.msra.mxu0 %v318_v26  ;;  %942 = vmatprep.mubr.msk.bf16.mxu0 %vm1029_vm1, %v1028_v3  ;;  %v449_v59 = vsel %vm196_vm3, %v444_v54, %v448_v55  ;;  %v700_v6 = vrot.slane %v1010_v41, 1 }
  0x21   : >> { %952 = vmatprep.subr.bf16.mxu0 %v1028_v3  ;;  %949 = vmatmul.mubr.msk.bf16.vlgmr.msra.gmra.mrb[4].mxu1 %vm209_vm2, %v1004_v27  ;;  %v643_v61 = vsel %vm196_vm3, %v638_v57, %v642_v58  ;;  %v699_v5 = vrot.slane %v891_v2, 1 }
  0x22   : >> { %959 = vmatpush3.bf16.msra.mxu1 %v512_v32  ;;  %960 = vmatprep.mubr.msk.bf16.mxu1 %vm1029_vm1, %v1028_v3 }
  0x23   : >> { %970 = vmatprep.subr.bf16.mxu1 %v1028_v3  ;;  %v701_v7 = vsel %vm310_vm4, %v699_v5, %v700_v6 }
  0x27   : >> { %943 = vmatmul.mubr.msk.bf16.vlgmr.msra.gmra.mrb[4].mxu0 %vm209_vm2, %v313_v43 }
  0x28   : >> { %953 = vmatpush3.bf16.msra.mxu0 %v454_v48  ;;  %954 = vmatprep.mubr.msk.bf16.mxu0 %vm1029_vm1, %v1028_v3 }
  0x29   : >> { %964 = vmatprep.subr.bf16.mxu0 %v1028_v3  ;;  %961 = vmatmul.mubr.msk.bf16.vlgmr.msra.gmra.mrb[8].mxu1 %vm209_vm2, %v507_v49 }
  0x2a   : >> { %971 = vmatpush3.bf16.msra.mxu1 %v648_v53  ;;  %972 = vmatprep.mubr.msk.bf16.mxu1 %vm1029_vm1, %v1028_v3 }
  0x2f   : >> { %955 = vmatmul.mubr.msk.bf16.vlgmr.msra.gmra.mrb[8].mxu0 %vm209_vm2, %v449_v59 }
  0x30   : >> { %965 = vmatpush3.bf16.msra.mxu0 %v574_v60  ;;  %966 = vmatprep.mubr.msk.bf16.mxu0 %vm1029_vm1, %v1028_v3 }
  0x31   : >> { %976 = vmatprep.subr.bf16.mxu0 %v1028_v3  ;;  %973 = vmatmul.mubr.msk.bf16.vlgmr.msra.gmra.mrb[12].mxu1 %vm209_vm2, %v643_v61 }
  0x37   : >> { %967 = vmatmul.mubr.msk.bf16.vlgmr.msra.gmra.mrb[12].mxu0 %vm209_vm2, %v1008_v1 }
  0x38   : >> { %977 = vmatpush3.bf16.msra.mxu0 %v706_v4  ;;  %978 = vmatprep.mubr.msk.bf16.mxu0 %vm1029_vm1, %v1028_v3 }
  0x3f   : >> { %979 = vmatmul.mubr.msk.bf16.vlgmr.msra.gmra.mrb[16].mxu0 %vm209_vm2, %v701_v7 }
  0xeb   : >> { %v297_v8 = vpop.f32.mrb[0].mxu1 }
  0xec   : >> { %v938_v9 = vpop.f32.mrb[1].mxu1 }
  0xed   : >> { %v300_v10 = vpop.f32.mrb[2].mxu1 }
  0xee   : >> { %v939_v11 = vpop.f32.mrb[3].mxu1 }
  0xf2   : >> { %v251_v12 = vpop.f32.mrb[0].mxu0 }
  0xf3   : >> { %v298_v13 = vadd.f32 %v297_v8, %v251_v12  ;;  %v932_v14 = vpop.f32.mrb[1].mxu0 }
  0xf4   : >> { %v254_v15 = vpop.f32.mrb[2].mxu0  ;;  %v416_v16 = vpop.f32.mrb[4].mxu1 }
  0xf5   : >> { %v301_v17 = vadd.f32 %v300_v10, %v254_v15  ;;  %v933_v18 = vpop.f32.mrb[3].mxu0  ;;  %v950_v19 = vpop.f32.mrb[5].mxu1 }
  0xf6   : >> { %v419_v20 = vpop.f32.mrb[6].mxu1 }
  0xf7   : >> { %v951_v3 = vpop.f32.mrb[7].mxu1 }
  0xfa   : >> { %v354_v21 = vpop.f32.mrb[4].mxu0 }
  0xfb   : >> { %v361_v22 = vadd.f32 %v354_v21, %v298_v13  ;;  %v944_v23 = vpop.f32.mrb[5].mxu0 }
  0xfc   : >> { %v357_v24 = vpop.f32.mrb[6].mxu0  ;;  %v548_v25 = vpop.f32.mrb[8].mxu1 }
  0xfd   : >> { %v362_v26 = vadd.f32 %v357_v24, %v301_v17  ;;  %v423_v27 = vadd.f32 %v416_v16, %v361_v22  ;;  %v945_v28 = vpop.f32.mrb[7].mxu0  ;;  %v962_v29 = vpop.f32.mrb[9].mxu1 }
  0xfe   : >> { %v551_v30 = vpop.f32.mrb[10].mxu1 }
  0xff   : >> { %v424_v31 = vadd.f32 %v419_v20, %v362_v26  ;;  %v963_v32 = vpop.f32.mrb[11].mxu1 }
 0x102   : >> { %v490_v33 = vpop.f32.mrb[8].mxu0 }
 0x103   : >> { %v497_v34 = vadd.f32 %v490_v33, %v423_v27  ;;  %v956_v35 = vpop.f32.mrb[9].mxu0 }
 0x104   : >> { %v493_v36 = vpop.f32.mrb[10].mxu0  ;;  %v684_v37 = vpop.f32.mrb[12].mxu1 }
 0x105   : >> { %v498_v38 = vadd.f32 %v493_v36, %v424_v31  ;;  %v555_v39 = vadd.f32 %v548_v25, %v497_v34  ;;  %v957_v40 = vpop.f32.mrb[11].mxu0  ;;  %v974_v41 = vpop.f32.mrb[13].mxu1 }
 0x106   : >> { %v687_v42 = vpop.f32.mrb[14].mxu1 }
 0x107   : >> { %v556_v43 = vadd.f32 %v551_v30, %v498_v38  ;;  %v975_v44 = vpop.f32.mrb[15].mxu1 }
 0x10a   : >> { %v610_v45 = vpop.f32.mrb[12].mxu0 }
 0x10b   : >> { %v617_v46 = vadd.f32 %v610_v45, %v555_v39  ;;  %v968_v47 = vpop.f32.mrb[13].mxu0 }
 0x10c   : >> { %v613_v48 = vpop.f32.mrb[14].mxu0 }
 0x10d   : >> { %v618_v49 = vadd.f32 %v613_v48, %v556_v43  ;;  %v691_v50 = vadd.f32 %v684_v37, %v617_v46  ;;  %v969_v51 = vpop.f32.mrb[15].mxu0 }
 0x10f   : >> { %v692_v52 = vadd.f32 %v687_v42, %v618_v49 }
 0x112   : >> { %v742_v53 = vpop.f32.mrb[16].mxu0 }
 0x113   : >> { %v749_v54 = vadd.f32 %v742_v53, %v691_v50  ;;  %v980_v55 = vpop.f32.mrb[17].mxu0 }
 0x114   : >> { %v745_v56 = vpop.f32.mrb[18].mxu0 }
 0x115   : >> { %v757_v57 = vadd.f32 %v1061_v0, %v749_v54  ;;  %v750_v58 = vadd.f32 %v745_v56, %v692_v52  ;;  %v981_v59 = vpop.f32.mrb[19].mxu0 }
 0x117   : >> { %v758_v60 = vadd.f32 %v1061_v0, %v750_v58  ;;  %v759_v61 = vmax.f32 %v757_v57, 0.0  ;;  %177 = sbr.rel (!%p175_p4) target bundleno = 17 (0x11), region = 81 }
 0x119   : >> { %v760_v62 = vmax.f32 %v758_v60, 0.0 }
 0x11b   : >> { %v908_v63 = vpack.c.bf16 %v760_v62, %v759_v61 }
 0x11d   : >> { %909 = vst [vmem:[%s771_s21] sm:$0xff] %v908_v63  }
 0x11e PF: > { %s13_s12 = sadd.s32 1, %s1022_s12  }
 0x11f   : > { %p10_p5 = scmp.ge.s32.totalorder %s13_s12, 4  }
 0x121   :  { %12 = sbr.rel (!%p10_p5) target bundleno = 1 (0x1), region = 92 }

// kernel: snow_forward.5
= control target key start
LH: loop header
LB: loop body
LE: loop exit
PB: predicated region body
PF: predicated region fallthrough
CT: control target
= control target key end

     0   :  { %s1929_s12 = smov 0   ;;  %s2285_s0 = inlined_call_operand.vmem [shape: bf16[2,4,9,9,128], index: 0, kind: input, shape index: {}]   ;;  %s2286_s1 = inlined_call_operand.vmem [shape: bf16[9,128,128], index: 1, kind: input, shape index: {}]   ;;  %s2287_s2 = inlined_call_operand.vmem [shape: f32[1,128], index: 2, kind: input, shape index: {}]   ;;  %s2288_s3 = inlined_call_operand.vmem [shape: bf16[2,8,8,128], index: 3, kind: output, shape index: {}]  }
   0x1 LB: > { %s1295_s13 = sadd.s32 4294967295, %s1901_s12   ;;  %p1299_p0 = scmp.ge.s32.totalorder %s1901_s12, 1  ;;  %s1901_s12 = sphi %s1929_s12, %s13_s12  }
   0x2   : > { %p137_p1 = scmp.lt.s32.totalorder %s1901_s12, 3 }
   0x4   : > { %p138_p2 = pnand %p1299_p0, %p137_p1 }
   0x5   : > { %p161_p3 = scmp.lt.s32.totalorder (!%p138_p2), %s1295_s13, 1  ;;  %v1940_v0 = vld [vmem:[%s2287_s2] ss:$0 sm:$0xff] (!%p138_p2)  ;;  %s1952_s24 = smov (!%p138_p2), 0  }
   0x6   : > { %141 = sbr.rel (%p138_p2) target bundleno = 399 (0x18f), region = 32 }
   0xd   : > { %s2290_s13 = smov (!%p161_p3, %s1295_s13), 1 }
   0xe   : > { %s1797_s16 = smul.u32 288, %s2290_s13  ;;  %s1530_s17 = sshll.u32 %s2290_s13, 5 }
   0xf   : > { %s1945_s20 = scalar_lea.vmem %s2288_s3, %s1530_s17 }
  0x10   : > { %s1950_s23 = scalar_lea.vmem %s2285_s0, %s1797_s16 }
  0x11 LB: >> { %v1816_v1 = vld [vmem:[%s2286_s1 + $0x40] sm:$0xff]   ;;  %v1907_v2 = vmov 0.0   ;;  %v1818_v4 = vld [vmem:[%s2286_s1 + $0x48] sm:$0xff]   ;;  %vm1908_vm0 = vmmov 0   ;;  %v1820_v6 = vld [vmem:[%s2286_s1 + $0x50] sm:$0xff]   ;;  %s1531_s28 = sshll.u32 %s1905_s24, 3  ;;  %s1905_s24 = sphi %s1952_s24, %s178_s24  }
  0x12   : >> { %1617 = vmatprep.subr.bf16.mxu0 %v1907_v2  ;;  %1637 = vmatprep.subr.bf16.mxu1 %v1907_v2  ;;  %v1817_v3 = vld [vmem:[%s2286_s1] sm:$0xff]   ;;  %v1819_v5 = vld [vmem:[%s2286_s1 + $0x8] sm:$0xff]   ;;  %v1821_v7 = vld [vmem:[%s2286_s1 + $0x10] sm:$0xff]   ;;  %s2019_s4 = scalar_lea.vmem %s1950_s23, %s1531_s28  ;;  %s1527_s10 = sshll.u32 %s1905_s24, 2 }
  0x13   : >> { %1618 = vmatpush3.bf16.msra.mxu0 %v1816_v1  ;;  %1633 = vmatprep.mubr.msk.bf16.mxu0 %vm1908_vm0, %v1907_v2  ;;  %v1822_v8 = vld [vmem:[%s2286_s1 + $0x58] sm:$0xff]   ;;  %v1824_v10 = vld [vmem:[%s2286_s1 + $0x60] sm:$0xff]   ;;  %v1826_v12 = vld [vmem:[%s2286_s1 + $0x68] sm:$0xff]   ;;  %s1210_s11 = scalar_lea.vmem %s1945_s20, %s1527_s10  ;;  %s178_s24 = sadd.s32 1, %s1905_s24  }
  0x14   : >> { %1638 = vmatpush3.bf16.msra.mxu1 %v1817_v3  ;;  %1619 = vmatprep.subr.bf16.mxu0 %v1907_v2  ;;  %v1823_v9 = vld [vmem:[%s2286_s1 + $0x18] sm:$0xff]   ;;  %v1825_v11 = vld [vmem:[%s2286_s1 + $0x20] sm:$0xff]   ;;  %v1827_v13 = vld [vmem:[%s2286_s1 + $0x28] sm:$0xff]   ;;  %p175_p4 = scmp.ge.s32.totalorder %s178_s24, 8  }
  0x15   : >> { %1639 = vmatprep.subr.bf16.mxu1 %v1907_v2  ;;  %1653 = vmatprep.mubr.msk.bf16.mxu1 %vm1908_vm0, %v1907_v2  ;;  %v1828_v14 = vld [vmem:[%s2286_s1 + $0x70] sm:$0xff]   ;;  %v1830_v16 = vld [vmem:[%s2286_s1 + $0x78] sm:$0xff]   ;;  %v1307_v18 = vld [vmem:[%s2019_s4 + $0x48] sm:$0xf] }
  0x16   : >> { %v1829_v15 = vld [vmem:[%s2286_s1 + $0x30] sm:$0xff]   ;;  %v1831_v17 = vld [vmem:[%s2286_s1 + $0x38] sm:$0xff]   ;;  %v182_v19 = vld [vmem:[%s2019_s4] sm:$0xf] }
  0x17   : >> { %1620 = vmatpush3.bf16.msra.mxu0 %v1818_v4  ;;  %v1832_v20 = vld [vmem:[%s2286_s1 + $0x80] sm:$0xff]   ;;  %v1834_v22 = vld [vmem:[%s2286_s1 + $0x88] sm:$0xff]   ;;  %v1836_v24 = vld [vmem:[%s2286_s1 + $0x90] sm:$0xff]  }
  0x18   : >> { %1640 = vmatpush3.bf16.msra.mxu1 %v1819_v5  ;;  %1621 = vmatprep.subr.bf16.mxu0 %v1907_v2  ;;  %v1833_v21 = vld [vmem:[%s2286_s1 + $0xc0] sm:$0xff]   ;;  %v1835_v23 = vld [vmem:[%s2286_s1 + $0xc8] sm:$0xff]   ;;  %v1837_v25 = vld [vmem:[%s2286_s1 + $0xd0] sm:$0xff]  }
  0x19   : >> { %1641 = vmatprep.subr.bf16.mxu1 %v1907_v2  ;;  %v1838_v26 = vld [vmem:[%s2286_s1 + $0x98] sm:$0xff]   ;;  %v1840_v28 = vld [vmem:[%s2286_s1 + $0xa0] sm:$0xff]   ;;  %v1842_v31 = vld [vmem:[%s2286_s1 + $0xa8] sm:$0xff]  }
  0x1a   : >> { %v1839_v27 = vld [vmem:[%s2286_s1 + $0xd8] sm:$0xff]   ;;  %v1841_v29 = vld [vmem:[%s2286_s1 + $0xe0] sm:$0xff]   ;;  %v1843_v32 = vld [vmem:[%s2286_s1 + $0xe8] sm:$0xff]  }
  0x1b   : >> { %1622 = vmatpush3.bf16.msra.mxu0 %v1820_v6  ;;  %v1848_v30 = vld [vmem:[%s2019_s4] sm:$0x1f]   ;;  %v1844_v34 = vld [vmem:[%s2286_s1 + $0xb0] sm:$0xff]   ;;  %v1846_v38 = vld [vmem:[%s2286_s1 + $0xb8] sm:$0xff]  }
  0x1c   : >> { %1642 = vmatpush3.bf16.msra.mxu1 %v1821_v7  ;;  %1623 = vmatprep.subr.bf16.mxu0 %v1907_v2  ;;  %v423_v33 = vshll.u32 %v1848_v30, 16  ;;  %v1845_v35 = vld [vmem:[%s2286_s1 + $0xf0] sm:$0xff]   ;;  %v421_v36 = vshrl.u32 %v1848_v30, 16  ;;  %v1847_v39 = vld [vmem:[%s2286_s1 + $0xf8] sm:$0xff]   ;;  %v1849_v41 = vld [vmem:[%s2286_s1 + $0x100] sm:$0xff]  }
  0x1d   : >> { %1643 = vmatprep.subr.bf16.mxu1 %v1907_v2  ;;  %v1367_v42 = vld [vmem:[%s2019_s4 + $0x90] sm:$0xf]  ;;  %v1850_v43 = vld [vmem:[%s2286_s1 + $0x140] sm:$0xff]   ;;  %v1851_v44 = vld [vmem:[%s2286_s1 + $0x108] sm:$0xff]  }
  0x1e   : >> { %v425_v37 = vrot.slane %v423_v33, 1  ;;  %v1852_v45 = vld [vmem:[%s2286_s1 + $0x148] sm:$0xff]   ;;  %v1853_v46 = vld [vmem:[%s2286_s1 + $0x110] sm:$0xff]   ;;  %v1855_v48 = vld [vmem:[%s2286_s1 + $0x118] sm:$0xff]  }
  0x1f   : >> { %1624 = vmatpush3.bf16.msra.mxu0 %v1822_v8  ;;  %v1854_v47 = vld [vmem:[%s2286_s1 + $0x150] sm:$0xff]   ;;  %v1856_v49 = vld [vmem:[%s2286_s1 + $0x158] sm:$0xff]   ;;  %v1857_v50 = vld [vmem:[%s2286_s1 + $0x120] sm:$0xff]  }
  0x20   : >> { %1644 = vmatpush3.bf16.msra.mxu1 %v1823_v9  ;;  %1625 = vmatprep.subr.bf16.mxu0 %v1907_v2  ;;  %v426_v40 = vor.u32 %v425_v37, %v421_v36  ;;  %v1858_v51 = vld [vmem:[%s2286_s1 + $0x160] sm:$0xff]   ;;  %v1859_v52 = vld [vmem:[%s2286_s1 + $0x128] sm:$0xff]   ;;  %v1866_v53 = vld [vmem:[%s2019_s4 + $0x90] sm:$0x1f]  }
  0x21   : >> { %1645 = vmatprep.subr.bf16.mxu1 %v1907_v2  ;;  %v1860_v54 = vld [vmem:[%s2286_s1 + $0x168] sm:$0xff]   ;;  %v1861_v55 = vld [vmem:[%s2286_s1 + $0x130] sm:$0xff]   ;;  %v764_v56 = vshll.u32 %v1866_v53, 16  ;;  %v1863_v58 = vld [vmem:[%s2286_s1 + $0x138] sm:$0xff]   ;;  %v762_v59 = vshrl.u32 %v1866_v53, 16 }
  0x22   : >> { %v1862_v57 = vld [vmem:[%s2286_s1 + $0x170] sm:$0xff]   ;;  %v1864_v61 = vld [vmem:[%s2286_s1 + $0x178] sm:$0xff]   ;;  %v1865_v63 = vld [vmem:[%s2286_s1 + $0x180] sm:$0xff]  }
  0x23   : >> { %1626 = vmatpush3.bf16.msra.mxu0 %v1824_v10  ;;  %v766_v60 = vrot.slane %v764_v56, 1  ;;  %v1394_v62 = vld [vmem:[%s2019_s4 + $0xd8] sm:$0xf]  ;;  %v1867_v3 = vld [vmem:[%s2286_s1 + $0x1c0] sm:$0xff]   ;;  %v1868_v4 = vld [vmem:[%s2286_s1 + $0x188] sm:$0xff]  }
  0x24   : >> { %1646 = vmatpush3.bf16.msra.mxu1 %v1825_v11  ;;  %1627 = vmatprep.subr.bf16.mxu0 %v1907_v2  ;;  %v1869_v5 = vld [vmem:[%s2286_s1 + $0x1c8] sm:$0xff]   ;;  %v1870_v6 = vld [vmem:[%s2286_s1 + $0x190] sm:$0xff]   ;;  %v1872_v8 = vld [vmem:[%s2286_s1 + $0x198] sm:$0xff]  }
  0x25   : >> { %1647 = vmatprep.subr.bf16.mxu1 %v1907_v2  ;;  %v767_v1 = vor.u32 %v766_v60, %v762_v59  ;;  %v1871_v7 = vld [vmem:[%s2286_s1 + $0x1d0] sm:$0xff]   ;;  %v1873_v9 = vld [vmem:[%s2286_s1 + $0x1d8] sm:$0xff]   ;;  %v1874_v10 = vld [vmem:[%s2286_s1 + $0x1a0] sm:$0xff]  }
  0x26   : >> { %v1875_v11 = vld [vmem:[%s2286_s1 + $0x1e0] sm:$0xff]  }
  0x27   : >> { %1628 = vmatpush3.bf16.msra.mxu0 %v1826_v12  ;;  %v1876_v12 = vld [vmem:[%s2286_s1 + $0x1a8] sm:$0xff]  }
  0x28   : >> { %1648 = vmatpush3.bf16.msra.mxu1 %v1827_v13  ;;  %1629 = vmatprep.subr.bf16.mxu0 %v1907_v2  ;;  %v1877_v13 = vld [vmem:[%s2286_s1 + $0x1e8] sm:$0xff]  }
  0x29   : >> { %1649 = vmatprep.subr.bf16.mxu1 %v1907_v2 }
  0x2b   : >> { %1630 = vmatpush3.bf16.msra.mxu0 %v1828_v14  ;;  %v1878_v14 = vld [vmem:[%s2286_s1 + $0x1b0] sm:$0xff]  }
  0x2c   : >> { %1650 = vmatpush3.bf16.msra.mxu1 %v1829_v15  ;;  %1631 = vmatprep.subr.bf16.mxu0 %v1907_v2  ;;  %v1879_v15 = vld [vmem:[%s2286_s1 + $0x1f0] sm:$0xff]  }
  0x2d   : >> { %1651 = vmatprep.subr.bf16.mxu1 %v1907_v2 }
  0x2f   : >> { %1632 = vmatpush3.bf16.msra.mxu0 %v1830_v16  ;;  %v1880_v16 = vld [vmem:[%s2286_s1 + $0x1b8] sm:$0xff]  }
  0x30   : >> { %1652 = vmatpush3.bf16.msra.mxu1 %v1831_v17  ;;  %1657 = vmatprep.subr.bf16.mxu0 %v1907_v2  ;;  %v1881_v17 = vld [vmem:[%s2286_s1 + $0x1f8] sm:$0xff]  }
  0x31   : >> { %1677 = vmatprep.subr.bf16.mxu1 %v1907_v2 }
  0x32   : >> { %1634 = vmatmul.mubr.bf16.vlgmr.msra.gmra.mrb[0].mxu0 %v1307_v18  ;;  %v1447_v18 = vld [vmem:[%s2019_s4 + $0x8] sm:$0xf] }
  0x33   : >> { %1654 = vmatmul.mubr.bf16.vlgmr.msra.gmra.mrb[0].mxu1 %v182_v19  ;;  %1658 = vmatpush3.bf16.msra.mxu0 %v1832_v20  ;;  %v1882_v19 = vld [vmem:[%s2286_s1 + $0x200] sm:$0xff]   ;;  %v1474_v20 = vld [vmem:[%s2019_s4 + $0x50] sm:$0xf] }
  0x34   : >> { %1678 = vmatpush3.bf16.msra.mxu1 %v1833_v21  ;;  %1659 = vmatprep.subr.bf16.mxu0 %v1907_v2  ;;  %v1883_v21 = vld [vmem:[%s2286_s1 + $0x208] sm:$0xff]  }
  0x35   : >> { %1679 = vmatprep.subr.bf16.mxu1 %v1907_v2  ;;  %1673 = vmatprep.mubr.msk.bf16.mxu0 %vm1908_vm0, %v1907_v2 }
  0x36   : >> { %1693 = vmatprep.mubr.msk.bf16.mxu1 %vm1908_vm0, %v1907_v2 }
  0x37   : >> { %1660 = vmatpush3.bf16.msra.mxu0 %v1834_v22  ;;  %v1884_v22 = vld [vmem:[%s2286_s1 + $0x210] sm:$0xff]  }
  0x38   : >> { %1680 = vmatpush3.bf16.msra.mxu1 %v1835_v23  ;;  %1661 = vmatprep.subr.bf16.mxu0 %v1907_v2  ;;  %v1885_v23 = vld [vmem:[%s2286_s1 + $0x218] sm:$0xff]  }
  0x39   : >> { %1681 = vmatprep.subr.bf16.mxu1 %v1907_v2 }
  0x3b   : >> { %1662 = vmatpush3.bf16.msra.mxu0 %v1836_v24  ;;  %v1886_v24 = vld [vmem:[%s2286_s1 + $0x220] sm:$0xff]  }
  0x3c   : >> { %1682 = vmatpush3.bf16.msra.mxu1 %v1837_v25  ;;  %1663 = vmatprep.subr.bf16.mxu0 %v1907_v2  ;;  %v1890_v25 = vld [vmem:[%s2019_s4 + $0x8] sm:$0x1f]  }
  0x3d   : >> { %1683 = vmatprep.subr.bf16.mxu1 %v1907_v2 }
  0x3f   : >> { %1664 = vmatpush3.bf16.msra.mxu0 %v1838_v26  ;;  %v1887_v26 = vld [vmem:[%s2286_s1 + $0x228] sm:$0xff]  }
  0x40   : >> { %1684 = vmatpush3.bf16.msra.mxu1 %v1839_v27  ;;  %1665 = vmatprep.subr.bf16.mxu0 %v1907_v2  ;;  %v1106_v27 = vshll.u32 %v1890_v25, 16 }
  0x41   : >> { %1685 = vmatprep.subr.bf16.mxu1 %v1907_v2 }
  0x42   : >> { %v1108_v30 = vrot.slane %v1106_v27, 1 }
  0x43   : >> { %1666 = vmatpush3.bf16.msra.mxu0 %v1840_v28  ;;  %v1888_v28 = vld [vmem:[%s2286_s1 + $0x230] sm:$0xff]  }
  0x44   : >> { %1686 = vmatpush3.bf16.msra.mxu1 %v1841_v29  ;;  %1667 = vmatprep.subr.bf16.mxu0 %v1907_v2  ;;  %v1104_v29 = vshrl.u32 %v1890_v25, 16 }
  0x45   : >> { %1687 = vmatprep.subr.bf16.mxu1 %v1907_v2 }
  0x47   : >> { %1668 = vmatpush3.bf16.msra.mxu0 %v1842_v31  ;;  %v1889_v31 = vld [vmem:[%s2286_s1 + $0x238] sm:$0xff]  }
  0x48   : >> { %1688 = vmatpush3.bf16.msra.mxu1 %v1843_v32  ;;  %1669 = vmatprep.subr.bf16.mxu0 %v1907_v2  ;;  %v1109_v32 = vor.u32 %v1108_v30, %v1104_v29 }
  0x49   : >> { %1689 = vmatprep.subr.bf16.mxu1 %v1907_v2 }
  0x4b   : >> { %1670 = vmatpush3.bf16.msra.mxu0 %v1844_v34 }
  0x4c   : >> { %1690 = vmatpush3.bf16.msra.mxu1 %v1845_v35  ;;  %1671 = vmatprep.subr.bf16.mxu0 %v1907_v2 }
  0x4d   : >> { %1691 = vmatprep.subr.bf16.mxu1 %v1907_v2 }
  0x4f   : >> { %1672 = vmatpush3.bf16.msra.mxu0 %v1846_v38 }
  0x50   : >> { %1692 = vmatpush3.bf16.msra.mxu1 %v1847_v39  ;;  %1697 = vmatprep.subr.bf16.mxu0 %v1907_v2 }
  0x51   : >> { %1717 = vmatprep.subr.bf16.mxu1 %v1907_v2 }
  0x52   : >> { %1674 = vmatmul.mubr.bf16.vlgmr.msra.gmra.mrb[4].mxu0 %v426_v40 }
  0x53   : >> { %1698 = vmatpush3.bf16.msra.mxu0 %v1849_v41  ;;  %1694 = vmatmul.mubr.bf16.vlgmr.msra.gmra.mrb[4].mxu1 %v1367_v42 }
  0x54   : >> { %1718 = vmatpush3.bf16.msra.mxu1 %v1850_v43  ;;  %1699 = vmatprep.subr.bf16.mxu0 %v1907_v2 }
  0x55   : >> { %1719 = vmatprep.subr.bf16.mxu1 %v1907_v2  ;;  %1713 = vmatprep.mubr.msk.bf16.mxu0 %vm1908_vm0, %v1907_v2 }
  0x56   : >> { %1733 = vmatprep.mubr.msk.bf16.mxu1 %vm1908_vm0, %v1907_v2 }
  0x57   : >> { %1700 = vmatpush3.bf16.msra.mxu0 %v1851_v44 }
  0x58   : >> { %1720 = vmatpush3.bf16.msra.mxu1 %v1852_v45  ;;  %1701 = vmatprep.subr.bf16.mxu0 %v1907_v2 }
  0x59   : >> { %1721 = vmatprep.subr.bf16.mxu1 %v1907_v2 }
  0x5b   : >> { %1702 = vmatpush3.bf16.msra.mxu0 %v1853_v46 }
  0x5c   : >> { %1722 = vmatpush3.bf16.msra.mxu1 %v1854_v47  ;;  %1703 = vmatprep.subr.bf16.mxu0 %v1907_v2 }
  0x5d   : >> { %1723 = vmatprep.subr.bf16.mxu1 %v1907_v2 }
  0x5f   : >> { %1704 = vmatpush3.bf16.msra.mxu0 %v1855_v48 }
  0x60   : >> { %1724 = vmatpush3.bf16.msra.mxu1 %v1856_v49  ;;  %1705 = vmatprep.subr.bf16.mxu0 %v1907_v2 }
  0x61   : >> { %1725 = vmatprep.subr.bf16.mxu1 %v1907_v2 }
  0x63   : >> { %1706 = vmatpush3.bf16.msra.mxu0 %v1857_v50 }
  0x64   : >> { %1726 = vmatpush3.bf16.msra.mxu1 %v1858_v51  ;;  %1707 = vmatprep.subr.bf16.mxu0 %v1907_v2 }
  0x65   : >> { %1727 = vmatprep.subr.bf16.mxu1 %v1907_v2 }
  0x67   : >> { %1708 = vmatpush3.bf16.msra.mxu0 %v1859_v52 }
  0x68   : >> { %1728 = vmatpush3.bf16.msra.mxu1 %v1860_v54  ;;  %1709 = vmatprep.subr.bf16.mxu0 %v1907_v2 }
  0x69   : >> { %1729 = vmatprep.subr.bf16.mxu1 %v1907_v2 }
  0x6b   : >> { %1710 = vmatpush3.bf16.msra.mxu0 %v1861_v55 }
  0x6c   : >> { %1730 = vmatpush3.bf16.msra.mxu1 %v1862_v57  ;;  %1711 = vmatprep.subr.bf16.mxu0 %v1907_v2 }
  0x6d   : >> { %1731 = vmatprep.subr.bf16.mxu1 %v1907_v2 }
  0x6f   : >> { %1712 = vmatpush3.bf16.msra.mxu0 %v1863_v58 }
  0x70   : >> { %1732 = vmatpush3.bf16.msra.mxu1 %v1864_v61  ;;  %1737 = vmatprep.subr.bf16.mxu0 %v1907_v2 }
  0x71   : >> { %1757 = vmatprep.subr.bf16.mxu1 %v1907_v2 }
  0x72   : >> { %1714 = vmatmul.mubr.bf16.vlgmr.msra.gmra.mrb[8].mxu0 %v1394_v62 }
  0x73   : >> { %1738 = vmatpush3.bf16.msra.mxu0 %v1865_v63  ;;  %1734 = vmatmul.mubr.bf16.vlgmr.msra.gmra.mrb[8].mxu1 %v767_v1 }
  0x74   : >> { %1758 = vmatpush3.bf16.msra.mxu1 %v1867_v3  ;;  %1739 = vmatprep.subr.bf16.mxu0 %v1907_v2 }
  0x75   : >> { %1759 = vmatprep.subr.bf16.mxu1 %v1907_v2  ;;  %1753 = vmatprep.mubr.msk.bf16.mxu0 %vm1908_vm0, %v1907_v2 }
  0x76   : >> { %1773 = vmatprep.mubr.msk.bf16.mxu1 %vm1908_vm0, %v1907_v2 }
  0x77   : >> { %1740 = vmatpush3.bf16.msra.mxu0 %v1868_v4 }
  0x78   : >> { %1760 = vmatpush3.bf16.msra.mxu1 %v1869_v5  ;;  %1741 = vmatprep.subr.bf16.mxu0 %v1907_v2 }
  0x79   : >> { %1761 = vmatprep.subr.bf16.mxu1 %v1907_v2 }
  0x7b   : >> { %1742 = vmatpush3.bf16.msra.mxu0 %v1870_v6 }
  0x7c   : >> { %1762 = vmatpush3.bf16.msra.mxu1 %v1871_v7  ;;  %1743 = vmatprep.subr.bf16.mxu0 %v1907_v2 }
  0x7d   : >> { %1763 = vmatprep.subr.bf16.mxu1 %v1907_v2 }
  0x7f   : >> { %1744 = vmatpush3.bf16.msra.mxu0 %v1872_v8 }
  0x80   : >> { %1764 = vmatpush3.bf16.msra.mxu1 %v1873_v9  ;;  %1745 = vmatprep.subr.bf16.mxu0 %v1907_v2 }
  0x81   : >> { %1765 = vmatprep.subr.bf16.mxu1 %v1907_v2 }
  0x83   : >> { %1746 = vmatpush3.bf16.msra.mxu0 %v1874_v10 }
  0x84   : >> { %1766 = vmatpush3.bf16.msra.mxu1 %v1875_v11  ;;  %1747 = vmatprep.subr.bf16.mxu0 %v1907_v2 }
  0x85   : >> { %1767 = vmatprep.subr.bf16.mxu1 %v1907_v2 }
  0x87   : >> { %1748 = vmatpush3.bf16.msra.mxu0 %v1876_v12 }
  0x88   : >> { %1768 = vmatpush3.bf16.msra.mxu1 %v1877_v13  ;;  %1749 = vmatprep.subr.bf16.mxu0 %v1907_v2 }
  0x89   : >> { %1769 = vmatprep.subr.bf16.mxu1 %v1907_v2 }
  0x8b   : >> { %1750 = vmatpush3.bf16.msra.mxu0 %v1878_v14 }
  0x8c   : >> { %1770 = vmatpush3.bf16.msra.mxu1 %v1879_v15  ;;  %1751 = vmatprep.subr.bf16.mxu0 %v1907_v2 }
  0x8d   : >> { %1771 = vmatprep.subr.bf16.mxu1 %v1907_v2 }
  0x8f   : >> { %1752 = vmatpush3.bf16.msra.mxu0 %v1880_v16 }
  0x90   : >> { %1772 = vmatpush3.bf16.msra.mxu1 %v1881_v17  ;;  %1777 = vmatprep.subr.bf16.mxu0 %v1907_v2 }
  0x92   : >> { %1754 = vmatmul.mubr.bf16.vlgmr.msra.gmra.mrb[12].mxu0 %v1447_v18 }
  0x93   : >> { %1778 = vmatpush3.bf16.msra.mxu0 %v1882_v19  ;;  %1774 = vmatmul.mubr.bf16.vlgmr.msra.gmra.mrb[12].mxu1 %v1474_v20 }
  0x94   : >> { %1779 = vmatprep.subr.bf16.mxu0 %v1907_v2  ;;  %1793 = vmatprep.mubr.msk.bf16.mxu0 %vm1908_vm0, %v1907_v2 }
  0x97   : >> { %1780 = vmatpush3.bf16.msra.mxu0 %v1883_v21 }
  0x98   : >> { %1781 = vmatprep.subr.bf16.mxu0 %v1907_v2 }
  0x9b   : >> { %1782 = vmatpush3.bf16.msra.mxu0 %v1884_v22 }
  0x9c   : >> { %1783 = vmatprep.subr.bf16.mxu0 %v1907_v2 }
  0x9f   : >> { %1784 = vmatpush3.bf16.msra.mxu0 %v1885_v23 }
  0xa0   : >> { %1785 = vmatprep.subr.bf16.mxu0 %v1907_v2 }
  0xa3   : >> { %1786 = vmatpush3.bf16.msra.mxu0 %v1886_v24 }
  0xa4   : >> { %1787 = vmatprep.subr.bf16.mxu0 %v1907_v2 }
  0xa7   : >> { %1788 = vmatpush3.bf16.msra.mxu0 %v1887_v26 }
  0xa8   : >> { %1789 = vmatprep.subr.bf16.mxu0 %v1907_v2 }
  0xab   : >> { %1790 = vmatpush3.bf16.msra.mxu0 %v1888_v28 }
  0xac   : >> { %1791 = vmatprep.subr.bf16.mxu0 %v1907_v2 }
  0xaf   : >> { %1792 = vmatpush3.bf16.msra.mxu0 %v1889_v31 }
  0xb2   : >> { %1794 = vmatmul.mubr.bf16.vlgmr.msra.gmra.mrb[16].mxu0 %v1109_v32 }
 0x105   : >> { %v302_v33 = vpop.f32.mrb[0].mxu0 }
 0x106   : >> { %v1635_v34 = vpop.f32.mrb[1].mxu0  ;;  %v390_v35 = vpop.f32.mrb[0].mxu1 }
 0x107   : >> { %v391_v36 = vadd.f32 %v390_v35, %v302_v33  ;;  %v305_v37 = vpop.f32.mrb[2].mxu0  ;;  %v1655_v38 = vpop.f32.mrb[1].mxu1 }
 0x108   : >> { %v1636_v39 = vpop.f32.mrb[3].mxu0  ;;  %v393_v40 = vpop.f32.mrb[2].mxu1 }
 0x109   : >> { %v1656_v41 = vpop.f32.mrb[3].mxu1 }
 0x125   : >> { %v510_v42 = vpop.f32.mrb[4].mxu0 }
 0x126   : >> { %v516_v43 = vadd.f32 %v510_v42, %v391_v36  ;;  %v1675_v44 = vpop.f32.mrb[5].mxu0  ;;  %v620_v45 = vpop.f32.mrb[4].mxu1 }
 0x127   : >> { %v513_v46 = vpop.f32.mrb[6].mxu0  ;;  %v1695_v47 = vpop.f32.mrb[5].mxu1 }
 0x128   : >> { %v626_v48 = vadd.f32 %v620_v45, %v516_v43  ;;  %v1676_v2 = vpop.f32.mrb[7].mxu0  ;;  %v623_v49 = vpop.f32.mrb[6].mxu1 }
 0x129   : >> { %v1696_v50 = vpop.f32.mrb[7].mxu1 }
 0x145   : >> { %v730_v51 = vpop.f32.mrb[8].mxu0 }
 0x146   : >> { %v736_v52 = vadd.f32 %v730_v51, %v626_v48  ;;  %v1715_v53 = vpop.f32.mrb[9].mxu0  ;;  %v851_v54 = vpop.f32.mrb[8].mxu1 }
 0x147   : >> { %v733_v55 = vpop.f32.mrb[10].mxu0  ;;  %v1735_v56 = vpop.f32.mrb[9].mxu1 }
 0x148   : >> { %v857_v57 = vadd.f32 %v851_v54, %v736_v52  ;;  %v1716_v58 = vpop.f32.mrb[11].mxu0  ;;  %v854_v59 = vpop.f32.mrb[10].mxu1 }
 0x149   : >> { %v1736_v60 = vpop.f32.mrb[11].mxu1 }
 0x165   : >> { %v962_v61 = vpop.f32.mrb[12].mxu0 }
 0x166   : >> { %v968_v62 = vadd.f32 %v962_v61, %v857_v57  ;;  %v1755_v63 = vpop.f32.mrb[13].mxu0  ;;  %v1072_v1 = vpop.f32.mrb[12].mxu1 }
 0x167   : >> { %v965_v3 = vpop.f32.mrb[14].mxu0  ;;  %v1775_v4 = vpop.f32.mrb[13].mxu1 }
 0x168   : >> { %v1078_v5 = vadd.f32 %v1072_v1, %v968_v62  ;;  %v1756_v6 = vpop.f32.mrb[15].mxu0  ;;  %v1075_v7 = vpop.f32.mrb[14].mxu1 }
 0x169   : >> { %v1776_v8 = vpop.f32.mrb[15].mxu1 }
 0x185   : >> { %v1193_v9 = vpop.f32.mrb[16].mxu0 }
 0x186   : >> { %v1199_v10 = vadd.f32 %v1193_v9, %v1078_v5  ;;  %v1795_v11 = vpop.f32.mrb[17].mxu0 }
 0x187   : >> { %v1196_v12 = vpop.f32.mrb[18].mxu0 }
 0x188   : >> { %v1206_v13 = vadd.f32 %v1940_v0, %v1199_v10  ;;  %v1796_v14 = vpop.f32.mrb[19].mxu0  ;;  %177 = sbr.rel (!%p175_p4) target bundleno = 17 (0x11), region = 84 }
 0x18a   : >> { %v1207_v15 = vmax.f32 %v1206_v13, 0.0 }
 0x18c   : >> { %v1208_v16 = vpack.c.bf16 %v1207_v15, %v1207_v15 }
 0x18e   : >> { %1211 = vst [vmem:[%s1210_s11] sm:$0xf] %v1208_v16 }
 0x18f PF: > { %s13_s12 = sadd.s32 1, %s1901_s12  }
 0x190   : > { %p10_p5 = scmp.ge.s32.totalorder %s13_s12, 4  }
 0x192   :  { %12 = sbr.rel (!%p10_p5) target bundleno = 1 (0x1), region = 95 }

// kernel: snow_forward.6
= control target key start
LH: loop header
LB: loop body
LE: loop exit
PB: predicated region body
PF: predicated region fallthrough
CT: control target
= control target key end

     0   :  { %s1902_s12 = smov 0   ;;  %s2258_s0 = inlined_call_operand.vmem [shape: bf16[2,4,5,5,128], index: 0, kind: input, shape index: {}]   ;;  %s2259_s1 = inlined_call_operand.vmem [shape: bf16[9,128,128], index: 1, kind: input, shape index: {}]   ;;  %s2260_s2 = inlined_call_operand.vmem [shape: f32[1,128], index: 2, kind: input, shape index: {}]   ;;  %s2261_s3 = inlined_call_operand.vmem [shape: bf16[2,4,4,128], index: 3, kind: output, shape index: {}]  }
   0x1 LB: > { %s1280_s13 = sadd.s32 4294967295, %s1874_s12   ;;  %p1284_p0 = scmp.ge.s32.totalorder %s1874_s12, 1  ;;  %s1874_s12 = sphi %s1902_s12, %s13_s12  }
   0x2   : > { %p137_p1 = scmp.lt.s32.totalorder %s1874_s12, 3 }
   0x4   : > { %p138_p2 = pnand %p1284_p0, %p137_p1 }
   0x5   : > { %p161_p3 = scmp.lt.s32.totalorder (!%p138_p2), %s1280_s13, 1  ;;  %v1913_v0 = vld [vmem:[%s2260_s2] ss:$0 sm:$0xff] (!%p138_p2)  ;;  %s1925_s24 = smov (!%p138_p2), 0  }
   0x6   : > { %141 = sbr.rel (%p138_p2) target bundleno = 399 (0x18f), region = 32 }
   0xd   : > { %s2263_s13 = smov (!%p161_p3, %s1280_s13), 1 }
   0xe   : > { %s1770_s16 = smul.u32 80, %s2263_s13  ;;  %s1508_s17 = sshll.u32 %s2263_s13, 3 }
   0xf   : > { %s1918_s20 = scalar_lea.vmem %s2261_s3, %s1508_s17 }
  0x10   : > { %s1923_s23 = scalar_lea.vmem %s2258_s0, %s1770_s16 }
  0x11 LB: >> { %v1789_v1 = vld [vmem:[%s2259_s1 + $0x40] sm:$0xff]   ;;  %v1880_v2 = vmov 0.0   ;;  %v1791_v4 = vld [vmem:[%s2259_s1 + $0x48] sm:$0xff]   ;;  %vm1881_vm0 = vmmov 0   ;;  %v1793_v6 = vld [vmem:[%s2259_s1 + $0x50] sm:$0xff]   ;;  %s1288_s28 = sshll.u32 %s1878_s24, 2  ;;  %s1878_s24 = sphi %s1925_s24, %s178_s24  }
  0x12   : >> { %1590 = vmatprep.subr.bf16.mxu0 %v1880_v2  ;;  %1610 = vmatprep.subr.bf16.mxu1 %v1880_v2  ;;  %v1790_v3 = vld [vmem:[%s2259_s1] sm:$0xff]   ;;  %v1792_v5 = vld [vmem:[%s2259_s1 + $0x8] sm:$0xff]   ;;  %v1794_v7 = vld [vmem:[%s2259_s1 + $0x10] sm:$0xff]   ;;  %s1992_s4 = scalar_lea.vmem %s1923_s23, %s1288_s28  ;;  %s1505_s10 = sshll.u32 %s1878_s24, 1 }
  0x13   : >> { %1591 = vmatpush3.bf16.msra.mxu0 %v1789_v1  ;;  %1606 = vmatprep.mubr.msk.bf16.mxu0 %vm1881_vm0, %v1880_v2  ;;  %v1795_v8 = vld [vmem:[%s2259_s1 + $0x58] sm:$0xff]   ;;  %v1797_v10 = vld [vmem:[%s2259_s1 + $0x60] sm:$0xff]   ;;  %v1799_v12 = vld [vmem:[%s2259_s1 + $0x68] sm:$0xff]   ;;  %s1199_s11 = scalar_lea.vmem %s1918_s20, %s1505_s10  ;;  %s178_s24 = sadd.s32 1, %s1878_s24  }
  0x14   : >> { %1611 = vmatpush3.bf16.msra.mxu1 %v1790_v3  ;;  %1592 = vmatprep.subr.bf16.mxu0 %v1880_v2  ;;  %v1796_v9 = vld [vmem:[%s2259_s1 + $0x18] sm:$0xff]   ;;  %v1798_v11 = vld [vmem:[%s2259_s1 + $0x20] sm:$0xff]   ;;  %v1800_v13 = vld [vmem:[%s2259_s1 + $0x28] sm:$0xff]   ;;  %p175_p4 = scmp.ge.s32.totalorder %s178_s24, 4  }
  0x15   : >> { %1612 = vmatprep.subr.bf16.mxu1 %v1880_v2  ;;  %1626 = vmatprep.mubr.msk.bf16.mxu1 %vm1881_vm0, %v1880_v2  ;;  %v1801_v14 = vld [vmem:[%s2259_s1 + $0x70] sm:$0xff]   ;;  %v1803_v16 = vld [vmem:[%s2259_s1 + $0x78] sm:$0xff]   ;;  %v181_v19 = vld [vmem:[%s1992_s4] sm:$0x3] }
  0x16   : >> { %v1802_v15 = vld [vmem:[%s2259_s1 + $0x30] sm:$0xff]   ;;  %v1804_v17 = vld [vmem:[%s2259_s1 + $0x38] sm:$0xff]   ;;  %v1805_v20 = vld [vmem:[%s2259_s1 + $0x80] sm:$0xff]  }
  0x17   : >> { %1593 = vmatpush3.bf16.msra.mxu0 %v1791_v4  ;;  %v1290_v18 = vld [vmem:[%s1992_s4 + $0x14] sm:$0x3]  ;;  %v1806_v21 = vld [vmem:[%s2259_s1 + $0xc0] sm:$0xff]   ;;  %v1807_v22 = vld [vmem:[%s2259_s1 + $0x88] sm:$0xff]  }
  0x18   : >> { %1613 = vmatpush3.bf16.msra.mxu1 %v1792_v5  ;;  %1594 = vmatprep.subr.bf16.mxu0 %v1880_v2  ;;  %v1808_v23 = vld [vmem:[%s2259_s1 + $0xc8] sm:$0xff]   ;;  %v1809_v24 = vld [vmem:[%s2259_s1 + $0x90] sm:$0xff]   ;;  %v1811_v26 = vld [vmem:[%s2259_s1 + $0x98] sm:$0xff]  }
  0x19   : >> { %1614 = vmatprep.subr.bf16.mxu1 %v1880_v2  ;;  %v1810_v25 = vld [vmem:[%s2259_s1 + $0xd0] sm:$0xff]   ;;  %v1812_v27 = vld [vmem:[%s2259_s1 + $0xd8] sm:$0xff]   ;;  %v1813_v28 = vld [vmem:[%s2259_s1 + $0xa0] sm:$0xff]  }
  0x1a   : >> { %v1814_v29 = vld [vmem:[%s2259_s1 + $0xe0] sm:$0xff]   ;;  %v1815_v31 = vld [vmem:[%s2259_s1 + $0xa8] sm:$0xff]   ;;  %v1817_v33 = vld [vmem:[%s2259_s1 + $0xb0] sm:$0xff]  }
  0x1b   : >> { %1595 = vmatpush3.bf16.msra.mxu0 %v1793_v6  ;;  %v1821_v30 = vld [vmem:[%s1992_s4] ss:$0 sps:$4 sm:$0x77]   ;;  %v1816_v32 = vld [vmem:[%s2259_s1 + $0xe8] sm:$0xff]   ;;  %v1818_v35 = vld [vmem:[%s2259_s1 + $0xf0] sm:$0xff]  }
  0x1c   : >> { %1615 = vmatpush3.bf16.msra.mxu1 %v1794_v7  ;;  %1596 = vmatprep.subr.bf16.mxu0 %v1880_v2  ;;  %v419_v34 = vshll.u32 %v1821_v30, 16  ;;  %v417_v36 = vshrl.u32 %v1821_v30, 16  ;;  %v1819_v38 = vld [vmem:[%s2259_s1 + $0xb8] sm:$0xff]   ;;  %v1822_v41 = vld [vmem:[%s2259_s1 + $0x100] sm:$0xff]   ;;  %v1349_v42 = vld [vmem:[%s1992_s4 + $0x28] sm:$0x3] }
  0x1d   : >> { %1616 = vmatprep.subr.bf16.mxu1 %v1880_v2  ;;  %v1820_v39 = vld [vmem:[%s2259_s1 + $0xf8] sm:$0xff]   ;;  %v1823_v43 = vld [vmem:[%s2259_s1 + $0x140] sm:$0xff]   ;;  %v1824_v44 = vld [vmem:[%s2259_s1 + $0x108] sm:$0xff]  }
  0x1e   : >> { %v421_v37 = vrot.slane %v419_v34, 1  ;;  %v1825_v45 = vld [vmem:[%s2259_s1 + $0x148] sm:$0xff]   ;;  %v1826_v46 = vld [vmem:[%s2259_s1 + $0x110] sm:$0xff]   ;;  %v1828_v48 = vld [vmem:[%s2259_s1 + $0x118] sm:$0xff]  }
  0x1f   : >> { %1597 = vmatpush3.bf16.msra.mxu0 %v1795_v8  ;;  %v1827_v47 = vld [vmem:[%s2259_s1 + $0x150] sm:$0xff]   ;;  %v1829_v49 = vld [vmem:[%s2259_s1 + $0x158] sm:$0xff]   ;;  %v1830_v50 = vld [vmem:[%s2259_s1 + $0x120] sm:$0xff]  }
  0x20   : >> { %1617 = vmatpush3.bf16.msra.mxu1 %v1796_v9  ;;  %1598 = vmatprep.subr.bf16.mxu0 %v1880_v2  ;;  %v422_v40 = vor.u32 %v421_v37, %v417_v36  ;;  %v1831_v51 = vld [vmem:[%s2259_s1 + $0x160] sm:$0xff]   ;;  %v1832_v52 = vld [vmem:[%s2259_s1 + $0x128] sm:$0xff]   ;;  %v1834_v55 = vld [vmem:[%s2259_s1 + $0x130] sm:$0xff]  }
  0x21   : >> { %1618 = vmatprep.subr.bf16.mxu1 %v1880_v2  ;;  %v1839_v53 = vld [vmem:[%s1992_s4 + $0x28] ss:$0 sps:$4 sm:$0x77]   ;;  %v1835_v57 = vld [vmem:[%s2259_s1 + $0x170] sm:$0xff]   ;;  %v1836_v58 = vld [vmem:[%s2259_s1 + $0x138] sm:$0xff]  }
  0x22   : >> { %v1833_v54 = vld [vmem:[%s2259_s1 + $0x168] sm:$0xff]   ;;  %v757_v56 = vshll.u32 %v1839_v53, 16  ;;  %v755_v59 = vshrl.u32 %v1839_v53, 16  ;;  %v1837_v61 = vld [vmem:[%s2259_s1 + $0x178] sm:$0xff]   ;;  %v1838_v63 = vld [vmem:[%s2259_s1 + $0x180] sm:$0xff]  }
  0x23   : >> { %1599 = vmatpush3.bf16.msra.mxu0 %v1797_v10  ;;  %v1375_v62 = vld [vmem:[%s1992_s4 + $0x3c] sm:$0x3]  ;;  %v1840_v3 = vld [vmem:[%s2259_s1 + $0x1c0] sm:$0xff]   ;;  %v1841_v4 = vld [vmem:[%s2259_s1 + $0x188] sm:$0xff]  }
  0x24   : >> { %1619 = vmatpush3.bf16.msra.mxu1 %v1798_v11  ;;  %1600 = vmatprep.subr.bf16.mxu0 %v1880_v2  ;;  %v759_v60 = vrot.slane %v757_v56, 1  ;;  %v1842_v5 = vld [vmem:[%s2259_s1 + $0x1c8] sm:$0xff]   ;;  %v1843_v6 = vld [vmem:[%s2259_s1 + $0x190] sm:$0xff]   ;;  %v1845_v8 = vld [vmem:[%s2259_s1 + $0x198] sm:$0xff]  }
  0x25   : >> { %1620 = vmatprep.subr.bf16.mxu1 %v1880_v2  ;;  %v1844_v7 = vld [vmem:[%s2259_s1 + $0x1d0] sm:$0xff]   ;;  %v1846_v9 = vld [vmem:[%s2259_s1 + $0x1d8] sm:$0xff]   ;;  %v1847_v10 = vld [vmem:[%s2259_s1 + $0x1a0] sm:$0xff]  }
  0x26   : >> { %v760_v1 = vor.u32 %v759_v60, %v755_v59  ;;  %v1848_v11 = vld [vmem:[%s2259_s1 + $0x1e0] sm:$0xff]  }
  0x27   : >> { %1601 = vmatpush3.bf16.msra.mxu0 %v1799_v12  ;;  %v1849_v12 = vld [vmem:[%s2259_s1 + $0x1a8] sm:$0xff]  }
  0x28   : >> { %1621 = vmatpush3.bf16.msra.mxu1 %v1800_v13  ;;  %1602 = vmatprep.subr.bf16.mxu0 %v1880_v2  ;;  %v1850_v13 = vld [vmem:[%s2259_s1 + $0x1e8] sm:$0xff]  }
  0x29   : >> { %1622 = vmatprep.subr.bf16.mxu1 %v1880_v2 }
  0x2b   : >> { %1603 = vmatpush3.bf16.msra.mxu0 %v1801_v14  ;;  %v1851_v14 = vld [vmem:[%s2259_s1 + $0x1b0] sm:$0xff]  }
  0x2c   : >> { %1623 = vmatpush3.bf16.msra.mxu1 %v1802_v15  ;;  %1604 = vmatprep.subr.bf16.mxu0 %v1880_v2  ;;  %v1852_v15 = vld [vmem:[%s2259_s1 + $0x1f0] sm:$0xff]  }
  0x2d   : >> { %1624 = vmatprep.subr.bf16.mxu1 %v1880_v2 }
  0x2f   : >> { %1605 = vmatpush3.bf16.msra.mxu0 %v1803_v16  ;;  %v1853_v16 = vld [vmem:[%s2259_s1 + $0x1b8] sm:$0xff]  }
  0x30   : >> { %1625 = vmatpush3.bf16.msra.mxu1 %v1804_v17  ;;  %1630 = vmatprep.subr.bf16.mxu0 %v1880_v2  ;;  %v1854_v17 = vld [vmem:[%s2259_s1 + $0x1f8] sm:$0xff]  }
  0x31   : >> { %1650 = vmatprep.subr.bf16.mxu1 %v1880_v2 }
  0x32   : >> { %1607 = vmatmul.mubr.bf16.vlgmr.msra.gmra.mrb[0].mxu0 %v1290_v18  ;;  %v1427_v18 = vld [vmem:[%s1992_s4 + $0x4] sm:$0x3] }
  0x33   : >> { %1627 = vmatmul.mubr.bf16.vlgmr.msra.gmra.mrb[0].mxu1 %v181_v19  ;;  %1631 = vmatpush3.bf16.msra.mxu0 %v1805_v20  ;;  %v1855_v19 = vld [vmem:[%s2259_s1 + $0x200] sm:$0xff]   ;;  %v1453_v20 = vld [vmem:[%s1992_s4 + $0x18] sm:$0x3] }
  0x34   : >> { %1651 = vmatpush3.bf16.msra.mxu1 %v1806_v21  ;;  %1632 = vmatprep.subr.bf16.mxu0 %v1880_v2  ;;  %v1856_v21 = vld [vmem:[%s2259_s1 + $0x208] sm:$0xff]  }
  0x35   : >> { %1652 = vmatprep.subr.bf16.mxu1 %v1880_v2  ;;  %1646 = vmatprep.mubr.msk.bf16.mxu0 %vm1881_vm0, %v1880_v2 }
  0x36   : >> { %1666 = vmatprep.mubr.msk.bf16.mxu1 %vm1881_vm0, %v1880_v2 }
  0x37   : >> { %1633 = vmatpush3.bf16.msra.mxu0 %v1807_v22  ;;  %v1857_v22 = vld [vmem:[%s2259_s1 + $0x210] sm:$0xff]  }
  0x38   : >> { %1653 = vmatpush3.bf16.msra.mxu1 %v1808_v23  ;;  %1634 = vmatprep.subr.bf16.mxu0 %v1880_v2  ;;  %v1858_v23 = vld [vmem:[%s2259_s1 + $0x218] sm:$0xff]  }
  0x39   : >> { %1654 = vmatprep.subr.bf16.mxu1 %v1880_v2 }
  0x3b   : >> { %1635 = vmatpush3.bf16.msra.mxu0 %v1809_v24  ;;  %v1859_v24 = vld [vmem:[%s2259_s1 + $0x220] sm:$0xff]  }
  0x3c   : >> { %1655 = vmatpush3.bf16.msra.mxu1 %v1810_v25  ;;  %1636 = vmatprep.subr.bf16.mxu0 %v1880_v2  ;;  %v1863_v25 = vld [vmem:[%s1992_s4 + $0x4] ss:$0 sps:$4 sm:$0x77]  }
  0x3d   : >> { %1656 = vmatprep.subr.bf16.mxu1 %v1880_v2 }
  0x3f   : >> { %1637 = vmatpush3.bf16.msra.mxu0 %v1811_v26  ;;  %v1860_v26 = vld [vmem:[%s2259_s1 + $0x228] sm:$0xff]  }
  0x40   : >> { %1657 = vmatpush3.bf16.msra.mxu1 %v1812_v27  ;;  %1638 = vmatprep.subr.bf16.mxu0 %v1880_v2  ;;  %v1095_v27 = vshll.u32 %v1863_v25, 16 }
  0x41   : >> { %1658 = vmatprep.subr.bf16.mxu1 %v1880_v2 }
  0x42   : >> { %v1097_v30 = vrot.slane %v1095_v27, 1 }
  0x43   : >> { %1639 = vmatpush3.bf16.msra.mxu0 %v1813_v28  ;;  %v1861_v28 = vld [vmem:[%s2259_s1 + $0x230] sm:$0xff]  }
  0x44   : >> { %1659 = vmatpush3.bf16.msra.mxu1 %v1814_v29  ;;  %1640 = vmatprep.subr.bf16.mxu0 %v1880_v2  ;;  %v1093_v29 = vshrl.u32 %v1863_v25, 16 }
  0x45   : >> { %1660 = vmatprep.subr.bf16.mxu1 %v1880_v2 }
  0x47   : >> { %1641 = vmatpush3.bf16.msra.mxu0 %v1815_v31  ;;  %v1862_v31 = vld [vmem:[%s2259_s1 + $0x238] sm:$0xff]  }
  0x48   : >> { %1661 = vmatpush3.bf16.msra.mxu1 %v1816_v32  ;;  %1642 = vmatprep.subr.bf16.mxu0 %v1880_v2  ;;  %v1098_v32 = vor.u32 %v1097_v30, %v1093_v29 }
  0x49   : >> { %1662 = vmatprep.subr.bf16.mxu1 %v1880_v2 }
  0x4b   : >> { %1643 = vmatpush3.bf16.msra.mxu0 %v1817_v33 }
  0x4c   : >> { %1663 = vmatpush3.bf16.msra.mxu1 %v1818_v35  ;;  %1644 = vmatprep.subr.bf16.mxu0 %v1880_v2 }
  0x4d   : >> { %1664 = vmatprep.subr.bf16.mxu1 %v1880_v2 }
  0x4f   : >> { %1645 = vmatpush3.bf16.msra.mxu0 %v1819_v38 }
  0x50   : >> { %1665 = vmatpush3.bf16.msra.mxu1 %v1820_v39  ;;  %1670 = vmatprep.subr.bf16.mxu0 %v1880_v2 }
  0x51   : >> { %1690 = vmatprep.subr.bf16.mxu1 %v1880_v2 }
  0x52   : >> { %1647 = vmatmul.mubr.bf16.vlgmr.msra.gmra.mrb[4].mxu0 %v422_v40 }
  0x53   : >> { %1671 = vmatpush3.bf16.msra.mxu0 %v1822_v41  ;;  %1667 = vmatmul.mubr.bf16.vlgmr.msra.gmra.mrb[4].mxu1 %v1349_v42 }
  0x54   : >> { %1691 = vmatpush3.bf16.msra.mxu1 %v1823_v43  ;;  %1672 = vmatprep.subr.bf16.mxu0 %v1880_v2 }
  0x55   : >> { %1692 = vmatprep.subr.bf16.mxu1 %v1880_v2  ;;  %1686 = vmatprep.mubr.msk.bf16.mxu0 %vm1881_vm0, %v1880_v2 }
  0x56   : >> { %1706 = vmatprep.mubr.msk.bf16.mxu1 %vm1881_vm0, %v1880_v2 }
  0x57   : >> { %1673 = vmatpush3.bf16.msra.mxu0 %v1824_v44 }
  0x58   : >> { %1693 = vmatpush3.bf16.msra.mxu1 %v1825_v45  ;;  %1674 = vmatprep.subr.bf16.mxu0 %v1880_v2 }
  0x59   : >> { %1694 = vmatprep.subr.bf16.mxu1 %v1880_v2 }
  0x5b   : >> { %1675 = vmatpush3.bf16.msra.mxu0 %v1826_v46 }
  0x5c   : >> { %1695 = vmatpush3.bf16.msra.mxu1 %v1827_v47  ;;  %1676 = vmatprep.subr.bf16.mxu0 %v1880_v2 }
  0x5d   : >> { %1696 = vmatprep.subr.bf16.mxu1 %v1880_v2 }
  0x5f   : >> { %1677 = vmatpush3.bf16.msra.mxu0 %v1828_v48 }
  0x60   : >> { %1697 = vmatpush3.bf16.msra.mxu1 %v1829_v49  ;;  %1678 = vmatprep.subr.bf16.mxu0 %v1880_v2 }
  0x61   : >> { %1698 = vmatprep.subr.bf16.mxu1 %v1880_v2 }
  0x63   : >> { %1679 = vmatpush3.bf16.msra.mxu0 %v1830_v50 }
  0x64   : >> { %1699 = vmatpush3.bf16.msra.mxu1 %v1831_v51  ;;  %1680 = vmatprep.subr.bf16.mxu0 %v1880_v2 }
  0x65   : >> { %1700 = vmatprep.subr.bf16.mxu1 %v1880_v2 }
  0x67   : >> { %1681 = vmatpush3.bf16.msra.mxu0 %v1832_v52 }
  0x68   : >> { %1701 = vmatpush3.bf16.msra.mxu1 %v1833_v54  ;;  %1682 = vmatprep.subr.bf16.mxu0 %v1880_v2 }
  0x69   : >> { %1702 = vmatprep.subr.bf16.mxu1 %v1880_v2 }
  0x6b   : >> { %1683 = vmatpush3.bf16.msra.mxu0 %v1834_v55 }
  0x6c   : >> { %1703 = vmatpush3.bf16.msra.mxu1 %v1835_v57  ;;  %1684 = vmatprep.subr.bf16.mxu0 %v1880_v2 }
  0x6d   : >> { %1704 = vmatprep.subr.bf16.mxu1 %v1880_v2 }
  0x6f   : >> { %1685 = vmatpush3.bf16.msra.mxu0 %v1836_v58 }
  0x70   : >> { %1705 = vmatpush3.bf16.msra.mxu1 %v1837_v61  ;;  %1710 = vmatprep.subr.bf16.mxu0 %v1880_v2 }
  0x71   : >> { %1730 = vmatprep.subr.bf16.mxu1 %v1880_v2 }
  0x72   : >> { %1687 = vmatmul.mubr.bf16.vlgmr.msra.gmra.mrb[8].mxu0 %v1375_v62 }
  0x73   : >> { %1711 = vmatpush3.bf16.msra.mxu0 %v1838_v63  ;;  %1707 = vmatmul.mubr.bf16.vlgmr.msra.gmra.mrb[8].mxu1 %v760_v1 }
  0x74   : >> { %1731 = vmatpush3.bf16.msra.mxu1 %v1840_v3  ;;  %1712 = vmatprep.subr.bf16.mxu0 %v1880_v2 }
  0x75   : >> { %1732 = vmatprep.subr.bf16.mxu1 %v1880_v2  ;;  %1726 = vmatprep.mubr.msk.bf16.mxu0 %vm1881_vm0, %v1880_v2 }
  0x76   : >> { %1746 = vmatprep.mubr.msk.bf16.mxu1 %vm1881_vm0, %v1880_v2 }
  0x77   : >> { %1713 = vmatpush3.bf16.msra.mxu0 %v1841_v4 }
  0x78   : >> { %1733 = vmatpush3.bf16.msra.mxu1 %v1842_v5  ;;  %1714 = vmatprep.subr.bf16.mxu0 %v1880_v2 }
  0x79   : >> { %1734 = vmatprep.subr.bf16.mxu1 %v1880_v2 }
  0x7b   : >> { %1715 = vmatpush3.bf16.msra.mxu0 %v1843_v6 }
  0x7c   : >> { %1735 = vmatpush3.bf16.msra.mxu1 %v1844_v7  ;;  %1716 = vmatprep.subr.bf16.mxu0 %v1880_v2 }
  0x7d   : >> { %1736 = vmatprep.subr.bf16.mxu1 %v1880_v2 }
  0x7f   : >> { %1717 = vmatpush3.bf16.msra.mxu0 %v1845_v8 }
  0x80   : >> { %1737 = vmatpush3.bf16.msra.mxu1 %v1846_v9  ;;  %1718 = vmatprep.subr.bf16.mxu0 %v1880_v2 }
  0x81   : >> { %1738 = vmatprep.subr.bf16.mxu1 %v1880_v2 }
  0x83   : >> { %1719 = vmatpush3.bf16.msra.mxu0 %v1847_v10 }
  0x84   : >> { %1739 = vmatpush3.bf16.msra.mxu1 %v1848_v11  ;;  %1720 = vmatprep.subr.bf16.mxu0 %v1880_v2 }
  0x85   : >> { %1740 = vmatprep.subr.bf16.mxu1 %v1880_v2 }
  0x87   : >> { %1721 = vmatpush3.bf16.msra.mxu0 %v1849_v12 }
  0x88   : >> { %1741 = vmatpush3.bf16.msra.mxu1 %v1850_v13  ;;  %1722 = vmatprep.subr.bf16.mxu0 %v1880_v2 }
  0x89   : >> { %1742 = vmatprep.subr.bf16.mxu1 %v1880_v2 }
  0x8b   : >> { %1723 = vmatpush3.bf16.msra.mxu0 %v1851_v14 }
  0x8c   : >> { %1743 = vmatpush3.bf16.msra.mxu1 %v1852_v15  ;;  %1724 = vmatprep.subr.bf16.mxu0 %v1880_v2 }
  0x8d   : >> { %1744 = vmatprep.subr.bf16.mxu1 %v1880_v2 }
  0x8f   : >> { %1725 = vmatpush3.bf16.msra.mxu0 %v1853_v16 }
  0x90   : >> { %1745 = vmatpush3.bf16.msra.mxu1 %v1854_v17  ;;  %1750 = vmatprep.subr.bf16.mxu0 %v1880_v2 }
  0x92   : >> { %1727 = vmatmul.mubr.bf16.vlgmr.msra.gmra.mrb[12].mxu0 %v1427_v18 }
  0x93   : >> { %1751 = vmatpush3.bf16.msra.mxu0 %v1855_v19  ;;  %1747 = vmatmul.mubr.bf16.vlgmr.msra.gmra.mrb[12].mxu1 %v1453_v20 }
  0x94   : >> { %1752 = vmatprep.subr.bf16.mxu0 %v1880_v2  ;;  %1766 = vmatprep.mubr.msk.bf16.mxu0 %vm1881_vm0, %v1880_v2 }
  0x97   : >> { %1753 = vmatpush3.bf16.msra.mxu0 %v1856_v21 }
  0x98   : >> { %1754 = vmatprep.subr.bf16.mxu0 %v1880_v2 }
  0x9b   : >> { %1755 = vmatpush3.bf16.msra.mxu0 %v1857_v22 }
  0x9c   : >> { %1756 = vmatprep.subr.bf16.mxu0 %v1880_v2 }
  0x9f   : >> { %1757 = vmatpush3.bf16.msra.mxu0 %v1858_v23 }
  0xa0   : >> { %1758 = vmatprep.subr.bf16.mxu0 %v1880_v2 }
  0xa3   : >> { %1759 = vmatpush3.bf16.msra.mxu0 %v1859_v24 }
  0xa4   : >> { %1760 = vmatprep.subr.bf16.mxu0 %v1880_v2 }
  0xa7   : >> { %1761 = vmatpush3.bf16.msra.mxu0 %v1860_v26 }
  0xa8   : >> { %1762 = vmatprep.subr.bf16.mxu0 %v1880_v2 }
  0xab   : >> { %1763 = vmatpush3.bf16.msra.mxu0 %v1861_v28 }
  0xac   : >> { %1764 = vmatprep.subr.bf16.mxu0 %v1880_v2 }
  0xaf   : >> { %1765 = vmatpush3.bf16.msra.mxu0 %v1862_v31 }
  0xb2   : >> { %1767 = vmatmul.mubr.bf16.vlgmr.msra.gmra.mrb[16].mxu0 %v1098_v32 }
 0x105   : >> { %v301_v33 = vpop.f32.mrb[0].mxu0 }
 0x106   : >> { %v1608_v34 = vpop.f32.mrb[1].mxu0  ;;  %v389_v35 = vpop.f32.mrb[0].mxu1 }
 0x107   : >> { %v390_v36 = vadd.f32 %v389_v35, %v301_v33  ;;  %v304_v37 = vpop.f32.mrb[2].mxu0  ;;  %v1628_v38 = vpop.f32.mrb[1].mxu1 }
 0x108   : >> { %v1609_v39 = vpop.f32.mrb[3].mxu0  ;;  %v392_v40 = vpop.f32.mrb[2].mxu1 }
 0x109   : >> { %v1629_v41 = vpop.f32.mrb[3].mxu1 }
 0x125   : >> { %v506_v42 = vpop.f32.mrb[4].mxu0 }
 0x126   : >> { %v512_v43 = vadd.f32 %v506_v42, %v390_v36  ;;  %v1648_v44 = vpop.f32.mrb[5].mxu0  ;;  %v616_v45 = vpop.f32.mrb[4].mxu1 }
 0x127   : >> { %v509_v46 = vpop.f32.mrb[6].mxu0  ;;  %v1668_v47 = vpop.f32.mrb[5].mxu1 }
 0x128   : >> { %v622_v48 = vadd.f32 %v616_v45, %v512_v43  ;;  %v1649_v2 = vpop.f32.mrb[7].mxu0  ;;  %v619_v49 = vpop.f32.mrb[6].mxu1 }
 0x129   : >> { %v1669_v50 = vpop.f32.mrb[7].mxu1 }
 0x145   : >> { %v726_v51 = vpop.f32.mrb[8].mxu0 }
 0x146   : >> { %v732_v52 = vadd.f32 %v726_v51, %v622_v48  ;;  %v1688_v53 = vpop.f32.mrb[9].mxu0  ;;  %v844_v54 = vpop.f32.mrb[8].mxu1 }
 0x147   : >> { %v729_v55 = vpop.f32.mrb[10].mxu0  ;;  %v1708_v56 = vpop.f32.mrb[9].mxu1 }
 0x148   : >> { %v850_v57 = vadd.f32 %v844_v54, %v732_v52  ;;  %v1689_v58 = vpop.f32.mrb[11].mxu0  ;;  %v847_v59 = vpop.f32.mrb[10].mxu1 }
 0x149   : >> { %v1709_v60 = vpop.f32.mrb[11].mxu1 }
 0x165   : >> { %v954_v61 = vpop.f32.mrb[12].mxu0 }
 0x166   : >> { %v960_v62 = vadd.f32 %v954_v61, %v850_v57  ;;  %v1728_v63 = vpop.f32.mrb[13].mxu0  ;;  %v1064_v1 = vpop.f32.mrb[12].mxu1 }
 0x167   : >> { %v957_v3 = vpop.f32.mrb[14].mxu0  ;;  %v1748_v4 = vpop.f32.mrb[13].mxu1 }
 0x168   : >> { %v1070_v5 = vadd.f32 %v1064_v1, %v960_v62  ;;  %v1729_v6 = vpop.f32.mrb[15].mxu0  ;;  %v1067_v7 = vpop.f32.mrb[14].mxu1 }
 0x169   : >> { %v1749_v8 = vpop.f32.mrb[15].mxu1 }
 0x185   : >> { %v1182_v9 = vpop.f32.mrb[16].mxu0 }
 0x186   : >> { %v1188_v10 = vadd.f32 %v1182_v9, %v1070_v5  ;;  %v1768_v11 = vpop.f32.mrb[17].mxu0 }
 0x187   : >> { %v1185_v12 = vpop.f32.mrb[18].mxu0 }
 0x188   : >> { %v1195_v13 = vadd.f32 %v1913_v0, %v1188_v10  ;;  %v1769_v14 = vpop.f32.mrb[19].mxu0  ;;  %177 = sbr.rel (!%p175_p4) target bundleno = 17 (0x11), region = 84 }
 0x18a   : >> { %v1196_v15 = vmax.f32 %v1195_v13, 0.0 }
 0x18c   : >> { %v1197_v16 = vpack.c.bf16 %v1196_v15, %v1196_v15 }
 0x18e   : >> { %1200 = vst [vmem:[%s1199_s11] sm:$0x3] %v1197_v16 }
 0x18f PF: > { %s13_s12 = sadd.s32 1, %s1874_s12  }
 0x190   : > { %p10_p5 = scmp.ge.s32.totalorder %s13_s12, 4  }
 0x192   :  { %12 = sbr.rel (!%p10_p5) target bundleno = 1 (0x1), region = 95 }

// kernel: snow_forward.7
= control target key start
LH: loop header
LB: loop body
LE: loop exit
PB: predicated region body
PF: predicated region fallthrough
CT: control target
= control target key end

     0   :  { %s2913_s0 = inlined_call_operand.vmem [shape: bf16[2,256,128], index: 0, kind: input, shape index: {}]   ;;  %s2914_s1 = inlined_call_operand.vmem [shape: bf16[2,64,128], index: 1, kind: input, shape index: {}]   ;;  %s2915_s2 = inlined_call_operand.vmem [shape: bf16[2,16,128], index: 2, kind: input, shape index: {}]   ;;  %s2916_s3 = inlined_call_operand.vmem [shape: bf16[128,128], index: 3, kind: input, shape index: {}]   ;;  %s2917_s4 = inlined_call_operand.vmem [shape: f32[1,128], index: 4, kind: input, shape index: {}]   ;;  %s2918_s5 = inlined_call_operand.vmem [shape: bf16[128,128], index: 5, kind: input, shape index: {}]   ;;  %s2919_s6 = inlined_call_operand.vmem [shape: f32[1,128], index: 6, kind: input, shape index: {}]   ;;  %s2920_s7 = inlined_call_operand.vmem [shape: bf16[128,128], index: 7, kind: input, shape index: {}]   ;;  %s2921_s8 = inlined_call_operand.vmem [shape: f32[1,128], index: 8, kind: input, shape index: {}]   ;;  %s2922_s9 = inlined_call_operand.vmem [shape: f32[384,128], index: 9, kind: input, shape index: {}]   ;;  %s2923_s10 = inlined_call_operand.vmem [shape: f32[1,128], index: 10, kind: input, shape index: {}]   ;;  %s2924_s11 = inlined_call_operand.vmem [shape: f32[128,128], index: 11, kind: input, shape index: {}]   ;;  %s2925_s12 = inlined_call_operand.vmem [shape: f32[1,128], index: 12, kind: input, shape index: {}]   ;;  %s2926_s13 = inlined_call_operand.hbm [shape: f32[2,1,128], index: 13, kind: output, shape index: {}]  }
   0x1   :  { %2928 = sst [smem:[#allocation7_spill]] %s2913_s0 }
   0x2   :  { %2929 = sst [smem:[#allocation8_spill]] %s2914_s1 }
   0x3   :  { %2930 = sst [smem:[#allocation9_spill]] %s2916_s3 }
   0x4   :  { %18 = vsyncpa [#allocation3], 0 }
   0x5   :  { %20 = vsyncpa [#allocation3 + $0x1], 0  ;;  %s2407_s25 = smov 0   ;;  %s2409_s26 = smov 0  }
   0x6   :  { %s2411_s27 = smov 0   ;;  %s2413_s28 = smov 0  }
   0x7 LB: > { %2931 = sst [smem:[#allocation5_spill]] %s2327_s27  ;;  %s2428_s29 = sadd.s32 4294967295, %s2331_s28   ;;  %s2331_s28 = sphi %s2413_s28, %s2942_s28   ;;  %s2327_s27 = sphi %s2411_s27, %s2939_s27   ;;  %s2323_s26 = sphi %s2409_s26, %s2941_s26   ;;  %s2319_s25 = sphi %s2407_s25, %s2940_s25  }
   0x8   : > { %s1672_s30 = sadd.s32 4294967294, %s2331_s28   ;;  %s2432_s14 = sadd.s32 1, %s2331_s28  }
   0x9   : > { %s321_s15 = sadd.s32 1, %s2327_s27  ;;  %s318_s16 = ssub.s32 %s2331_s28, %s2432_s14 }
   0xa   : > { %p331_p0 = scmp.ne.s32.totalorder %s2327_s27, %s2323_s26  ;;  %p319_p1 = scmp.eq.s32.totalorder %s318_s16, 0 }
   0xb   : > { %p332_p2 = scmp.eq.s32.totalorder %s2428_s29, 1  ;;  %p337_p3 = scmp.ne.s32.totalorder %s2323_s26, %s2319_s25 }
   0xc   : > { %p338_p4 = scmp.eq.s32.totalorder %s1672_s30, 1  ;;  %p1675_p7 = scmp.ge.s32.totalorder %s2331_s28, 1 }
   0xd   : > { %s2443_s17 = scalar_select %p319_p1, %s2327_s27, %s321_s15  }
   0xe   : > { %p2445_p5 = por %p332_p2, %p331_p0  ;;  %p2449_p6 = por %p338_p4, %p337_p3 }
   0xf   : > { %2932 = sst [smem:[#allocation6_spill]] %s2443_s17  ;;  %p410_p8 = scmp.lt.s32.totalorder %s2331_s28, 3 }
  0x11   : > { %p411_p9 = pnand %p1675_p7, %p410_p8 }
  0x12   : > { %s2935_s3 = sld [smem:[#allocation9_spill]] (!%p411_p9)  ;;  %p463_p10 = scmp.lt.s32.totalorder (!%p411_p9), %s2428_s29, 1  ;;  %v910_v24 = vld [vmem:[%s2922_s9] sm:$0xff] (!%p411_p9)  ;;  %v911_v25 = vld [vmem:[%s2922_s9 + $0x8] sm:$0xff] (!%p411_p9)  ;;  %v2333_v27 = vmov (!%p411_p9), 0.0|0.0   ;;  %v912_v28 = vld [vmem:[%s2922_s9 + $0x10] sm:$0xff] (!%p411_p9) }
  0x13   : > { %414 = sbr.rel (%p411_p9) target bundleno = 1107 (0x453), region = 72  ;;  %s2936_s0 = sld [smem:[#allocation7_spill]] (!%p411_p9)  ;;  %v2082_v26 = vpack.c.bf16 (!%p411_p9), %v911_v25, %v910_v24  ;;  %2081 = vmatprep.subr.bf16.mxu1 (!%p411_p9), %v2333_v27  ;;  %v913_v29 = vld [vmem:[%s2922_s9 + $0x18] sm:$0xff] (!%p411_p9)  ;;  %v914_v31 = vld [vmem:[%s2922_s9 + $0x20] sm:$0xff] (!%p411_p9)  ;;  %v915_v32 = vld [vmem:[%s2922_s9 + $0x28] sm:$0xff] (!%p411_p9)  ;;  %vm2334_vm0 = vmmov (!%p411_p9), 0  }
  0x14   : > { %v2085_v30 = vpack.c.bf16 (!%p411_p9), %v913_v29, %v912_v28  ;;  %v2088_v33 = vpack.c.bf16 (!%p411_p9), %v915_v32, %v914_v31  ;;  %v916_v34 = vld [vmem:[%s2922_s9 + $0x30] sm:$0xff] (!%p411_p9)  ;;  %v917_v35 = vld [vmem:[%s2922_s9 + $0x38] sm:$0xff] (!%p411_p9)  ;;  %v918_v37 = vld [vmem:[%s2922_s9 + $0x40] sm:$0xff] (!%p411_p9)  ;;  %v2335_v45 = vmov (!%p411_p9), 0.0   ;;  %s2937_s1 = sld [smem:[#allocation8_spill]] (!%p411_p9)  ;;  %s461_s20 = sand.u32 (!%p411_p9), 1, %s2323_s26  }
  0x15   : > { %2083 = vmatpush3.bf16.msra.mxu1 (!%p411_p9), %v2082_v26  ;;  %v2091_v36 = vpack.c.bf16 (!%p411_p9), %v917_v35, %v916_v34  ;;  %v919_v38 = vld [vmem:[%s2922_s9 + $0x48] sm:$0xff] (!%p411_p9)  ;;  %v920_v40 = vld [vmem:[%s2922_s9 + $0x50] sm:$0xff] (!%p411_p9)  ;;  %v921_v41 = vld [vmem:[%s2922_s9 + $0x58] sm:$0xff] (!%p411_p9)  ;;  %1929 = vmatprep.mubr.msk.f32.mxu1 (!%p411_p9), %vm2334_vm0, %v2335_v45  ;;  %s1730_s22 = sshll.u32 (!%p411_p9), %s2428_s29, 4  ;;  %s1581_s27 = scalar_lea.sflag (!%p411_p9), [#allocation3], %s461_s20 }
  0x16   : > { %2084 = vmatprep.subr.bf16.mxu1 (!%p411_p9), %v2333_v27  ;;  %v2094_v39 = vpack.c.bf16 (!%p411_p9), %v919_v38, %v918_v37  ;;  %v2097_v42 = vpack.c.bf16 (!%p411_p9), %v921_v41, %v920_v40  ;;  %v922_v43 = vld [vmem:[%s2922_s9 + $0x60] sm:$0xff] (!%p411_p9)  ;;  %v923_v44 = vld [vmem:[%s2922_s9 + $0x68] sm:$0xff] (!%p411_p9)  ;;  %v924_v47 = vld [vmem:[%s2922_s9 + $0x70] sm:$0xff] (!%p411_p9) }
  0x17   : > { %v2100_v46 = vpack.c.bf16 (!%p411_p9), %v923_v44, %v922_v43  ;;  %v925_v48 = vld [vmem:[%s2922_s9 + $0x78] sm:$0xff] (!%p411_p9)  ;;  %v2569_v50 = vld [vmem:[%s2918_s5] sm:$0xff] (!%p411_p9)   ;;  %v2255_v52 = vld [vmem:[%s2920_s7 + $0x8] sm:$0xff] (!%p411_p9)  }
  0x18   : > { %v2224_v0 = vld [vmem:[%s2935_s3] sm:$0xff] (!%p411_p9)   ;;  %v2225_v1 = vld [vmem:[%s2935_s3 + $0x8] sm:$0xff] (!%p411_p9)   ;;  %v2226_v2 = vld [vmem:[%s2935_s3 + $0x10] sm:$0xff] (!%p411_p9)   ;;  %v2103_v49 = vpack.c.bf16 (!%p411_p9), %v925_v48, %v924_v47 }
  0x19   : > { %1849 = vmatprep.subr.bf16.mxu0 (!%p411_p9), %v2224_v0  ;;  %v2227_v3 = vld [vmem:[%s2935_s3 + $0x18] sm:$0xff] (!%p411_p9)   ;;  %v2228_v5 = vld [vmem:[%s2935_s3 + $0x20] sm:$0xff] (!%p411_p9)   ;;  %v2229_v6 = vld [vmem:[%s2935_s3 + $0x28] sm:$0xff] (!%p411_p9)   ;;  %2086 = vmatpush3.bf16.msra.mxu1 (!%p411_p9), %v2085_v30 }
  0x1a   : > { %s2463_s24 = scalar_select %p463_p10, %s2428_s29, 1  ;;  %1850 = vmatpush3.bf16.msra.mxu0 %v2224_v0  ;;  %v2230_v7 = vld [vmem:[%s2935_s3 + $0x30] sm:$0xff]   ;;  %v2231_v8 = vld [vmem:[%s2935_s3 + $0x38] sm:$0xff]   ;;  %2087 = vmatprep.subr.bf16.mxu1 %v2333_v27  ;;  %v2252_v51 = vld [vmem:[%s2920_s7] sm:$0xff]  }
  0x1b   : > { %1851 = vmatprep.subr.bf16.mxu0 %v2225_v1  ;;  %v2258_v53 = vld [vmem:[%s2920_s7 + $0x10] sm:$0xff]   ;;  %v2261_v54 = vld [vmem:[%s2920_s7 + $0x18] sm:$0xff]   ;;  %v2264_v55 = vld [vmem:[%s2920_s7 + $0x20] sm:$0xff]   ;;  %s2336_s29 = smov [#allocation2]  }
  0x1c   : > { %s1733_s16 = sshll.u32 %s2463_s24, 7  ;;  %s1734_s23 = sshll.u32 %s2463_s24, 5  ;;  %v2265_v56 = vld [vmem:[%s2920_s7 + $0x28] sm:$0xff]   ;;  %v2607_v57 = vld [vmem:[%s2917_s4] ss:$0 sm:$0xff]  ;;  %v2266_v62 = vld [vmem:[%s2920_s7 + $0x30] sm:$0xff]  }
  0x1d   : > { %s2472_s17 = scalar_lea.vmem %s2936_s0, %s1733_s16  ;;  %2089 = vmatpush3.bf16.msra.mxu1 %v2088_v33  ;;  %s2587_s15 = scalar_lea.vmem %s2937_s1, %s1734_s23 }
  0x1e   : > { %1852 = vmatpush3.bf16.msra.mxu0 %v2225_v1  ;;  %v2232_v4 = vld [vmem:[%s2472_s17] sm:$0xff]   ;;  %v2233_v9 = vld [vmem:[%s2472_s17 + $0x8] sm:$0xff]   ;;  %v2234_v10 = vld [vmem:[%s2472_s17 + $0x10] sm:$0xff]   ;;  %2090 = vmatprep.subr.bf16.mxu1 %v2333_v27  ;;  %s1735_s21 = sshll.u32 %s2463_s24, 3  ;;  %s2273_s1 = sshll.u32 %s2336_s29, 4  ;;  %s2274_s1 = int_to_ptr.vmem [resolvable:$false] %s2273_s1 }
  0x1f   : > { %1853 = vmatprep.subr.bf16.mxu0 %v2226_v2  ;;  %1865 = vmatprep.mubr.bf16.mxu0 %v2232_v4  ;;  %v2235_v11 = vld [vmem:[%s2472_s17 + $0x18] sm:$0xff]   ;;  %v2236_v12 = vld [vmem:[%s2472_s17 + $0x20] sm:$0xff]   ;;  %v2237_v13 = vld [vmem:[%s2472_s17 + $0x28] sm:$0xff]   ;;  %s2275_s16 = scalar_lea.vmem %s2274_s1, 32 }
  0x20   : > { %v2238_v14 = vld [vmem:[%s2472_s17 + $0x30] sm:$0xff]   ;;  %v2239_v15 = vld [vmem:[%s2472_s17 + $0x38] sm:$0xff]   ;;  %v2240_v16 = vld [vmem:[%s2472_s17 + $0x40] sm:$0xff]  }
  0x21   : > { %v2241_v17 = vld [vmem:[%s2472_s17 + $0x48] sm:$0xff]   ;;  %v2242_v18 = vld [vmem:[%s2472_s17 + $0x50] sm:$0xff]   ;;  %v2243_v19 = vld [vmem:[%s2472_s17 + $0x58] sm:$0xff]   ;;  %2092 = vmatpush3.bf16.msra.mxu1 %v2091_v36 }
  0x22   : > { %1854 = vmatpush3.bf16.msra.mxu0 %v2226_v2  ;;  %v2244_v20 = vld [vmem:[%s2472_s17 + $0x60] sm:$0xff]   ;;  %v2245_v21 = vld [vmem:[%s2472_s17 + $0x68] sm:$0xff]   ;;  %v2246_v22 = vld [vmem:[%s2472_s17 + $0x70] sm:$0xff]   ;;  %2093 = vmatprep.subr.bf16.mxu1 %v2333_v27 }
  0x23   : > { %1855 = vmatprep.subr.bf16.mxu0 %v2227_v3  ;;  %v2247_v23 = vld [vmem:[%s2472_s17 + $0x78] sm:$0xff]   ;;  %s477_s17 = scalar_lea.vmem %s2915_s2, %s1735_s21 }
  0x25   : > { %2095 = vmatpush3.bf16.msra.mxu1 %v2094_v39 }
  0x26   : > { %1856 = vmatpush3.bf16.msra.mxu0 %v2227_v3  ;;  %2096 = vmatprep.subr.bf16.mxu1 %v2333_v27 }
  0x27   : > { %1857 = vmatprep.subr.bf16.mxu0 %v2228_v5 }
  0x29   : > { %2098 = vmatpush3.bf16.msra.mxu1 %v2097_v42 }
  0x2a   : > { %1858 = vmatpush3.bf16.msra.mxu0 %v2228_v5  ;;  %2099 = vmatprep.subr.bf16.mxu1 %v2333_v27  ;;  %v2267_v5 = vld [vmem:[%s2920_s7 + $0x38] sm:$0xff]  }
  0x2b   : > { %1859 = vmatprep.subr.bf16.mxu0 %v2229_v6 }
  0x2d   : > { %2101 = vmatpush3.bf16.msra.mxu1 %v2100_v46 }
  0x2e   : > { %1860 = vmatpush3.bf16.msra.mxu0 %v2229_v6  ;;  %2102 = vmatprep.subr.bf16.mxu1 %v2333_v27 }
  0x2f   : > { %1861 = vmatprep.subr.bf16.mxu0 %v2230_v7 }
  0x31   : > { %2104 = vmatpush3.bf16.msra.mxu1 %v2103_v49 }
  0x32   : > { %1862 = vmatpush3.bf16.msra.mxu0 %v2230_v7  ;;  %1932 = vmatprep.subr.bf16.mxu1 %v2569_v50 }
  0x33   : > { %1863 = vmatprep.subr.bf16.mxu0 %v2231_v8 }
  0x36   : > { %1864 = vmatpush3.bf16.msra.mxu0 %v2231_v8 }
  0x37   : > { %1991 = vmatprep.subr.bf16.mxu0 %v2335_v45 }
  0x39   : > { %1866 = vmatmul.mubr.bf16.vlgmr.msra.gmra.mrb[0].mxu0 %v2233_v9 }
  0x3a   : > { %1869 = vmatprep.mubr.bf16.mxu0 %v2234_v10  ;;  %1992 = vmatpush3.bf16.msra.mxu0 %v2252_v51  ;;  %v2268_v10 = vld [vmem:[%s477_s17] sm:$0xff]   ;;  %s462_s17 = scalar_lea.vmem [#allocation2], %s461_s20 }
  0x3b   : > { %1993 = vmatprep.subr.bf16.mxu0 %v2335_v45  ;;  %s1593_s23 = sshll.u32 %s462_s17, 4  ;;  %s2873_s23 = int_to_ptr.vmem [resolvable:$true] %s1593_s23 }
  0x3c   : > { %s2269_s24 = scalar_lea.vmem %s2873_s23, 16  ;;  %p2276_p0 = scmp.lt.s32.totalorder %s2873_s23, %s2274_s1 }
  0x3d   : > { %p2270_p11 = scmp.ne.s32.totalorder %s2873_s23, %s2269_s24  ;;  %p2277_p1 = scmp.lt.s32.totalorder %s2275_s16, %s2269_s24 }
  0x3e   : > { %1994 = vmatpush3.bf16.msra.mxu0 %v2255_v52 }
  0x3f   : > { %1995 = vmatprep.subr.bf16.mxu0 %v2335_v45  ;;  %p2271_p12 = pnand %p2270_p11, %p2445_p5  ;;  %p2278_p2 = por %p2277_p1, %p2276_p0 }
  0x41   : > { %1870 = vmatmul.mubr.bf16.gmra.mrb[4].mxu0 %v2235_v11  ;;  %p2272_p13 = pneg %p2271_p12 }
  0x42   : > { %1873 = vmatprep.mubr.bf16.mxu0 %v2236_v12  ;;  %1996 = vmatpush3.bf16.msra.mxu0 %v2258_v53 }
  0x43   : > { %1997 = vmatprep.subr.bf16.mxu0 %v2335_v45  ;;  %p2279_p3 = pnand %p2278_p2, %p2272_p13 }
  0x46   : > { %1998 = vmatpush3.bf16.msra.mxu0 %v2261_v54 }
  0x47   : > { %1999 = vmatprep.subr.bf16.mxu0 %v2335_v45 }
  0x49   : > { %1874 = vmatmul.mubr.bf16.gmra.mrb[8].mxu0 %v2237_v13 }
  0x4a   : > { %1877 = vmatprep.mubr.bf16.mxu0 %v2238_v14  ;;  %2000 = vmatpush3.bf16.msra.mxu0 %v2264_v55 }
  0x4b   : > { %2001 = vmatprep.subr.bf16.mxu0 %v2335_v45 }
  0x4e   : > { %2002 = vmatpush3.bf16.msra.mxu0 %v2265_v56 }
  0x4f   : > { %2003 = vmatprep.subr.bf16.mxu0 %v2335_v45 }
  0x51   : > { %1878 = vmatmul.mubr.bf16.gmra.mrb[12].mxu0 %v2239_v15 }
  0x52   : > { %1881 = vmatprep.mubr.bf16.mxu0 %v2240_v16  ;;  %2004 = vmatpush3.bf16.msra.mxu0 %v2266_v62 }
  0x53   : > { %2005 = vmatprep.subr.bf16.mxu0 %v2335_v45 }
  0x56   : > { %2006 = vmatpush3.bf16.msra.mxu0 %v2267_v5 }
  0x57   : > { %2153 = vmatprep.subr.bf16.mxu0 %v2333_v27 }
  0x59   : > { %1882 = vmatmul.mubr.bf16.gmra.mrb[16].mxu0 %v2241_v17 }
  0x5a   : > { %1885 = vmatprep.mubr.bf16.mxu0 %v2242_v18 }
  0x61   : > { %1886 = vmatmul.mubr.bf16.gmra.mrb[20].mxu0 %v2243_v19 }
  0x62   : > { %1889 = vmatprep.mubr.bf16.mxu0 %v2244_v20 }
  0x69   : > { %1890 = vmatmul.mubr.bf16.gmra.mrb[24].mxu0 %v2245_v21 }
  0x6a   : > { %1893 = vmatprep.mubr.bf16.mxu0 %v2246_v22 }
  0x71   : > { %1894 = vmatmul.mubr.bf16.gmra.mrb[28].mxu0 %v2247_v23 }
  0x72   : > { %2007 = vmatprep.mubr.msk.bf16.mxu0 %vm2334_vm0, %v2335_v45 }
  0x79   : > { %2008 = vmatmul.mubr.bf16.vlgmr.msra.gmra.mrb[32].mxu0 %v2268_v10 }
  0x7a   : > { %2078 = vmatprep.mubr.msk.f32.mxu0 %vm2334_vm0, %v2335_v45 }
 0x10c   : > { %v1867_v58 = vpop.f32.mrb[0].mxu0 }
 0x10d   : > { %v713_v59 = vpop.f32.mrb[1].mxu0  ;;  %v722_v0 = vadd.f32 %v1867_v58, %v2607_v57 }
 0x10e   : > { %v714_v60 = vadd.f32 %v2607_v57, %v713_v59  ;;  %v1868_v61 = vpop.f32.mrb[2].mxu0 }
 0x10f   : > { %v716_v63 = vpop.f32.mrb[3].mxu0  ;;  %v725_v3 = vadd.f32 %v1868_v61, %v2607_v57  ;;  %v842_v6 = vmax.f32 %v722_v0, 0.0 }
 0x110   : > { %v717_v1 = vadd.f32 %v2607_v57, %v716_v63  ;;  %v840_v2 = vmax.f32 %v714_v60, 0.0 }
 0x111   : > { %v843_v11 = vmax.f32 %v725_v3, 0.0 }
 0x112   : > { %v841_v4 = vmax.f32 %v717_v1, 0.0 }
 0x114   : > { %v872_v7 = vadd.f32 %v841_v4, %v840_v2  ;;  %v1871_v8 = vpop.f32.mrb[4].mxu0 }
 0x115   : > { %v729_v9 = vpop.f32.mrb[5].mxu0  ;;  %v738_v16 = vadd.f32 %v1871_v8, %v2607_v57 }
 0x116   : > { %v873_v12 = vadd.f32 %v872_v7, %v842_v6  ;;  %v730_v13 = vadd.f32 %v2607_v57, %v729_v9  ;;  %v1872_v14 = vpop.f32.mrb[6].mxu0 }
 0x117   : > { %v732_v15 = vpop.f32.mrb[7].mxu0  ;;  %v741_v21 = vadd.f32 %v1872_v14, %v2607_v57  ;;  %v846_v23 = vmax.f32 %v738_v16, 0.0 }
 0x118   : > { %v844_v17 = vmax.f32 %v730_v13, 0.0  ;;  %v874_v18 = vadd.f32 %v873_v12, %v843_v11  ;;  %v733_v19 = vadd.f32 %v2607_v57, %v732_v15 }
 0x119   : > { %v847_v28 = vmax.f32 %v741_v21, 0.0 }
 0x11a   : > { %v875_v20 = vadd.f32 %v874_v18, %v844_v17  ;;  %v845_v22 = vmax.f32 %v733_v19, 0.0 }
 0x11c   : > { %v876_v24 = vadd.f32 %v875_v20, %v845_v22  ;;  %v1875_v25 = vpop.f32.mrb[8].mxu0 }
 0x11d   : > { %v745_v26 = vpop.f32.mrb[9].mxu0  ;;  %v754_v33 = vadd.f32 %v1875_v25, %v2607_v57 }
 0x11e   : > { %v877_v29 = vadd.f32 %v876_v24, %v846_v23  ;;  %v746_v30 = vadd.f32 %v2607_v57, %v745_v26  ;;  %v1876_v31 = vpop.f32.mrb[10].mxu0 }
 0x11f   : > { %v748_v32 = vpop.f32.mrb[11].mxu0  ;;  %v757_v38 = vadd.f32 %v1876_v31, %v2607_v57  ;;  %v850_v40 = vmax.f32 %v754_v33, 0.0 }
 0x120   : > { %v848_v34 = vmax.f32 %v746_v30, 0.0  ;;  %v878_v35 = vadd.f32 %v877_v29, %v847_v28  ;;  %v749_v36 = vadd.f32 %v2607_v57, %v748_v32 }
 0x121   : > { %v851_v44 = vmax.f32 %v757_v38, 0.0 }
 0x122   : > { %v879_v37 = vadd.f32 %v878_v35, %v848_v34  ;;  %v849_v39 = vmax.f32 %v749_v36, 0.0 }
 0x124   : > { %v880_v41 = vadd.f32 %v879_v37, %v849_v39  ;;  %v1879_v42 = vpop.f32.mrb[12].mxu0 }
 0x125   : > { %v761_v43 = vpop.f32.mrb[13].mxu0  ;;  %v770_v51 = vadd.f32 %v1879_v42, %v2607_v57 }
 0x126   : > { %v881_v46 = vadd.f32 %v880_v41, %v850_v40  ;;  %v762_v47 = vadd.f32 %v2607_v57, %v761_v43  ;;  %v1880_v48 = vpop.f32.mrb[14].mxu0 }
 0x127   : > { %v764_v49 = vpop.f32.mrb[15].mxu0  ;;  %v773_v56 = vadd.f32 %v1880_v48, %v2607_v57  ;;  %v854_v59 = vmax.f32 %v770_v51, 0.0 }
 0x128   : > { %v852_v52 = vmax.f32 %v762_v47, 0.0  ;;  %v882_v53 = vadd.f32 %v881_v46, %v851_v44  ;;  %v765_v54 = vadd.f32 %v2607_v57, %v764_v49 }
 0x129   : > { %v855_v63 = vmax.f32 %v773_v56, 0.0 }
 0x12a   : > { %v883_v55 = vadd.f32 %v882_v53, %v852_v52  ;;  %v853_v58 = vmax.f32 %v765_v54, 0.0 }
 0x12c   : > { %v884_v60 = vadd.f32 %v883_v55, %v853_v58  ;;  %v1883_v61 = vpop.f32.mrb[16].mxu0 }
 0x12d   : > { %v777_v62 = vpop.f32.mrb[17].mxu0  ;;  %v786_v4 = vadd.f32 %v1883_v61, %v2607_v57 }
 0x12e   : > { %v885_v0 = vadd.f32 %v884_v60, %v854_v59  ;;  %v778_v1 = vadd.f32 %v2607_v57, %v777_v62  ;;  %v1884_v2 = vpop.f32.mrb[18].mxu0 }
 0x12f   : > { %v780_v3 = vpop.f32.mrb[19].mxu0  ;;  %v789_v9 = vadd.f32 %v1884_v2, %v2607_v57  ;;  %v858_v11 = vmax.f32 %v786_v4, 0.0 }
 0x130   : > { %v856_v5 = vmax.f32 %v778_v1, 0.0  ;;  %v886_v6 = vadd.f32 %v885_v0, %v855_v63  ;;  %v781_v7 = vadd.f32 %v2607_v57, %v780_v3 }
 0x131   : > { %v859_v15 = vmax.f32 %v789_v9, 0.0 }
 0x132   : > { %v887_v8 = vadd.f32 %v886_v6, %v856_v5  ;;  %v857_v10 = vmax.f32 %v781_v7, 0.0 }
 0x134   : > { %v888_v12 = vadd.f32 %v887_v8, %v857_v10  ;;  %v1887_v13 = vpop.f32.mrb[20].mxu0  ;;  %v2259_v10 = vld [vmem:[%s2587_s15] sm:$0xff]  }
 0x135   : > { %v793_v14 = vpop.f32.mrb[21].mxu0  ;;  %v802_v20 = vadd.f32 %v1887_v13, %v2607_v57  ;;  %v2251_v13 = vld [vmem:[%s2918_s5 + $0x18] sm:$0xff]  }
 0x136   : > { %v889_v16 = vadd.f32 %v888_v12, %v858_v11  ;;  %v794_v17 = vadd.f32 %v2607_v57, %v793_v14  ;;  %v1888_v18 = vpop.f32.mrb[22].mxu0  ;;  %v2249_v12 = vld [vmem:[%s2918_s5 + $0x8] sm:$0xff]  }
 0x137   : > { %v796_v19 = vpop.f32.mrb[23].mxu0  ;;  %v805_v25 = vadd.f32 %v1888_v18, %v2607_v57  ;;  %v862_v28 = vmax.f32 %v802_v20, 0.0  ;;  %v2254_v14 = vld [vmem:[%s2918_s5 + $0x28] sm:$0xff]   ;;  %v2262_v18 = vld [vmem:[%s2587_s15 + $0x10] sm:$0xff]   ;;  %v1187_v20 = vld [vmem:[%s2922_s9 + $0x80] sm:$0xff] }
 0x138   : > { %v860_v21 = vmax.f32 %v794_v17, 0.0  ;;  %v890_v22 = vadd.f32 %v889_v16, %v859_v15  ;;  %v797_v23 = vadd.f32 %v2607_v57, %v796_v19  ;;  %v2256_v15 = vld [vmem:[%s2918_s5 + $0x30] sm:$0xff]   ;;  %v2257_v16 = vld [vmem:[%s2918_s5 + $0x38] sm:$0xff]   ;;  %v2260_v17 = vld [vmem:[%s2587_s15 + $0x8] sm:$0xff]  }
 0x139   : > { %v863_v32 = vmax.f32 %v805_v25, 0.0  ;;  %v2263_v19 = vld [vmem:[%s2587_s15 + $0x18] sm:$0xff]   ;;  %s2871_s15 = scalar_lea.hbm %s2926_s13, %s1730_s22 }
 0x13a   : > { %v891_v24 = vadd.f32 %v890_v22, %v860_v21  ;;  %v861_v26 = vmax.f32 %v797_v23, 0.0  ;;  %v1188_v21 = vld [vmem:[%s2922_s9 + $0x88] sm:$0xff]  ;;  %v1189_v23 = vld [vmem:[%s2922_s9 + $0x90] sm:$0xff] }
 0x13b   : > { %v2106_v22 = vpack.c.bf16 %v1188_v21, %v1187_v20 }
 0x13c   : > { %v892_v29 = vadd.f32 %v891_v24, %v861_v26  ;;  %v1891_v30 = vpop.f32.mrb[24].mxu0  ;;  %v1190_v24 = vld [vmem:[%s2922_s9 + $0x98] sm:$0xff]  ;;  %v1191_v26 = vld [vmem:[%s2922_s9 + $0xa0] sm:$0xff] }
 0x13d   : > { %v809_v31 = vpop.f32.mrb[25].mxu0  ;;  %v818_v37 = vadd.f32 %v1891_v30, %v2607_v57  ;;  %v2109_v25 = vpack.c.bf16 %v1190_v24, %v1189_v23  ;;  %v1193_v30 = vld [vmem:[%s2922_s9 + $0xb0] sm:$0xff] }
 0x13e   : > { %v893_v33 = vadd.f32 %v892_v29, %v862_v28  ;;  %v810_v34 = vadd.f32 %v2607_v57, %v809_v31  ;;  %v1892_v35 = vpop.f32.mrb[26].mxu0  ;;  %v1192_v28 = vld [vmem:[%s2922_s9 + $0xa8] sm:$0xff]  ;;  %v1194_v31 = vld [vmem:[%s2922_s9 + $0xb8] sm:$0xff] }
 0x13f   : > { %v812_v36 = vpop.f32.mrb[27].mxu0  ;;  %v821_v42 = vadd.f32 %v1892_v35, %v2607_v57  ;;  %v866_v44 = vmax.f32 %v818_v37, 0.0  ;;  %v2112_v29 = vpack.c.bf16 %v1192_v28, %v1191_v26  ;;  %v1198_v37 = vld [vmem:[%s2922_s9 + $0xd8] sm:$0xff] }
 0x140   : > { %v864_v38 = vmax.f32 %v810_v34, 0.0  ;;  %v894_v39 = vadd.f32 %v893_v33, %v863_v32  ;;  %v813_v40 = vadd.f32 %v2607_v57, %v812_v36  ;;  %v2115_v32 = vpack.c.bf16 %v1194_v31, %v1193_v30  ;;  %v1195_v33 = vld [vmem:[%s2922_s9 + $0xc0] sm:$0xff]  ;;  %v1196_v34 = vld [vmem:[%s2922_s9 + $0xc8] sm:$0xff]  ;;  %v1197_v36 = vld [vmem:[%s2922_s9 + $0xd0] sm:$0xff] }
 0x141   : > { %v867_v49 = vmax.f32 %v821_v42, 0.0  ;;  %v2118_v35 = vpack.c.bf16 %v1196_v34, %v1195_v33  ;;  %v1201_v42 = vld [vmem:[%s2922_s9 + $0xf0] sm:$0xff] }
 0x142   : > { %v895_v41 = vadd.f32 %v894_v39, %v864_v38  ;;  %v865_v43 = vmax.f32 %v813_v40, 0.0  ;;  %v2121_v38 = vpack.c.bf16 %v1198_v37, %v1197_v36  ;;  %v1199_v39 = vld [vmem:[%s2922_s9 + $0xe0] sm:$0xff]  ;;  %v1200_v40 = vld [vmem:[%s2922_s9 + $0xe8] sm:$0xff] }
 0x144   : > { %v896_v46 = vadd.f32 %v895_v41, %v865_v43  ;;  %v1895_v47 = vpop.f32.mrb[28].mxu0  ;;  %v2124_v41 = vpack.c.bf16 %v1200_v40, %v1199_v39  ;;  %v1202_v43 = vld [vmem:[%s2922_s9 + $0xf8] sm:$0xff] }
 0x145   : > { %v825_v48 = vpop.f32.mrb[29].mxu0  ;;  %v834_v55 = vadd.f32 %v1895_v47, %v2607_v57 }
 0x146   : > { %v897_v51 = vadd.f32 %v896_v46, %v866_v44  ;;  %v826_v52 = vadd.f32 %v2607_v57, %v825_v48  ;;  %v1896_v53 = vpop.f32.mrb[30].mxu0  ;;  %v2127_v44 = vpack.c.bf16 %v1202_v43, %v1201_v42  ;;  %v1720_v46 = vld [vmem:[%s2921_s8] ss:$0 sm:$0xff] }
 0x147   : > { %v828_v54 = vpop.f32.mrb[31].mxu0  ;;  %v837_v61 = vadd.f32 %v1896_v53, %v2607_v57  ;;  %v870_v63 = vmax.f32 %v834_v55, 0.0 }
 0x148   : > { %v868_v56 = vmax.f32 %v826_v52, 0.0  ;;  %v898_v58 = vadd.f32 %v897_v51, %v867_v49  ;;  %v829_v59 = vadd.f32 %v2607_v57, %v828_v54  ;;  %v2250_v57 = vld [vmem:[%s2918_s5 + $0x10] sm:$0xff]  }
 0x149   : > { %v871_v1 = vmax.f32 %v837_v61, 0.0 }
 0x14a   : > { %v899_v60 = vadd.f32 %v898_v58, %v868_v56  ;;  %v869_v62 = vmax.f32 %v829_v59, 0.0  ;;  %v1492_v58 = vld [vmem:[%s2924_s11] sm:$0xff]  ;;  %v1493_v59 = vld [vmem:[%s2924_s11 + $0x8] sm:$0xff] }
 0x14b   : > { %v2154_v61 = vpack.c.bf16 %v1493_v59, %v1492_v58 }
 0x14c   : > { %v900_v0 = vadd.f32 %v899_v60, %v869_v62  ;;  %v1387_v47 = vpop.f32.mrb[32].mxu0  ;;  %v1494_v60 = vld [vmem:[%s2924_s11 + $0x10] sm:$0xff]  ;;  %v1495_v62 = vld [vmem:[%s2924_s11 + $0x18] sm:$0xff] }
 0x14d   : > { %v1388_v48 = vadd.f32 %v1720_v46, %v1387_v47  ;;  %v2009_v49 = vpop.f32.mrb[33].mxu0  ;;  %2155 = vmatpush3.bf16.msra.mxu0 %v2154_v61  ;;  %v1407_v61 = vld [vmem:[%s2922_s9 + $0x118] sm:$0xff] }
 0x14e   : > { %v901_v2 = vadd.f32 %v900_v0, %v870_v63  ;;  %v1390_v51 = vpop.f32.mrb[34].mxu0  ;;  %v2157_v63 = vpack.c.bf16 %v1495_v62, %v1494_v60  ;;  %2156 = vmatprep.subr.bf16.mxu0 %v2333_v27  ;;  %v1496_v0 = vld [vmem:[%s2924_s11 + $0x20] sm:$0xff]  ;;  %v1406_v60 = vld [vmem:[%s2922_s9 + $0x110] sm:$0xff] }
 0x14f   : > { %v1394_v52 = vmax.f32 %v1388_v48, 0.0  ;;  %v1391_v53 = vadd.f32 %v1720_v46, %v1390_v51  ;;  %v2010_v54 = vpop.f32.mrb[35].mxu0  ;;  %v2133_v62 = vpack.c.bf16 %v1407_v61, %v1406_v60 }
 0x150   : > { %v902_v3 = vadd.f32 %v901_v2, %v871_v1  ;;  %v1497_v1 = vld [vmem:[%s2924_s11 + $0x28] sm:$0xff] }
 0x151   : > { %v1395_v55 = vmax.f32 %v1391_v53, 0.0  ;;  %2158 = vmatpush3.bf16.msra.mxu0 %v2157_v63  ;;  %v2160_v2 = vpack.c.bf16 %v1497_v1, %v1496_v0  ;;  %v1404_v53 = vld [vmem:[%s2922_s9 + $0x100] sm:$0xff]  ;;  %v1405_v54 = vld [vmem:[%s2922_s9 + $0x108] sm:$0xff] }
 0x152   : > { %v903_v4 = vrot.slane %v902_v3, 4  ;;  %2159 = vmatprep.subr.bf16.mxu0 %v2333_v27  ;;  %v2130_v58 = vpack.c.bf16 %v1405_v54, %v1404_v53  ;;  %v1408_v63 = vld [vmem:[%s2922_s9 + $0x120] sm:$0xff]  ;;  %v1409_v0 = vld [vmem:[%s2922_s9 + $0x128] sm:$0xff] }
 0x153   : > { %v2741_v56 = vadd.f32 %v1395_v55, %v1394_v52  ;;  %v2136_v1 = vpack.c.bf16 %v1409_v0, %v1408_v63 }
 0x154   : > { %v904_v5 = vadd.f32 %v903_v4, %v902_v3  ;;  %v1498_v3 = vld [vmem:[%s2924_s11 + $0x30] sm:$0xff]  ;;  %v1499_v4 = vld [vmem:[%s2924_s11 + $0x38] sm:$0xff] }
 0x155   : > { %2161 = vmatpush3.bf16.msra.mxu0 %v2160_v2  ;;  %v1397_v2 = vrot.slane %v2741_v56, 4 }
 0x156   : > { %v905_v6 = vrot.slane %v904_v5, 2  ;;  %2162 = vmatprep.subr.bf16.mxu0 %v2333_v27 }
 0x158   : > { %v906_v7 = vadd.f32 %v905_v6, %v904_v5  ;;  %v2163_v5 = vpack.c.bf16 %v1499_v4, %v1498_v3  ;;  %v1500_v6 = vld [vmem:[%s2924_s11 + $0x40] sm:$0xff]  ;;  %v1411_v3 = vld [vmem:[%s2922_s9 + $0x138] sm:$0xff] }
 0x15a   : > { %v907_v8 = vrot.slane %v906_v7, 1  ;;  %2164 = vmatpush3.bf16.msra.mxu0 %v2163_v5  ;;  %v1398_v5 = vadd.f32 %v1397_v2, %v2741_v56  ;;  %v1415_v56 = vld [vmem:[%s2922_s9 + $0x158] sm:$0xff] }
 0x15b   : > { %2165 = vmatprep.subr.bf16.mxu0 %v2333_v27 }
 0x15c   : > { %v908_v9 = vadd.f32 %v907_v8, %v906_v7  ;;  %v1501_v7 = vld [vmem:[%s2924_s11 + $0x48] sm:$0xff] }
 0x15d   : > { %v2166_v8 = vpack.c.bf16 %v1501_v7, %v1500_v6  ;;  %v1412_v6 = vld [vmem:[%s2922_s9 + $0x140] sm:$0xff]  ;;  %v1413_v7 = vld [vmem:[%s2922_s9 + $0x148] sm:$0xff] }
 0x15e   : > { %v909_v11 = vmul.f32 0.00390625, %v908_v9  ;;  %v1502_v9 = vld [vmem:[%s2924_s11 + $0x50] sm:$0xff] }
 0x15f   : > { %2167 = vmatpush3.bf16.msra.mxu0 %v2166_v8  ;;  %v2142_v8 = vpack.c.bf16 %v1413_v7, %v1412_v6 }
 0x160   : > { %1930 = vmatmul.mubr.f32.vlgmr.msra.gmra.mrb[0].mxu1 %v909_v11  ;;  %2168 = vmatprep.subr.bf16.mxu0 %v2333_v27 }
 0x161   : > { %1933 = vmatpush3.bf16.msra.mxu1 %v2569_v50  ;;  %1948 = vmatprep.mubr.bf16.mxu1 %v2259_v10  ;;  %v2253_v50 = vld [vmem:[%s2918_s5 + $0x20] sm:$0xff]   ;;  %v1503_v10 = vld [vmem:[%s2924_s11 + $0x58] sm:$0xff] }
 0x162   : > { %1934 = vmatprep.subr.bf16.mxu1 %v2249_v12  ;;  %v2169_v11 = vpack.c.bf16 %v1503_v10, %v1502_v9  ;;  %v1399_v9 = vrot.slane %v1398_v5, 2  ;;  %v1414_v10 = vld [vmem:[%s2922_s9 + $0x150] sm:$0xff] }
 0x164   : > { %2170 = vmatpush3.bf16.msra.mxu0 %v2169_v11  ;;  %v2145_v11 = vpack.c.bf16 %v1415_v56, %v1414_v10 }
 0x165   : > { %1935 = vmatpush3.bf16.msra.mxu1 %v2249_v12  ;;  %v1504_v12 = vld [vmem:[%s2924_s11 + $0x60] sm:$0xff]  ;;  %2171 = vmatprep.subr.bf16.mxu0 %v2333_v27 }
 0x166   : > { %1936 = vmatprep.subr.bf16.mxu1 %v2250_v57 }
 0x169   : > { %1937 = vmatpush3.bf16.msra.mxu1 %v2250_v57  ;;  %v1505_v57 = vld [vmem:[%s2924_s11 + $0x68] sm:$0xff] }
 0x16a   : > { %1938 = vmatprep.subr.bf16.mxu1 %v2251_v13 }
 0x16d   : > { %1939 = vmatpush3.bf16.msra.mxu1 %v2251_v13  ;;  %v2172_v13 = vpack.c.bf16 %v1505_v57, %v1504_v12  ;;  %v1400_v12 = vadd.f32 %v1399_v9, %v1398_v5  ;;  %v1416_v57 = vld [vmem:[%s2922_s9 + $0x160] sm:$0xff] }
 0x16e   : > { %1940 = vmatprep.subr.bf16.mxu1 %v2253_v50 }
 0x16f   : > { %2173 = vmatpush3.bf16.msra.mxu0 %v2172_v13  ;;  %v1417_v13 = vld [vmem:[%s2922_s9 + $0x168] sm:$0xff] }
 0x170   : > { %2174 = vmatprep.subr.bf16.mxu0 %v2333_v27 }
 0x171   : > { %1941 = vmatpush3.bf16.msra.mxu1 %v2253_v50  ;;  %v1707_v50 = vld [vmem:[%s2919_s6] ss:$0 sm:$0xff] }
 0x172   : > { %1942 = vmatprep.subr.bf16.mxu1 %v2254_v14 }
 0x175   : > { %1943 = vmatpush3.bf16.msra.mxu1 %v2254_v14 }
 0x176   : > { %1944 = vmatprep.subr.bf16.mxu1 %v2256_v15 }
 0x179   : > { %1945 = vmatpush3.bf16.msra.mxu1 %v2256_v15 }
 0x17a   : > { %1946 = vmatprep.subr.bf16.mxu1 %v2257_v16 }
 0x17d   : > { %1947 = vmatpush3.bf16.msra.mxu1 %v2257_v16 }
 0x17e   : > { %2105 = vmatprep.subr.bf16.mxu1 %v2333_v27 }
 0x180   : > { %1949 = vmatmul.mubr.bf16.vlgmr.msra.gmra.mrb[4].mxu1 %v2260_v17 }
 0x181   : > { %1952 = vmatprep.mubr.bf16.mxu1 %v2262_v18  ;;  %2107 = vmatpush3.bf16.msra.mxu1 %v2106_v22 }
 0x182   : > { %2108 = vmatprep.subr.bf16.mxu1 %v2333_v27 }
 0x185   : > { %2110 = vmatpush3.bf16.msra.mxu1 %v2109_v25 }
 0x186   : > { %2111 = vmatprep.subr.bf16.mxu1 %v2333_v27 }
 0x188   : > { %1953 = vmatmul.mubr.bf16.gmra.mrb[8].mxu1 %v2263_v19 }
 0x189   : > { %1988 = vmatprep.mubr.msk.f32.mxu1 %vm2334_vm0, %v2335_v45  ;;  %2113 = vmatpush3.bf16.msra.mxu1 %v2112_v29 }
 0x18a   : > { %2114 = vmatprep.subr.bf16.mxu1 %v2333_v27 }
 0x18d   : > { %2116 = vmatpush3.bf16.msra.mxu1 %v2115_v32 }
 0x18e   : > { %2117 = vmatprep.subr.bf16.mxu1 %v2333_v27 }
 0x191   : > { %2119 = vmatpush3.bf16.msra.mxu1 %v2118_v35 }
 0x192   : > { %2120 = vmatprep.subr.bf16.mxu1 %v2333_v27 }
 0x195   : > { %2122 = vmatpush3.bf16.msra.mxu1 %v2121_v38 }
 0x196   : > { %2123 = vmatprep.subr.bf16.mxu1 %v2333_v27 }
 0x199   : > { %2125 = vmatpush3.bf16.msra.mxu1 %v2124_v41 }
 0x19a   : > { %2126 = vmatprep.subr.bf16.mxu1 %v2333_v27 }
 0x19d   : > { %2128 = vmatpush3.bf16.msra.mxu1 %v2127_v44 }
 0x19e   : > { %2129 = vmatprep.subr.bf16.mxu1 %v2333_v27 }
 0x253   : > { %v1950_v14 = vpop.f32.mrb[4].mxu1 }
 0x254   : > { %v1134_v15 = vpop.f32.mrb[5].mxu1  ;;  %v1143_v19 = vadd.f32 %v1950_v14, %v1707_v50  ;;  %v1401_v14 = vrot.slane %v1400_v12, 1 }
 0x255   : > { %v1135_v16 = vadd.f32 %v1707_v50, %v1134_v15  ;;  %v1951_v17 = vpop.f32.mrb[6].mxu1  ;;  %v1418_v15 = vld [vmem:[%s2922_s9 + $0x170] sm:$0xff] }
 0x256   : > { %v1137_v18 = vpop.f32.mrb[7].mxu1  ;;  %v1146_v22 = vadd.f32 %v1951_v17, %v1707_v50  ;;  %v1167_v24 = vmax.f32 %v1143_v19, 0.0 }
 0x257   : > { %v1138_v20 = vadd.f32 %v1707_v50, %v1137_v18  ;;  %v1165_v21 = vmax.f32 %v1135_v16, 0.0  ;;  %v1419_v16 = vld [vmem:[%s2922_s9 + $0x178] sm:$0xff]  ;;  %v1402_v18 = vadd.f32 %v1401_v14, %v1400_v12 }
 0x258   : > { %v1168_v29 = vmax.f32 %v1146_v22, 0.0  ;;  %v2151_v17 = vpack.c.bf16 %v1419_v16, %v1418_v15 }
 0x259   : > { %v1166_v23 = vmax.f32 %v1138_v20, 0.0  ;;  %v1403_v19 = vmul.f32 0.0625, %v1402_v18  ;;  %v1506_v20 = vld [vmem:[%s2924_s11 + $0x70] sm:$0xff] }
 0x25b   : > { %v1173_v25 = vadd.f32 %v1166_v23, %v1165_v21  ;;  %v1954_v26 = vpop.f32.mrb[8].mxu1  ;;  %v1507_v21 = vld [vmem:[%s2924_s11 + $0x78] sm:$0xff]  ;;  %v479_v23 = vld [vmem:[%s2923_s10] sm:$0x1] }
 0x25c   : > { %v1150_v28 = vpop.f32.mrb[9].mxu1  ;;  %v1159_v34 = vadd.f32 %v1954_v26, %v1707_v50  ;;  %v2175_v22 = vpack.c.bf16 %v1507_v21, %v1506_v20 }
 0x25d   : > { %v1174_v30 = vadd.f32 %v1173_v25, %v1167_v24  ;;  %v1151_v31 = vadd.f32 %v1707_v50, %v1150_v28  ;;  %v1955_v32 = vpop.f32.mrb[10].mxu1  ;;  %v1508_v28 = vld [vmem:[%s2925_s12] sm:$0x1] }
 0x25e   : > { %v1153_v33 = vpop.f32.mrb[11].mxu1  ;;  %v1162_v39 = vadd.f32 %v1955_v32, %v1707_v50  ;;  %v1171_v41 = vmax.f32 %v1159_v34, 0.0  ;;  %2176 = vmatpush3.bf16.msra.mxu0 %v2175_v22 }
 0x25f   : > { %v1169_v35 = vmax.f32 %v1151_v31, 0.0  ;;  %v1175_v36 = vadd.f32 %v1174_v30, %v1168_v29  ;;  %v1154_v37 = vadd.f32 %v1707_v50, %v1153_v33  ;;  %v2148_v50 = vpack.c.bf16 %v1417_v13, %v1416_v57 }
 0x260   : > { %v1172_v43 = vmax.f32 %v1162_v39, 0.0 }
 0x261   : > { %v1176_v38 = vadd.f32 %v1175_v36, %v1169_v35  ;;  %v1170_v40 = vmax.f32 %v1154_v37, 0.0 }
 0x263   : > { %v1177_v42 = vadd.f32 %v1176_v38, %v1170_v40 }
 0x265   : > { %v1178_v44 = vadd.f32 %v1177_v42, %v1171_v41 }
 0x267   : > { %v1179_v46 = vadd.f32 %v1178_v44, %v1172_v43 }
 0x269   : > { %v1180_v47 = vrot.slane %v1179_v46, 4 }
 0x26b   : > { %v1181_v48 = vadd.f32 %v1180_v47, %v1179_v46 }
 0x26d   : > { %v1182_v49 = vrot.slane %v1181_v48, 2 }
 0x26f   : > { %v1183_v51 = vadd.f32 %v1182_v49, %v1181_v48 }
 0x271   : > { %v1184_v52 = vrot.slane %v1183_v51, 1 }
 0x273   : > { %v1185_v55 = vadd.f32 %v1184_v52, %v1183_v51 }
 0x275   : > { %v1186_v59 = vmul.f32 0.015625, %v1185_v55 }
 0x277   : > { %1989 = vmatmul.mubr.f32.vlgmr.msra.gmra.mrb[0].mxu1 %v1186_v59 }
 0x278   : > { %2131 = vmatpush3.bf16.msra.mxu1 %v2130_v58  ;;  %2043 = vmatprep.mubr.msk.f32.mxu1 %vm2334_vm0, %v2335_v45  ;;  %v1410_v45 = vld [vmem:[%s2922_s9 + $0x130] sm:$0xff] }
 0x279   : > { %2132 = vmatprep.subr.bf16.mxu1 %v2333_v27  ;;  %v2139_v4 = vpack.c.bf16 %v1411_v3, %v1410_v45 }
 0x27c   : > { %2134 = vmatpush3.bf16.msra.mxu1 %v2133_v62 }
 0x27d   : > { %2135 = vmatprep.subr.bf16.mxu1 %v2333_v27 }
 0x280   : > { %2137 = vmatpush3.bf16.msra.mxu1 %v2136_v1 }
 0x281   : > { %2138 = vmatprep.subr.bf16.mxu1 %v2333_v27 }
 0x284   : > { %2140 = vmatpush3.bf16.msra.mxu1 %v2139_v4 }
 0x285   : > { %2141 = vmatprep.subr.bf16.mxu1 %v2333_v27 }
 0x288   : > { %2143 = vmatpush3.bf16.msra.mxu1 %v2142_v8 }
 0x289   : > { %2144 = vmatprep.subr.bf16.mxu1 %v2333_v27 }
 0x28c   : > { %2146 = vmatpush3.bf16.msra.mxu1 %v2145_v11 }
 0x28d   : > { %2147 = vmatprep.subr.bf16.mxu1 %v2333_v27 }
 0x290   : > { %2149 = vmatpush3.bf16.msra.mxu1 %v2148_v50 }
 0x291   : > { %2150 = vmatprep.subr.bf16.mxu1 %v2333_v27 }
 0x294   : > { %2152 = vmatpush3.bf16.msra.mxu1 %v2151_v17 }
 0x297   : > { %2044 = vmatmul.mubr.f32.vlgmr.msra.gmra.mrb[0].mxu1 %v1403_v19 }
 0x36a   : > { %v1486_v27 = vpop.f32.mrb[0].mxu1 }
 0x36b   : > { %v2177_v24 = vadd.f32 %v1486_v27, %v479_v23  ;;  %v2045_v25 = vpop.f32.mrb[1].mxu1 }
 0x36d   : > { %v1491_v26 = vmax.f32 %v2177_v24, 0.0 }
 0x36f   : > { %2079 = vmatmul.mubr.f32.vlgmr.msra.gmra.mrb[36].mxu0 %v1491_v26 }
 0x442   : > { %v1575_v29 = vpop.f32.mrb[36].mxu0 }
 0x443   : > { %v1576_v30 = vadd.f32 %v1575_v29, %v1508_v28  ;;  %v2080_v31 = vpop.f32.mrb[37].mxu0 }
 0x445   : > { %1579 = vst [vmem:[%s462_s17] sm:$0x1] %v1576_v30 }
 0x446   : > { %2282 = shalt.err (!%p2279_p3)
}
 0x447   : > { %s2283_s20 = scalar_lea.hbm %s2871_s15, 16  ;;  %s2287_s22 = scalar_lea.hbm %s2926_s13, 32 }
 0x448   : > { %p2284_p4 = scmp.ne.s32.totalorder %s2871_s15, %s2283_s20  ;;  %p2288_p9 = scmp.lt.u32.totalorder %s2871_s15, %s2926_s13 }
 0x449   : > { %p2289_p10 = scmp.lt.u32.totalorder %s2287_s22, %s2283_s20  ;;  %p2291_p12 = scmp.lt.u32.totalorder %s2283_s20, %s2871_s15 }
 0x44a   : > { %p2285_p7 = pnand %p2284_p4, %p2445_p5 }
 0x44b   : > { %p2290_p11 = por %p2289_p10, %p2288_p9 }
 0x44c   : > { %p2286_p8 = pneg %p2285_p7 }
 0x44d   : > { %p2292_p13 = por %p2291_p12, %p2290_p11 }
 0x44f   : > { %p2293_p0 = pnand %p2292_p13, %p2286_p8 }
 0x451   : > { %2296 = shalt.err (!%p2293_p0)
}
 0x452   : > { %2182 = dma.vmem_to_hbm [thread:$0]  (%p2445_p5), %s2873_s23, 16, %s2871_s15, %s1581_s27  }
 0x453 PF: > { %p2188_p1 = scmp.ge.s32.totalorder %s2331_s28, 2  ;;  %s1605_s3 = sand.u32 1, %s2319_s25  }
 0x454   : > { %s1606_s24 = scalar_lea.sflag [#allocation3], %s1605_s3 }
 0x455   : > { %p2185_p2 = pnand %p2188_p1, %p2449_p6 }
 0x457   : > { %2314 = dma.done.wait (!%p2185_p2), %s1606_s24, 16  }
 0x458   : > { %2316 = vsyncadd (!%p2185_p2), %s1606_s24, 4294967280  ;;  %s2938_s29 = sld [smem:[#allocation5_spill]]  ;;  %s2939_s27 = sld [smem:[#allocation6_spill]] }
 0x459   : > { %p23_p3 = scmp.ge.s32.totalorder %s2432_s14, 4   ;;  %s2940_s25 = smov %s2323_s26 }
 0x45a   : > { %s2942_s28 = smov %s2432_s14 }
 0x45b   :  { %25 = sbr.rel (!%p23_p3) target bundleno = 7 (0x7), region = 113 }
 0x45e   : > { %s2941_s26 = smov %s2938_s29 }
 0x462   :  { %1610 = vsyncpa [#allocation3], 1 }
 0x463   :  { %1612 = vsyncpa [#allocation3 + $0x1], 1 }

</bundles_post_ra>
